<compile_context>
chip_gen: v5e
topology: v5e:2x2
jax: 0.10.0
libtpu: 0.0.40
codegen_flags: <defaults>
</compile_context>

<pallas_src>
import functools

import jax
import jax.numpy as jnp
from jax.experimental import pallas as pl
from jax.experimental.pallas import tpu as pltpu


def _round_up(x, m):
    return ((x + m - 1) // m) * m


def _pad_last(a, n):
    pad = n - a.shape[-1]
    if pad == 0:
        return a
    cfg = [(0, 0)] * (a.ndim - 1) + [(0, pad)]
    return jnp.pad(a, cfg)


# ----------------------------------------------------------------------------
# Kernel 1: projection conv (kernel_size=2, stride=2) as an M-tiled matmul
#   patches (M, K=4*Cin) @ weight (K, C_pad) + bias (1, C_pad)
# ----------------------------------------------------------------------------
def _project_matmul_kernel(a_ref, w_ref, b_ref, o_ref):
    acc = jnp.dot(a_ref[...], w_ref[...], preferred_element_type=jnp.float32)
    o_ref[...] = (acc + b_ref[...]).astype(o_ref.dtype)


def project_conv(patches, w_mat, b_row):
    """patches: (M, K) bf16; w_mat: (K, C_pad) bf16; b_row: (1, C_pad) f32."""
    M, K = patches.shape
    C_pad = w_mat.shape[1]
    TM = min(M, 512)                              # rows per grid step
    grid_m = pl.cdiv(M, TM)

    flops = 2 * M * K * C_pad
    bytes_accessed = (M * K * 2 + grid_m * (K * C_pad * 2 + C_pad * 4)
                      + M * C_pad * 4)

    return pl.pallas_call(
        _project_matmul_kernel,
        out_shape=jax.ShapeDtypeStruct((M, C_pad), jnp.float32),
        grid_spec=pltpu.PrefetchScalarGridSpec(
            num_scalar_prefetch=0,
            grid=(grid_m,),
            in_specs=[
                pl.BlockSpec((TM, K), lambda i: (i, 0)),
                pl.BlockSpec((K, C_pad), lambda i: (0, 0)),
                pl.BlockSpec((1, C_pad), lambda i: (0, 0)),
            ],
            out_specs=pl.BlockSpec((TM, C_pad), lambda i: (i, 0)),
        ),
        compiler_params=pltpu.CompilerParams(
            dimension_semantics=("parallel",),
            vmem_limit_bytes=32 * 1024 * 1024,
        ),
        cost_estimate=pl.CostEstimate(
            flops=flops, transcendentals=0, bytes_accessed=bytes_accessed),
    )(patches, w_mat, b_row)


# ----------------------------------------------------------------------------
# Kernel 2: fused residual STACK (all layers in one kernel, grid step = batch)
#   for each layer:  y = ReLU(GroupNorm_1(Conv3x3_same(y))) + y
# Activation stays in VMEM across layers; flat (H*W, C_pad) layout.
# ----------------------------------------------------------------------------
def _res_stack_kernel(x_ref, w_ref, cb_ref, gw_ref, gb_ref, o_ref,
                      xpad_ref, col_ref, *, H, W, C_pad, C_real, n_layers, eps):
    cur = x_ref[0]                                      # (H*W, C_pad) f32

    # Zero the halo once per kernel invocation; the interior is rewritten each
    # layer, the border stays zero ('same' padding).
    xpad_ref[...] = jnp.zeros_like(xpad_ref)
    inv_n = 1.0 / float(H * W * C_real)

    for l in range(n_layers):                           # static unroll (small)
        # In-kernel 'same' padding: copy interior (single bf16 cast per layer).
        xpad_ref[1:H + 1, 1:W + 1, :] = (
            cur.reshape(H, W, C_pad).astype(jnp.bfloat16))

        # im2col into (H*W, 9*C_pad) -> one MXU matmul with deep contraction.
        xpad = xpad_ref[...]
        for dy in range(3):
            for dx in range(3):
                k = dy * 3 + dx
                col_ref[:, k * C_pad:(k + 1) * C_pad] = (
                    xpad[dy:dy + H, dx:dx + W, :].reshape(H * W, C_pad))

        acc = jnp.dot(col_ref[...], w_ref[l],
                      preferred_element_type=jnp.float32)
        acc = acc + cb_ref[l]                           # conv bias

        # GroupNorm(num_groups=1): single-pass sum / sum-of-squares.  Padded
        # channels of acc are exactly zero (zero weight/bias columns), so the
        # sums are unaffected; divide by the real element count.
        mean = jnp.sum(acc) * inv_n
        var = jnp.sum(acc * acc) * inv_n - mean * mean
        y = (acc - mean) * jax.lax.rsqrt(var + eps)
        y = jnp.maximum(y * gw_ref[l] + gb_ref[l], 0.0)  # affine + ReLU
        cur = y + cur                                    # residual add

    o_ref[0] = cur.astype(o_ref.dtype)


def residual_stack(x_flat, w_all, cb_all, gw_all, gb_all, *,
                   H, W, C_pad, C_real, eps=1e-5):
    """x_flat: (B, H*W, C_pad) f32
       w_all : (L, 9*C_pad, C_pad) bf16
       cb_all/gw_all/gb_all: (L, 1, C_pad) f32."""
    B, HW, _ = x_flat.shape
    n_layers = w_all.shape[0]
    kernel = functools.partial(_res_stack_kernel, H=H, W=W, C_pad=C_pad,
                               C_real=C_real, n_layers=n_layers, eps=eps)

    flops = 2 * B * n_layers * HW * (9 * C_pad) * C_pad
    bytes_accessed = (2 * B * HW * C_pad * 4            # activation in + out
                      + n_layers * (9 * C_pad * C_pad * 2 + 3 * C_pad * 4))

    return pl.pallas_call(
        kernel,
        out_shape=jax.ShapeDtypeStruct((B, HW, C_pad), jnp.float32),
        grid_spec=pltpu.PrefetchScalarGridSpec(
            num_scalar_prefetch=0,
            grid=(B,),
            in_specs=[
                pl.BlockSpec((1, HW, C_pad), lambda b: (b, 0, 0)),
                pl.BlockSpec((n_layers, 9 * C_pad, C_pad), lambda b: (0, 0, 0)),
                pl.BlockSpec((n_layers, 1, C_pad), lambda b: (0, 0, 0)),
                pl.BlockSpec((n_layers, 1, C_pad), lambda b: (0, 0, 0)),
                pl.BlockSpec((n_layers, 1, C_pad), lambda b: (0, 0, 0)),
            ],
            out_specs=pl.BlockSpec((1, HW, C_pad), lambda b: (b, 0, 0)),
            scratch_shapes=[
                pltpu.VMEM((H + 2, W + 2, C_pad), jnp.bfloat16),  # padded image
                pltpu.VMEM((HW, 9 * C_pad), jnp.bfloat16),        # im2col
            ],
        ),
        compiler_params=pltpu.CompilerParams(
            dimension_semantics=("parallel",),
            vmem_limit_bytes=64 * 1024 * 1024,
        ),
        cost_estimate=pl.CostEstimate(
            flops=flops, transcendentals=int(B * n_layers),
            bytes_accessed=bytes_accessed),
    )(x_flat, w_all, cb_all, gw_all, gb_all)


# ----------------------------------------------------------------------------
# EncoderBlock forward
# ----------------------------------------------------------------------------
def init_params(key, in_channels, out_channels, n_layers):
    keys = jax.random.split(key, 2 + 2 * n_layers)
    params = {
        "proj_w": jax.random.normal(keys[0], (out_channels, in_channels, 2, 2),
                                    jnp.float32) * 0.1,
        "proj_b": jax.random.normal(keys[1], (out_channels,), jnp.float32) * 0.05,
        "blocks": [],
    }
    for i in range(n_layers):
        cw = jax.random.normal(keys[2 + 2 * i],
                               (out_channels, out_channels, 3, 3),
                               jnp.float32) * 0.1
        cb = jax.random.normal(keys[3 + 2 * i], (out_channels,),
                               jnp.float32) * 0.05
        gw = jnp.ones((out_channels,), jnp.float32)
        gb = jnp.zeros((out_channels,), jnp.float32)
        params["blocks"].append((cw, cb, gw, gb))
    return params


def encoder_block_forward(x_nchw, params, eps=1e-5):
    """x_nchw: (B, Cin, H, W) -> (B, Cout, H//2, W//2), matching the PyTorch module."""
    B, Cin, H, W = x_nchw.shape
    Cout = params["proj_w"].shape[0]
    C_pad = _round_up(Cout, 128)          # lane-dense channel dim in-kernel
    H2, W2 = H // 2, W // 2

    x = jnp.transpose(x_nchw, (0, 2, 3, 1))          # NCHW -> NHWC
    x = x[:, :H2 * 2, :W2 * 2, :]                    # floor behavior for odd H/W

    # --- projection: 2x2 stride-2 patches -> tiled matmul (bf16 ops, f32 acc)
    # TODO(synk): patch extraction could be fused into the kernel (read 2-row
    # strips of x directly) to avoid materializing the patch matrix in HBM.
    patches = x.reshape(B, H2, 2, W2, 2, Cin).transpose(0, 1, 3, 2, 4, 5)
    patches = patches.reshape(B * H2 * W2, 4 * Cin).astype(jnp.bfloat16)
    w_mat = jnp.transpose(params["proj_w"], (2, 3, 1, 0)).reshape(4 * Cin, Cout)
    w_mat = _pad_last(w_mat, C_pad).astype(jnp.bfloat16)
    b_row = _pad_last(params["proj_b"].reshape(1, Cout), C_pad)

    y = project_conv(patches, w_mat, b_row)          # (M, C_pad) f32
    y = y.reshape(B, H2 * W2, C_pad)                 # flattened lane-dense layout

    # --- residual stack: all n_layers fused in one kernel ---------------------
    n_layers = len(params["blocks"])
    if n_layers > 0:
        w_all, cb_all, gw_all, gb_all = [], [], [], []
        for (cw, cb, gw, gb) in params["blocks"]:
            w_col = jnp.transpose(cw, (2, 3, 1, 0))  # (3, 3, Cin, Cout)
            w_col = jnp.pad(w_col, ((0, 0), (0, 0),
                                    (0, C_pad - Cout), (0, C_pad - Cout)))
            w_all.append(w_col.reshape(9 * C_pad, C_pad).astype(jnp.bfloat16))
            cb_all.append(_pad_last(cb.reshape(1, Cout), C_pad))
            gw_all.append(_pad_last(gw.reshape(1, Cout), C_pad))
            gb_all.append(_pad_last(gb.reshape(1, Cout), C_pad))
        w_all = jnp.stack(w_all)
        cb_all = jnp.stack(cb_all)
        gw_all = jnp.stack(gw_all)
        gb_all = jnp.stack(gb_all)
        y = residual_stack(y, w_all, cb_all, gw_all, gb_all, H=H2, W=W2,
                           C_pad=C_pad, C_real=Cout, eps=eps)

    y = y.reshape(B, H2, W2, C_pad)[..., :Cout]      # drop channel padding
    return jnp.transpose(y, (0, 3, 1, 2))            # NHWC -> NCHW


if __name__ == "__main__":
    B, Cin, H, W = 2, 4, 16, 16
    Cout, n_layers = 8, 2

    key = jax.random.PRNGKey(0)
    kx, kp = jax.random.split(key)
    x = jax.random.normal(kx, (B, Cin, H, W), jnp.float32)
    params = init_params(kp, Cin, Cout, n_layers)

    out = jax.jit(encoder_block_forward)(x, params)
    jax.block_until_ready(out)
    assert out.shape == (B, Cout, H // 2, W // 2), out.shape
    assert bool(jnp.all(jnp.isfinite(out)))
    print("KERNEL_OK")
</pallas_src>

<mosaic_0001>
module attributes {stable_mosaic.version = 11 : i64} {
  func.func @_project_matmul_kernel(%arg0: i32, %arg1: memref<128x16xbf16, #tpu.memory_space<vmem>>, %arg2: memref<16x128xbf16, #tpu.memory_space<vmem>>, %arg3: memref<1x128xf32, #tpu.memory_space<vmem>>, %arg4: memref<128x128xf32, #tpu.memory_space<vmem>>) attributes {dimension_semantics = [#tpu.dimension_semantics<parallel>], iteration_bounds = array<i64: 1>, scalar_prefetch = 0 : i64, scratch_operands = 0 : i64, tpu.core_type = #tpu.core_type<tc>, window_params = [{transform_indices = @transform_0, window_bounds = array<i64: 128, 16>}, {pipeline_mode = #tpu.pipeline_mode<synchronous>, transform_indices = @transform_1, window_bounds = array<i64: 16, 128>}, {pipeline_mode = #tpu.pipeline_mode<synchronous>, transform_indices = @transform_2, window_bounds = array<i64: 1, 128>}, {transform_indices = @transform_3, window_bounds = array<i64: 128, 128>}]} {
    %c0 = arith.constant 0 : index
    %c0_0 = arith.constant 0 : index
    %0 = vector.load %arg1[%c0, %c0_0] : memref<128x16xbf16, #tpu.memory_space<vmem>>, vector<128x16xbf16>
    %c0_1 = arith.constant 0 : index
    %c0_2 = arith.constant 0 : index
    %1 = vector.load %arg2[%c0_1, %c0_2] : memref<16x128xbf16, #tpu.memory_space<vmem>>, vector<16x128xbf16>
    %cst = arith.constant dense<0.000000e+00> : vector<128x128xf32>
    %2 = tpu.matmul %0, %1, %cst {dimension_numbers = #tpu.dot_dimension_numbers<[1], [0], [0], [1], [0, 0, 1, 1], [], []>} : vector<128x16xbf16>, vector<16x128xbf16>, vector<128x128xf32> -> vector<128x128xf32>
    %c0_3 = arith.constant 0 : index
    %c0_4 = arith.constant 0 : index
    %3 = vector.load %arg3[%c0_3, %c0_4] : memref<1x128xf32, #tpu.memory_space<vmem>>, vector<1x128xf32>
    %4 = vector.broadcast %3 : vector<1x128xf32> to vector<128x128xf32>
    %5 = arith.addf %2, %4 : vector<128x128xf32>
    %c0_5 = arith.constant 0 : index
    %c0_6 = arith.constant 0 : index
    %6 = vector.load %arg4[%c0_5, %c0_6] : memref<128x128xf32, #tpu.memory_space<vmem>>, vector<128x128xf32>
    tpu.vector_store %arg4[%c0_5, %c0_6], %5 {strides = array<i32>} : memref<128x128xf32, #tpu.memory_space<vmem>>, vector<128x128xf32>,
    return
  }
  func.func @transform_0(%arg0: i32) -> (i32, i32) {
    %c0_i32 = arith.constant 0 : i32
    %c0_i32_0 = arith.constant 0 : i32
    return %arg0, %c0_i32 : i32, i32
  }
  func.func @transform_1(%arg0: i32) -> (i32, i32) {
    %c0_i32 = arith.constant 0 : i32
    %c0_i32_0 = arith.constant 0 : i32
    %c0_i32_1 = arith.constant 0 : i32
    return %c0_i32, %c0_i32_0 : i32, i32
  }
  func.func @transform_2(%arg0: i32) -> (i32, i32) {
    %c0_i32 = arith.constant 0 : i32
    %c0_i32_0 = arith.constant 0 : i32
    %c0_i32_1 = arith.constant 0 : i32
    return %c0_i32, %c0_i32_0 : i32, i32
  }
  func.func @transform_3(%arg0: i32) -> (i32, i32) {
    %c0_i32 = arith.constant 0 : i32
    %c0_i32_0 = arith.constant 0 : i32
    return %arg0, %c0_i32 : i32, i32
  }
}

module attributes {stable_mosaic.version = 11 : i64} {
  func.func @_res_stack_kernel(%arg0: i32, %arg1: memref<1x64x128xf32, #tpu.memory_space<vmem>>, %arg2: memref<2x1152x128xbf16, #tpu.memory_space<vmem>>, %arg3: memref<2x1x128xf32, #tpu.memory_space<vmem>>, %arg4: memref<2x1x128xf32, #tpu.memory_space<vmem>>, %arg5: memref<2x1x128xf32, #tpu.memory_space<vmem>>, %arg6: memref<1x64x128xf32, #tpu.memory_space<vmem>>, %arg7: memref<10x10x128xbf16, #tpu.memory_space<vmem>>, %arg8: memref<64x1152xbf16, #tpu.memory_space<vmem>>) attributes {dimension_semantics = [#tpu.dimension_semantics<parallel>], iteration_bounds = array<i64: 2>, scalar_prefetch = 0 : i64, scratch_operands = 2 : i64, tpu.core_type = #tpu.core_type<tc>, window_params = [{transform_indices = @transform_0, window_bounds = array<i64: 1, 64, 128>}, {pipeline_mode = #tpu.pipeline_mode<synchronous>, transform_indices = @transform_1, window_bounds = array<i64: 2, 1152, 128>}, {pipeline_mode = #tpu.pipeline_mode<synchronous>, transform_indices = @transform_2, window_bounds = array<i64: 2, 1, 128>}, {pipeline_mode = #tpu.pipeline_mode<synchronous>, transform_indices = @transform_3, window_bounds = array<i64: 2, 1, 128>}, {pipeline_mode = #tpu.pipeline_mode<synchronous>, transform_indices = @transform_4, window_bounds = array<i64: 2, 1, 128>}, {transform_indices = @transform_5, window_bounds = array<i64: 1, 64, 128>}]} {
    %c0 = arith.constant 0 : index
    %c0_0 = arith.constant 0 : index
    %c0_1 = arith.constant 0 : index
    %0 = vector.load %arg1[%c0, %c0_0, %c0_1] : memref<1x64x128xf32, #tpu.memory_space<vmem>>, vector<1x64x128xf32>
    %1 = vector.shape_cast %0 : vector<1x64x128xf32> to vector<64x128xf32>
    %cst = arith.constant 0.000000e+00 : bf16
    %2 = vector.broadcast %cst : bf16 to vector<10x10x128xbf16>
    %c0_2 = arith.constant 0 : index
    %c0_3 = arith.constant 0 : index
    %c0_4 = arith.constant 0 : index
    %3 = vector.load %arg7[%c0_2, %c0_3, %c0_4] : memref<10x10x128xbf16, #tpu.memory_space<vmem>>, vector<10x10x128xbf16>
    tpu.vector_store %arg7[%c0_2, %c0_3, %c0_4], %2 {strides = array<i32>} : memref<10x10x128xbf16, #tpu.memory_space<vmem>>, vector<10x10x128xbf16>,
    %4 = vector.shape_cast %1 : vector<64x128xf32> to vector<8x8x128xf32>
    %5 = arith.truncf %4 : vector<8x8x128xf32> to vector<8x8x128xbf16>
    %c1 = arith.constant 1 : index
    %c1_5 = arith.constant 1 : index
    %c0_6 = arith.constant 0 : index
    %6 = vector.load %arg7[%c1, %c1_5, %c0_6] : memref<10x10x128xbf16, #tpu.memory_space<vmem>>, vector<8x8x128xbf16>
    tpu.vector_store %arg7[%c1, %c1_5, %c0_6], %5 {strides = array<i32>} : memref<10x10x128xbf16, #tpu.memory_space<vmem>>, vector<8x8x128xbf16>,
    %c0_7 = arith.constant 0 : index
    %c0_8 = arith.constant 0 : index
    %c0_9 = arith.constant 0 : index
    %7 = vector.load %arg7[%c0_7, %c0_8, %c0_9] : memref<10x10x128xbf16, #tpu.memory_space<vmem>>, vector<10x10x128xbf16>
    %8 = vector.extract_strided_slice %7 {offsets = [0, 0, 0], sizes = [8, 8, 128], strides = [1, 1, 1]} : vector<10x10x128xbf16> to vector<8x8x128xbf16>
    %9 = vector.shape_cast %8 : vector<8x8x128xbf16> to vector<64x128xbf16>
    %c0_10 = arith.constant 0 : index
    %c0_11 = arith.constant 0 : index
    %10 = vector.load %arg8[%c0_10, %c0_11] : memref<64x1152xbf16, #tpu.memory_space<vmem>>, vector<64x128xbf16>
    tpu.vector_store %arg8[%c0_10, %c0_11], %9 {strides = array<i32>} : memref<64x1152xbf16, #tpu.memory_space<vmem>>, vector<64x128xbf16>,
    %11 = vector.extract_strided_slice %7 {offsets = [0, 1, 0], sizes = [8, 8, 128], strides = [1, 1, 1]} : vector<10x10x128xbf16> to vector<8x8x128xbf16>
    %12 = vector.shape_cast %11 : vector<8x8x128xbf16> to vector<64x128xbf16>
    %c0_12 = arith.constant 0 : index
    %c128 = arith.constant 128 : index
    %13 = vector.load %arg8[%c0_12, %c128] : memref<64x1152xbf16, #tpu.memory_space<vmem>>, vector<64x128xbf16>
    tpu.vector_store %arg8[%c0_12, %c128], %12 {strides = array<i32>} : memref<64x1152xbf16, #tpu.memory_space<vmem>>, vector<64x128xbf16>,
    %14 = vector.extract_strided_slice %7 {offsets = [0, 2, 0], sizes = [8, 8, 128], strides = [1, 1, 1]} : vector<10x10x128xbf16> to vector<8x8x128xbf16>
    %15 = vector.shape_cast %14 : vector<8x8x128xbf16> to vector<64x128xbf16>
    %c0_13 = arith.constant 0 : index
    %c256 = arith.constant 256 : index
    %16 = vector.load %arg8[%c0_13, %c256] : memref<64x1152xbf16, #tpu.memory_space<vmem>>, vector<64x128xbf16>
    tpu.vector_store %arg8[%c0_13, %c256], %15 {strides = array<i32>} : memref<64x1152xbf16, #tpu.memory_space<vmem>>, vector<64x128xbf16>,
    %17 = vector.extract_strided_slice %7 {offsets = [1, 0, 0], sizes = [8, 8, 128], strides = [1, 1, 1]} : vector<10x10x128xbf16> to vector<8x8x128xbf16>
    %18 = vector.shape_cast %17 : vector<8x8x128xbf16> to vector<64x128xbf16>
    %c0_14 = arith.constant 0 : index
    %c384 = arith.constant 384 : index
    %19 = vector.load %arg8[%c0_14, %c384] : memref<64x1152xbf16, #tpu.memory_space<vmem>>, vector<64x128xbf16>
    tpu.vector_store %arg8[%c0_14, %c384], %18 {strides = array<i32>} : memref<64x1152xbf16, #tpu.memory_space<vmem>>, vector<64x128xbf16>,
    %20 = vector.extract_strided_slice %7 {offsets = [1, 1, 0], sizes = [8, 8, 128], strides = [1, 1, 1]} : vector<10x10x128xbf16> to vector<8x8x128xbf16>
    %21 = vector.shape_cast %20 : vector<8x8x128xbf16> to vector<64x128xbf16>
    %c0_15 = arith.constant 0 : index
    %c512 = arith.constant 512 : index
    %22 = vector.load %arg8[%c0_15, %c512] : memref<64x1152xbf16, #tpu.memory_space<vmem>>, vector<64x128xbf16>
    tpu.vector_store %arg8[%c0_15, %c512], %21 {strides = array<i32>} : memref<64x1152xbf16, #tpu.memory_space<vmem>>, vector<64x128xbf16>,
    %23 = vector.extract_strided_slice %7 {offsets = [1, 2, 0], sizes = [8, 8, 128], strides = [1, 1, 1]} : vector<10x10x128xbf16> to vector<8x8x128xbf16>
    %24 = vector.shape_cast %23 : vector<8x8x128xbf16> to vector<64x128xbf16>
    %c0_16 = arith.constant 0 : index
    %c640 = arith.constant 640 : index
    %25 = vector.load %arg8[%c0_16, %c640] : memref<64x1152xbf16, #tpu.memory_space<vmem>>, vector<64x128xbf16>
    tpu.vector_store %arg8[%c0_16, %c640], %24 {strides = array<i32>} : memref<64x1152xbf16, #tpu.memory_space<vmem>>, vector<64x128xbf16>,
    %26 = vector.extract_strided_slice %7 {offsets = [2, 0, 0], sizes = [8, 8, 128], strides = [1, 1, 1]} : vector<10x10x128xbf16> to vector<8x8x128xbf16>
    %27 = vector.shape_cast %26 : vector<8x8x128xbf16> to vector<64x128xbf16>
    %c0_17 = arith.constant 0 : index
    %c768 = arith.constant 768 : index
    %28 = vector.load %arg8[%c0_17, %c768] : memref<64x1152xbf16, #tpu.memory_space<vmem>>, vector<64x128xbf16>
    tpu.vector_store %arg8[%c0_17, %c768], %27 {strides = array<i32>} : memref<64x1152xbf16, #tpu.memory_space<vmem>>, vector<64x128xbf16>,
    %29 = vector.extract_strided_slice %7 {offsets = [2, 1, 0], sizes = [8, 8, 128], strides = [1, 1, 1]} : vector<10x10x128xbf16> to vector<8x8x128xbf16>
    %30 = vector.shape_cast %29 : vector<8x8x128xbf16> to vector<64x128xbf16>
    %c0_18 = arith.constant 0 : index
    %c896 = arith.constant 896 : index
    %31 = vector.load %arg8[%c0_18, %c896] : memref<64x1152xbf16, #tpu.memory_space<vmem>>, vector<64x128xbf16>
    tpu.vector_store %arg8[%c0_18, %c896], %30 {strides = array<i32>} : memref<64x1152xbf16, #tpu.memory_space<vmem>>, vector<64x128xbf16>,
    %32 = vector.extract_strided_slice %7 {offsets = [2, 2, 0], sizes = [8, 8, 128], strides = [1, 1, 1]} : vector<10x10x128xbf16> to vector<8x8x128xbf16>
    %33 = vector.shape_cast %32 : vector<8x8x128xbf16> to vector<64x128xbf16>
    %c0_19 = arith.constant 0 : index
    %c1024 = arith.constant 1024 : index
    %34 = vector.load %arg8[%c0_19, %c1024] : memref<64x1152xbf16, #tpu.memory_space<vmem>>, vector<64x128xbf16>
    tpu.vector_store %arg8[%c0_19, %c1024], %33 {strides = array<i32>} : memref<64x1152xbf16, #tpu.memory_space<vmem>>, vector<64x128xbf16>,
    %c0_20 = arith.constant 0 : index
    %c0_21 = arith.constant 0 : index
    %35 = vector.load %arg8[%c0_20, %c0_21] : memref<64x1152xbf16, #tpu.memory_space<vmem>>, vector<64x1152xbf16>
    %c0_22 = arith.constant 0 : index
    %c0_23 = arith.constant 0 : index
    %c0_24 = arith.constant 0 : index
    %36 = vector.load %arg2[%c0_22, %c0_23, %c0_24] : memref<2x1152x128xbf16, #tpu.memory_space<vmem>>, vector<1x1152x128xbf16>
    %37 = vector.shape_cast %36 : vector<1x1152x128xbf16> to vector<1152x128xbf16>
    %cst_25 = arith.constant dense<0.000000e+00> : vector<64x128xf32>
    %38 = tpu.matmul %35, %37, %cst_25 {dimension_numbers = #tpu.dot_dimension_numbers<[1], [0], [0], [1], [0, 0, 1, 1], [], []>} : vector<64x1152xbf16>, vector<1152x128xbf16>, vector<64x128xf32> -> vector<64x128xf32>
    %c0_26 = arith.constant 0 : index
    %c0_27 = arith.constant 0 : index
    %c0_28 = arith.constant 0 : index
    %39 = vector.load %arg3[%c0_26, %c0_27, %c0_28] : memref<2x1x128xf32, #tpu.memory_space<vmem>>, vector<1x1x128xf32>
    %40 = vector.shape_cast %39 : vector<1x1x128xf32> to vector<1x128xf32>
    %41 = vector.broadcast %40 : vector<1x128xf32> to vector<64x128xf32>
    %42 = arith.addf %38, %41 : vector<64x128xf32>
    %43 = vector.shape_cast %42 : vector<64x128xf32> to vector<1x64x128xf32>
    %cst_29 = arith.constant dense<0.000000e+00> : vector<1xf32>
    %44 = vector.multi_reduction <add>, %43, %cst_29 [1, 2] : vector<1x64x128xf32> to vector<1xf32>
    %45 = vector.shape_cast %44 : vector<1xf32> to vector<1x1x1xf32>
    %46 = vector.extract %45[0, 0, 0] : f32 from vector<1x1x1xf32>
    %cst_30 = arith.constant 0.001953125 : f32
    %47 = arith.mulf %46, %cst_30 : f32
    %48 = arith.mulf %42, %42 : vector<64x128xf32>
    %49 = vector.shape_cast %48 : vector<64x128xf32> to vector<1x64x128xf32>
    %cst_31 = arith.constant dense<0.000000e+00> : vector<1xf32>
    %50 = vector.multi_reduction <add>, %49, %cst_31 [1, 2] : vector<1x64x128xf32> to vector<1xf32>
    %51 = vector.shape_cast %50 : vector<1xf32> to vector<1x1x1xf32>
    %52 = vector.extract %51[0, 0, 0] : f32 from vector<1x1x1xf32>
    %cst_32 = arith.constant 0.001953125 : f32
    %53 = arith.mulf %52, %cst_32 : f32
    %54 = arith.mulf %47, %47 : f32
    %55 = arith.subf %53, %54 : f32
    %56 = vector.broadcast %47 : f32 to vector<64x128xf32>
    %57 = arith.subf %42, %56 : vector<64x128xf32>
    %cst_33 = arith.constant 9.99999974E-6 : f32
    %58 = arith.addf %55, %cst_33 : f32
    %59 = math.rsqrt %58 : f32
    %60 = vector.broadcast %59 : f32 to vector<64x128xf32>
    %61 = arith.mulf %57, %60 : vector<64x128xf32>
    %c0_34 = arith.constant 0 : index
    %c0_35 = arith.constant 0 : index
    %c0_36 = arith.constant 0 : index
    %62 = vector.load %arg4[%c0_34, %c0_35, %c0_36] : memref<2x1x128xf32, #tpu.memory_space<vmem>>, vector<1x1x128xf32>
    %63 = vector.shape_cast %62 : vector<1x1x128xf32> to vector<1x128xf32>
    %64 = vector.broadcast %63 : vector<1x128xf32> to vector<64x128xf32>
    %65 = arith.mulf %61, %64 : vector<64x128xf32>
    %c0_37 = arith.constant 0 : index
    %c0_38 = arith.constant 0 : index
    %c0_39 = arith.constant 0 : index
    %66 = vector.load %arg5[%c0_37, %c0_38, %c0_39] : memref<2x1x128xf32, #tpu.memory_space<vmem>>, vector<1x1x128xf32>
    %67 = vector.shape_cast %66 : vector<1x1x128xf32> to vector<1x128xf32>
    %68 = vector.broadcast %67 : vector<1x128xf32> to vector<64x128xf32>
    %69 = arith.addf %65, %68 : vector<64x128xf32>
    %cst_40 = arith.constant 0.000000e+00 : f32
    %70 = vector.broadcast %cst_40 : f32 to vector<64x128xf32>
    %71 = arith.maximumf %69, %70 : vector<64x128xf32>
    %72 = arith.addf %71, %1 : vector<64x128xf32>
    %73 = vector.shape_cast %72 : vector<64x128xf32> to vector<8x8x128xf32>
    %74 = arith.truncf %73 : vector<8x8x128xf32> to vector<8x8x128xbf16>
    %c1_41 = arith.constant 1 : index
    %c1_42 = arith.constant 1 : index
    %c0_43 = arith.constant 0 : index
    %75 = vector.load %arg7[%c1_41, %c1_42, %c0_43] : memref<10x10x128xbf16, #tpu.memory_space<vmem>>, vector<8x8x128xbf16>
    tpu.vector_store %arg7[%c1_41, %c1_42, %c0_43], %74 {strides = array<i32>} : memref<10x10x128xbf16, #tpu.memory_space<vmem>>, vector<8x8x128xbf16>,
    %c0_44 = arith.constant 0 : index
    %c0_45 = arith.constant 0 : index
    %c0_46 = arith.constant 0 : index
    %76 = vector.load %arg7[%c0_44, %c0_45, %c0_46] : memref<10x10x128xbf16, #tpu.memory_space<vmem>>, vector<10x10x128xbf16>
    %77 = vector.extract_strided_slice %76 {offsets = [0, 0, 0], sizes = [8, 8, 128], strides = [1, 1, 1]} : vector<10x10x128xbf16> to vector<8x8x128xbf16>
    %78 = vector.shape_cast %77 : vector<8x8x128xbf16> to vector<64x128xbf16>
    %c0_47 = arith.constant 0 : index
    %c0_48 = arith.constant 0 : index
    %79 = vector.load %arg8[%c0_47, %c0_48] : memref<64x1152xbf16, #tpu.memory_space<vmem>>, vector<64x128xbf16>
    tpu.vector_store %arg8[%c0_47, %c0_48], %78 {strides = array<i32>} : memref<64x1152xbf16, #tpu.memory_space<vmem>>, vector<64x128xbf16>,
    %80 = vector.extract_strided_slice %76 {offsets = [0, 1, 0], sizes = [8, 8, 128], strides = [1, 1, 1]} : vector<10x10x128xbf16> to vector<8x8x128xbf16>
    %81 = vector.shape_cast %80 : vector<8x8x128xbf16> to vector<64x128xbf16>
    %c0_49 = arith.constant 0 : index
    %c128_50 = arith.constant 128 : index
    %82 = vector.load %arg8[%c0_49, %c128_50] : memref<64x1152xbf16, #tpu.memory_space<vmem>>, vector<64x128xbf16>
    tpu.vector_store %arg8[%c0_49, %c128_50], %81 {strides = array<i32>} : memref<64x1152xbf16, #tpu.memory_space<vmem>>, vector<64x128xbf16>,
    %83 = vector.extract_strided_slice %76 {offsets = [0, 2, 0], sizes = [8, 8, 128], strides = [1, 1, 1]} : vector<10x10x128xbf16> to vector<8x8x128xbf16>
    %84 = vector.shape_cast %83 : vector<8x8x128xbf16> to vector<64x128xbf16>
    %c0_51 = arith.constant 0 : index
    %c256_52 = arith.constant 256 : index
    %85 = vector.load %arg8[%c0_51, %c256_52] : memref<64x1152xbf16, #tpu.memory_space<vmem>>, vector<64x128xbf16>
    tpu.vector_store %arg8[%c0_51, %c256_52], %84 {strides = array<i32>} : memref<64x1152xbf16, #tpu.memory_space<vmem>>, vector<64x128xbf16>,
    %86 = vector.extract_strided_slice %76 {offsets = [1, 0, 0], sizes = [8, 8, 128], strides = [1, 1, 1]} : vector<10x10x128xbf16> to vector<8x8x128xbf16>
    %87 = vector.shape_cast %86 : vector<8x8x128xbf16> to vector<64x128xbf16>
    %c0_53 = arith.constant 0 : index
    %c384_54 = arith.constant 384 : index
    %88 = vector.load %arg8[%c0_53, %c384_54] : memref<64x1152xbf16, #tpu.memory_space<vmem>>, vector<64x128xbf16>
    tpu.vector_store %arg8[%c0_53, %c384_54], %87 {strides = array<i32>} : memref<64x1152xbf16, #tpu.memory_space<vmem>>, vector<64x128xbf16>,
    %89 = vector.extract_strided_slice %76 {offsets = [1, 1, 0], sizes = [8, 8, 128], strides = [1, 1, 1]} : vector<10x10x128xbf16> to vector<8x8x128xbf16>
    %90 = vector.shape_cast %89 : vector<8x8x128xbf16> to vector<64x128xbf16>
    %c0_55 = arith.constant 0 : index
    %c512_56 = arith.constant 512 : index
    %91 = vector.load %arg8[%c0_55, %c512_56] : memref<64x1152xbf16, #tpu.memory_space<vmem>>, vector<64x128xbf16>
    tpu.vector_store %arg8[%c0_55, %c512_56], %90 {strides = array<i32>} : memref<64x1152xbf16, #tpu.memory_space<vmem>>, vector<64x128xbf16>,
    %92 = vector.extract_strided_slice %76 {offsets = [1, 2, 0], sizes = [8, 8, 128], strides = [1, 1, 1]} : vector<10x10x128xbf16> to vector<8x8x128xbf16>
    %93 = vector.shape_cast %92 : vector<8x8x128xbf16> to vector<64x128xbf16>
    %c0_57 = arith.constant 0 : index
    %c640_58 = arith.constant 640 : index
    %94 = vector.load %arg8[%c0_57, %c640_58] : memref<64x1152xbf16, #tpu.memory_space<vmem>>, vector<64x128xbf16>
    tpu.vector_store %arg8[%c0_57, %c640_58], %93 {strides = array<i32>} : memref<64x1152xbf16, #tpu.memory_space<vmem>>, vector<64x128xbf16>,
    %95 = vector.extract_strided_slice %76 {offsets = [2, 0, 0], sizes = [8, 8, 128], strides = [1, 1, 1]} : vector<10x10x128xbf16> to vector<8x8x128xbf16>
    %96 = vector.shape_cast %95 : vector<8x8x128xbf16> to vector<64x128xbf16>
    %c0_59 = arith.constant 0 : index
    %c768_60 = arith.constant 768 : index
    %97 = vector.load %arg8[%c0_59, %c768_60] : memref<64x1152xbf16, #tpu.memory_space<vmem>>, vector<64x128xbf16>
    tpu.vector_store %arg8[%c0_59, %c768_60], %96 {strides = array<i32>} : memref<64x1152xbf16, #tpu.memory_space<vmem>>, vector<64x128xbf16>,
    %98 = vector.extract_strided_slice %76 {offsets = [2, 1, 0], sizes = [8, 8, 128], strides = [1, 1, 1]} : vector<10x10x128xbf16> to vector<8x8x128xbf16>
    %99 = vector.shape_cast %98 : vector<8x8x128xbf16> to vector<64x128xbf16>
    %c0_61 = arith.constant 0 : index
    %c896_62 = arith.constant 896 : index
    %100 = vector.load %arg8[%c0_61, %c896_62] : memref<64x1152xbf16, #tpu.memory_space<vmem>>, vector<64x128xbf16>
    tpu.vector_store %arg8[%c0_61, %c896_62], %99 {strides = array<i32>} : memref<64x1152xbf16, #tpu.memory_space<vmem>>, vector<64x128xbf16>,
    %101 = vector.extract_strided_slice %76 {offsets = [2, 2, 0], sizes = [8, 8, 128], strides = [1, 1, 1]} : vector<10x10x128xbf16> to vector<8x8x128xbf16>
    %102 = vector.shape_cast %101 : vector<8x8x128xbf16> to vector<64x128xbf16>
    %c0_63 = arith.constant 0 : index
    %c1024_64 = arith.constant 1024 : index
    %103 = vector.load %arg8[%c0_63, %c1024_64] : memref<64x1152xbf16, #tpu.memory_space<vmem>>, vector<64x128xbf16>
    tpu.vector_store %arg8[%c0_63, %c1024_64], %102 {strides = array<i32>} : memref<64x1152xbf16, #tpu.memory_space<vmem>>, vector<64x128xbf16>,
    %c0_65 = arith.constant 0 : index
    %c0_66 = arith.constant 0 : index
    %104 = vector.load %arg8[%c0_65, %c0_66] : memref<64x1152xbf16, #tpu.memory_space<vmem>>, vector<64x1152xbf16>
    %c1_67 = arith.constant 1 : index
    %c0_68 = arith.constant 0 : index
    %c0_69 = arith.constant 0 : index
    %105 = vector.load %arg2[%c1_67, %c0_68, %c0_69] : memref<2x1152x128xbf16, #tpu.memory_space<vmem>>, vector<1x1152x128xbf16>
    %106 = vector.shape_cast %105 : vector<1x1152x128xbf16> to vector<1152x128xbf16>
    %cst_70 = arith.constant dense<0.000000e+00> : vector<64x128xf32>
    %107 = tpu.matmul %104, %106, %cst_70 {dimension_numbers = #tpu.dot_dimension_numbers<[1], [0], [0], [1], [0, 0, 1, 1], [], []>} : vector<64x1152xbf16>, vector<1152x128xbf16>, vector<64x128xf32> -> vector<64x128xf32>
    %c1_71 = arith.constant 1 : index
    %c0_72 = arith.constant 0 : index
    %c0_73 = arith.constant 0 : index
    %108 = vector.load %arg3[%c1_71, %c0_72, %c0_73] : memref<2x1x128xf32, #tpu.memory_space<vmem>>, vector<1x1x128xf32>
    %109 = vector.shape_cast %108 : vector<1x1x128xf32> to vector<1x128xf32>
    %110 = vector.broadcast %109 : vector<1x128xf32> to vector<64x128xf32>
    %111 = arith.addf %107, %110 : vector<64x128xf32>
    %112 = vector.shape_cast %111 : vector<64x128xf32> to vector<1x64x128xf32>
    %cst_74 = arith.constant dense<0.000000e+00> : vector<1xf32>
    %113 = vector.multi_reduction <add>, %112, %cst_74 [1, 2] : vector<1x64x128xf32> to vector<1xf32>
    %114 = vector.shape_cast %113 : vector<1xf32> to vector<1x1x1xf32>
    %115 = vector.extract %114[0, 0, 0] : f32 from vector<1x1x1xf32>
    %cst_75 = arith.constant 0.001953125 : f32
    %116 = arith.mulf %115, %cst_75 : f32
    %117 = arith.mulf %111, %111 : vector<64x128xf32>
    %118 = vector.shape_cast %117 : vector<64x128xf32> to vector<1x64x128xf32>
    %cst_76 = arith.constant dense<0.000000e+00> : vector<1xf32>
    %119 = vector.multi_reduction <add>, %118, %cst_76 [1, 2] : vector<1x64x128xf32> to vector<1xf32>
    %120 = vector.shape_cast %119 : vector<1xf32> to vector<1x1x1xf32>
    %121 = vector.extract %120[0, 0, 0] : f32 from vector<1x1x1xf32>
    %cst_77 = arith.constant 0.001953125 : f32
    %122 = arith.mulf %121, %cst_77 : f32
    %123 = arith.mulf %116, %116 : f32
    %124 = arith.subf %122, %123 : f32
    %125 = vector.broadcast %116 : f32 to vector<64x128xf32>
    %126 = arith.subf %111, %125 : vector<64x128xf32>
    %cst_78 = arith.constant 9.99999974E-6 : f32
    %127 = arith.addf %124, %cst_78 : f32
    %128 = math.rsqrt %127 : f32
    %129 = vector.broadcast %128 : f32 to vector<64x128xf32>
    %130 = arith.mulf %126, %129 : vector<64x128xf32>
    %c1_79 = arith.constant 1 : index
    %c0_80 = arith.constant 0 : index
    %c0_81 = arith.constant 0 : index
    %131 = vector.load %arg4[%c1_79, %c0_80, %c0_81] : memref<2x1x128xf32, #tpu.memory_space<vmem>>, vector<1x1x128xf32>
    %132 = vector.shape_cast %131 : vector<1x1x128xf32> to vector<1x128xf32>
    %133 = vector.broadcast %132 : vector<1x128xf32> to vector<64x128xf32>
    %134 = arith.mulf %130, %133 : vector<64x128xf32>
    %c1_82 = arith.constant 1 : index
    %c0_83 = arith.constant 0 : index
    %c0_84 = arith.constant 0 : index
    %135 = vector.load %arg5[%c1_82, %c0_83, %c0_84] : memref<2x1x128xf32, #tpu.memory_space<vmem>>, vector<1x1x128xf32>
    %136 = vector.shape_cast %135 : vector<1x1x128xf32> to vector<1x128xf32>
    %137 = vector.broadcast %136 : vector<1x128xf32> to vector<64x128xf32>
    %138 = arith.addf %134, %137 : vector<64x128xf32>
    %cst_85 = arith.constant 0.000000e+00 : f32
    %139 = vector.broadcast %cst_85 : f32 to vector<64x128xf32>
    %140 = arith.maximumf %138, %139 : vector<64x128xf32>
    %141 = arith.addf %140, %72 : vector<64x128xf32>
    %c0_86 = arith.constant 0 : index
    %c0_87 = arith.constant 0 : index
    %c0_88 = arith.constant 0 : index
    %142 = vector.load %arg6[%c0_86, %c0_87, %c0_88] : memref<1x64x128xf32, #tpu.memory_space<vmem>>, vector<1x64x128xf32>
    %143 = vector.shape_cast %142 : vector<1x64x128xf32> to vector<64x128xf32>
    %144 = vector.shape_cast %141 : vector<64x128xf32> to vector<1x64x128xf32>
    tpu.vector_store %arg6[%c0_86, %c0_87, %c0_88], %144 {strides = array<i32>} : memref<1x64x128xf32, #tpu.memory_space<vmem>>, vector<1x64x128xf32>,
    return
  }
  func.func @transform_0(%arg0: i32) -> (i32, i32, i32) {
    %c0_i32 = arith.constant 0 : i32
    %c0_i32_0 = arith.constant 0 : i32
    %c0_i32_1 = arith.constant 0 : i32
    return %arg0, %c0_i32, %c0_i32_0 : i32, i32, i32
  }
  func.func @transform_1(%arg0: i32) -> (i32, i32, i32) {
    %c0_i32 = arith.constant 0 : i32
    %c0_i32_0 = arith.constant 0 : i32
    %c0_i32_1 = arith.constant 0 : i32
    %c0_i32_2 = arith.constant 0 : i32
    return %c0_i32, %c0_i32_0, %c0_i32_1 : i32, i32, i32
  }
  func.func @transform_2(%arg0: i32) -> (i32, i32, i32) {
    %c0_i32 = arith.constant 0 : i32
    %c0_i32_0 = arith.constant 0 : i32
    %c0_i32_1 = arith.constant 0 : i32
    %c0_i32_2 = arith.constant 0 : i32
    return %c0_i32, %c0_i32_0, %c0_i32_1 : i32, i32, i32
  }
  func.func @transform_3(%arg0: i32) -> (i32, i32, i32) {
    %c0_i32 = arith.constant 0 : i32
    %c0_i32_0 = arith.constant 0 : i32
    %c0_i32_1 = arith.constant 0 : i32
    %c0_i32_2 = arith.constant 0 : i32
    return %c0_i32, %c0_i32_0, %c0_i32_1 : i32, i32, i32
  }
  func.func @transform_4(%arg0: i32) -> (i32, i32, i32) {
    %c0_i32 = arith.constant 0 : i32
    %c0_i32_0 = arith.constant 0 : i32
    %c0_i32_1 = arith.constant 0 : i32
    %c0_i32_2 = arith.constant 0 : i32
    return %c0_i32, %c0_i32_0, %c0_i32_1 : i32, i32, i32
  }
  func.func @transform_5(%arg0: i32) -> (i32, i32, i32) {
    %c0_i32 = arith.constant 0 : i32
    %c0_i32_0 = arith.constant 0 : i32
    %c0_i32_1 = arith.constant 0 : i32
    return %arg0, %c0_i32, %c0_i32_0 : i32, i32, i32
  }
}

</mosaic_0001>

<bundles_post_ra>
// kernel: encoder_block_forward.2
= control target key start
LH: loop header
LB: loop body
LE: loop exit
PB: predicated region body
PF: predicated region fallthrough
CT: control target
= control target key end

     0   :  { %vm83_vm0 = vcmask 130048   ;;  %s340_s1 = inlined_call_operand.vmem [shape: bf16[16,128], index: 1, kind: input, shape index: {}]   ;;  %s341_s0 = inlined_call_operand.vmem [shape: bf16[128,16], index: 0, kind: input, shape index: {}]   ;;  %s342_s2 = inlined_call_operand.vmem [shape: f32[1,128], index: 2, kind: input, shape index: {}]   ;;  %s343_s3 = inlined_call_operand.vmem [shape: f32[128,128], index: 3, kind: output, shape index: {}]  }
   0x1   :  { %v229_v0 = vld [vmem:[%s340_s1] sm:$0xff]  ;;  %v223_v2 = vld [vmem:[%s341_s0 + $0x10] sm:$0xff]  ;;  %v222_v5 = vld [vmem:[%s341_s0 + $0x8] sm:$0xff] }
   0x2   :  { %v221_v1 = vld [vmem:[%s341_s0] sm:$0xff]  ;;  %115 = vmatpush.bf16.msra.mxu0 %v229_v0  ;;  %230 = vmatpush.bf16.msra.mxu1 %v229_v0  ;;  %v227_v4 = vld [vmem:[%s341_s0 + $0x30] sm:$0xff]  ;;  %v224_v6 = vld [vmem:[%s341_s0 + $0x18] sm:$0xff] }
   0x3   :  { %v225_v3 = vld [vmem:[%s341_s0 + $0x20] sm:$0xff]  ;;  %231 = vmatpush.bf16.msra.mxu2 %v229_v0  ;;  %232 = vmatpush.bf16.msra.mxu3 %v229_v0  ;;  %v226_v7 = vld [vmem:[%s341_s0 + $0x28] sm:$0xff]  ;;  %v228_v8 = vld [vmem:[%s341_s0 + $0x38] sm:$0xff] }
   0x4   :  { %v233_v9 = vld [vmem:[%s342_s2] ss:$0 sm:$0xff] }
   0x5   :  { %213 = vmatmul.msk.bf16.vlgmr.msra.gmra.mxu0 %vm83_vm0, %v221_v1  ;;  %215 = vmatmul.msk.bf16.vlgmr.msra.gmra.mxu1 %vm83_vm0, %v223_v2 }
   0x6   :  { %217 = vmatmul.msk.bf16.vlgmr.msra.gmra.mxu2 %vm83_vm0, %v225_v3  ;;  %219 = vmatmul.msk.bf16.vlgmr.msra.gmra.mxu3 %vm83_vm0, %v227_v4 }
  0x15   :  { %214 = vmatmul.msk.bf16.gmra.mxu0 %vm83_vm0, %v222_v5  ;;  %216 = vmatmul.msk.bf16.gmra.mxu1 %vm83_vm0, %v224_v6 }
  0x16   :  { %218 = vmatmul.msk.bf16.gmra.mxu2 %vm83_vm0, %v226_v7  ;;  %220 = vmatmul.msk.bf16.gmra.mxu3 %vm83_vm0, %v228_v8 }
  0x82   :  { %v117_v10 = vpop.f32.mrf.mxu0  ;;  %v127_v11 = vpop.f32.mrf.mxu1 }
  0x83   :  { %v118_v12 = vadd.f32 %v233_v9, %v117_v10  ;;  %v128_v13 = vadd.f32 %v233_v9, %v127_v11 }
  0x85   :  { %157 = vst [vmem:[%s343_s3] sm:$0xff] %v118_v12 }
  0x86   :  { %161 = vst [vmem:[%s343_s3 + $0x20] sm:$0xff] %v128_v13 }
  0x89   :  { %v137_v14 = vpop.f32.mrf.mxu2  ;;  %v147_v15 = vpop.f32.mrf.mxu3 }
  0x8a   :  { %v138_v16 = vadd.f32 %v233_v9, %v137_v14  ;;  %v148_v17 = vadd.f32 %v233_v9, %v147_v15  ;;  %v119_v18 = vpop.f32.mrf.mxu0  ;;  %v129_v19 = vpop.f32.mrf.mxu1 }
  0x8b   :  { %v120_v20 = vadd.f32 %v233_v9, %v119_v18  ;;  %v130_v21 = vadd.f32 %v233_v9, %v129_v19 }
  0x8c   :  { %165 = vst [vmem:[%s343_s3 + $0x40] sm:$0xff] %v138_v16 }
  0x8d   :  { %169 = vst [vmem:[%s343_s3 + $0x60] sm:$0xff] %v148_v17 }
  0x8e   :  { %158 = vst [vmem:[%s343_s3 + $0x8] sm:$0xff] %v120_v20 }
  0x8f   :  { %162 = vst [vmem:[%s343_s3 + $0x28] sm:$0xff] %v130_v21 }
  0x91   :  { %v139_v22 = vpop.f32.mrf.mxu2  ;;  %v149_v23 = vpop.f32.mrf.mxu3 }
  0x92   :  { %v140_v24 = vadd.f32 %v233_v9, %v139_v22  ;;  %v150_v25 = vadd.f32 %v233_v9, %v149_v23  ;;  %v122_v26 = vpop.f32.mrf.mxu0  ;;  %v132_v27 = vpop.f32.mrf.mxu1 }
  0x93   :  { %v123_v28 = vadd.f32 %v233_v9, %v122_v26  ;;  %v133_v29 = vadd.f32 %v233_v9, %v132_v27 }
  0x94   :  { %166 = vst [vmem:[%s343_s3 + $0x48] sm:$0xff] %v140_v24 }
  0x95   :  { %170 = vst [vmem:[%s343_s3 + $0x68] sm:$0xff] %v150_v25 }
  0x96   :  { %159 = vst [vmem:[%s343_s3 + $0x10] sm:$0xff] %v123_v28 }
  0x97   :  { %163 = vst [vmem:[%s343_s3 + $0x30] sm:$0xff] %v133_v29 }
  0x99   :  { %v142_v30 = vpop.f32.mrf.mxu2  ;;  %v152_v31 = vpop.f32.mrf.mxu3 }
  0x9a   :  { %v143_v32 = vadd.f32 %v233_v9, %v142_v30  ;;  %v153_v33 = vadd.f32 %v233_v9, %v152_v31  ;;  %v124_v34 = vpop.f32.mrf.mxu0  ;;  %v134_v35 = vpop.f32.mrf.mxu1 }
  0x9b   :  { %v125_v36 = vadd.f32 %v233_v9, %v124_v34  ;;  %v135_v37 = vadd.f32 %v233_v9, %v134_v35 }
  0x9c   :  { %167 = vst [vmem:[%s343_s3 + $0x50] sm:$0xff] %v143_v32 }
  0x9d   :  { %171 = vst [vmem:[%s343_s3 + $0x70] sm:$0xff] %v153_v33 }
  0x9e   :  { %160 = vst [vmem:[%s343_s3 + $0x18] sm:$0xff] %v125_v36 }
  0x9f   :  { %164 = vst [vmem:[%s343_s3 + $0x38] sm:$0xff] %v135_v37 }
  0xa1   :  { %v144_v38 = vpop.f32.mrf.mxu2  ;;  %v154_v39 = vpop.f32.mrf.mxu3 }
  0xa2   :  { %v145_v40 = vadd.f32 %v233_v9, %v144_v38  ;;  %v155_v41 = vadd.f32 %v233_v9, %v154_v39 }
  0xa4   :  { %168 = vst [vmem:[%s343_s3 + $0x58] sm:$0xff] %v145_v40 }
  0xa5   :  { %172 = vst [vmem:[%s343_s3 + $0x78] sm:$0xff] %v155_v41 }

// kernel: encoder_block_forward.3
= control target key start
LH: loop header
LB: loop body
LE: loop exit
PB: predicated region body
PF: predicated region fallthrough
CT: control target
= control target key end

     0   :  { %s4944_s18 = smov 0   ;;  %s6042_s0 = inlined_call_operand.vmem [shape: f32[2,64,128], index: 0, kind: input, shape index: {}]   ;;  %s6043_s1 = inlined_call_operand.vmem [shape: bf16[2,1152,128], index: 1, kind: input, shape index: {}]   ;;  %s6044_s2 = inlined_call_operand.vmem [shape: f32[2,1,128], index: 2, kind: input, shape index: {}]   ;;  %s6045_s3 = inlined_call_operand.vmem [shape: f32[2,1,128], index: 3, kind: input, shape index: {}]   ;;  %s6046_s4 = inlined_call_operand.vmem [shape: f32[2,1,128], index: 4, kind: input, shape index: {}]   ;;  %s6047_s5 = inlined_call_operand.vmem [shape: f32[2,64,128], index: 5, kind: output, shape index: {}]  }
   0x1 LB: > { %s3590_s19 = sadd.s32 4294967295, %s4911_s18   ;;  %p3594_p0 = scmp.ge.s32.totalorder %s4911_s18, 1  ;;  %s4911_s18 = sphi %s4944_s18, %s15_s18  }
   0x2   : > { %p187_p1 = scmp.lt.s32.totalorder %s4911_s18, 3 }
   0x4   : > { %p188_p2 = pnand %p3594_p0, %p187_p1 }
   0x6   : > { %191 = sbr.rel (%p188_p2) target bundleno = 1275 (0x4fb), region = 40 }
   0xb   : > { %v4677_v0 = vld [vmem:[%s6043_s1 + $0x38] sm:$0xff]  ;;  %p215_p3 = scmp.lt.s32.totalorder %s3590_s19, 1  ;;  %v4913_v2 = vmov 0   ;;  %v4676_v3 = vld [vmem:[%s6043_s1 + $0x30] sm:$0xff]  ;;  %v4675_v5 = vld [vmem:[%s6043_s1 + $0x28] sm:$0xff]  ;;  %vm343_vm0 = vcmask 1043456  }
   0xc   : > { %v4685_v1 = vld [vmem:[%s6043_s1 + $0x78] sm:$0xff]  ;;  %242 = vst [vmem:[#allocation2 + $0x20] sm:$0xf] %v4913_v2  ;;  %4850 = vmatpush.bf16.msra.mxu2 %v4677_v0  ;;  %1519 = vmatpush.bf16.msra.mxu0 %v4677_v0  ;;  %v4684_v4 = vld [vmem:[%s6043_s1 + $0x70] sm:$0xff]  ;;  %v4683_v8 = vld [vmem:[%s6043_s1 + $0x68] sm:$0xff]  ;;  %vm349_vm3 = vcmask 1040384  }
   0xd   : > { %s6068_s19 = smov (!%p215_p3, %s3590_s19), 1  ;;  %244 = vst [vmem:[#allocation2 + $0x28] sm:$0xf] %v4913_v2  ;;  %4858 = vmatpush.bf16.msra.mxu3 %v4685_v1  ;;  %1548 = vmatpush.bf16.msra.mxu1 %v4685_v1  ;;  %vm344_vm1 = vsmask.f32 7938  ;;  %v4674_v16 = vld [vmem:[%s6043_s1 + $0x20] sm:$0xff] }
   0xe   : > { %s4632_s28 = sshll.u32 %s6068_s19, 6  ;;  %234 = vst [vmem:[#allocation2] sm:$0xf] %v4913_v2  ;;  %v4682_v17 = vld [vmem:[%s6043_s1 + $0x60] sm:$0xff]  ;;  %vm5007_vm2 = vmand %vm343_vm0, %vm344_vm1  ;;  %v4673_v29 = vld [vmem:[%s6043_s1 + $0x18] sm:$0xff]  ;;  %vm572_vm9 = vcmask 1042432  }
   0xf   : > { %s4975_s6 = scalar_lea.vmem %s6042_s0, %s4632_s28  ;;  %235 = vst [vmem:[#allocation2 + $0x4] sm:$0x1] %v4913_v2  ;;  %v4681_v30 = vld [vmem:[%s6043_s1 + $0x58] sm:$0xff]  ;;  %v4672_v38 = vld [vmem:[%s6043_s1 + $0x10] sm:$0xff]  ;;  %v4671_v50 = vld [vmem:[%s6043_s1 + $0x8] sm:$0xff]  ;;  %vm573_vm10 = vcmask 1046532   ;;  %s224_s17 = scalar_lea.vmem %s6047_s5, %s4632_s28 }
  0x10   : > { %4851 = vmatpush.bf16.msra.mxu2 %v4676_v3  ;;  %1520 = vmatpush.bf16.msra.mxu0 %v4676_v3  ;;  %v229_v6 = vld [vmem:[%s4975_s6 + $0x18] sm:$0xff]  ;;  %v230_v7 = vld [vmem:[%s4975_s6 + $0x20] sm:$0xff]  ;;  %236 = vst [vmem:[#allocation2 + $0x8] sm:$0xf] %v4913_v2  ;;  %v231_v18 = vld [vmem:[%s4975_s6 + $0x28] sm:$0xff] }
  0x11   : > { %4859 = vmatpush.bf16.msra.mxu3 %v4684_v4  ;;  %1549 = vmatpush.bf16.msra.mxu1 %v4684_v4  ;;  %v257_v9 = vpack.c.bf16 %v229_v6, %v229_v6  ;;  %v258_v10 = vpack.c.bf16 %v230_v7, %v230_v7  ;;  %237 = vst [vmem:[#allocation2 + $0xc] sm:$0x1] %v4913_v2  ;;  %v226_v11 = vld [vmem:[%s4975_s6] sm:$0xff]  ;;  %v232_v31 = vld [vmem:[%s4975_s6 + $0x30] sm:$0xff]  ;;  %v227_v45 = vld [vmem:[%s4975_s6 + $0x8] sm:$0xff] }
  0x12   : > { %238 = vst [vmem:[#allocation2 + $0x10] sm:$0xf] %v4913_v2  ;;  %v5003_v22 = vpack.c.bf16 %v226_v11, %v226_v11  ;;  %v5017_v28 = vpack.c.bf16 %v231_v18, %v231_v18  ;;  %v4680_v41 = vld [vmem:[%s6043_s1 + $0x50] sm:$0xff]  ;;  %v5049_v44 = vpack.c.bf16 %v232_v31, %v232_v31  ;;  %vm350_vm4 = vsmask.f32 256  ;;  %v4679_v52 = vld [vmem:[%s6043_s1 + $0x48] sm:$0xff]  ;;  %vm5284_vm11 = vmor %vm572_vm9, %vm573_vm10 }
  0x13   : > { %v287_v12 = vshrl.u32 %v257_v9, 16  ;;  %v290_v13 = vshll.u32 %v257_v9, 16  ;;  %v295_v14 = vshrl.u32 %v258_v10, 16  ;;  %v298_v15 = vshll.u32 %v258_v10, 16  ;;  %239 = vst [vmem:[#allocation2 + $0x14] sm:$0x1] %v4913_v2  ;;  %vm5113_vm7 = vmand %vm349_vm3, %vm350_vm4 }
  0x14   : > { %4852 = vmatpush.bf16.msra.mxu2 %v4675_v5  ;;  %1521 = vmatpush.bf16.msra.mxu0 %v4675_v5  ;;  %v367_v21 = vld [vmem:[#allocation2 + $0x20] sm:$0xf]  ;;  %240 = vst [vmem:[#allocation2 + $0x18] sm:$0xf] %v4913_v2  ;;  %v373_v24 = vld [vmem:[#allocation2 + $0x28] sm:$0xf]  ;;  %v5070_v57 = vpack.c.bf16 %v227_v45, %v227_v45 }
  0x15   : > { %4860 = vmatpush.bf16.msra.mxu3 %v4683_v8  ;;  %1550 = vmatpush.bf16.msra.mxu1 %v4683_v8  ;;  %v4998_v19 = vrot.slane %v287_v12, 7  ;;  %v5000_v20 = vrot.slane %v295_v14, 7  ;;  %241 = vst [vmem:[#allocation2 + $0x1c] sm:$0x1] %v4913_v2  ;;  %v5012_v25 = vld [vmem:[#allocation2] sm:$0xf] }
  0x16   : > { %243 = vst [vmem:[#allocation2 + $0x24] sm:$0x1] %v4913_v2  ;;  %v263_v34 = vshrl.u32 %v5003_v22, 16  ;;  %v5033_v35 = vld [vmem:[#allocation2 + $0x4] sm:$0x1]  ;;  %v429_v36 = vshrl.u32 %v5012_v25, 16 }
  0x17   : > { %v292_v26 = vor.u32 %v290_v13, %v4998_v19  ;;  %v300_v27 = vor.u32 %v298_v15, %v5000_v20  ;;  %245 = vst [vmem:[#allocation2 + $0x2c] sm:$0x1] %v4913_v2  ;;  %v432_v37 = vshll.u32 %v5012_v25, 16  ;;  %v5040_v39 = vld [vmem:[#allocation2] sm:$0xf]  ;;  %v303_v40 = vshrl.u32 %v5017_v28, 16 }
  0x18   : > { %4853 = vmatpush.bf16.msra.mxu2 %v4674_v16  ;;  %1522 = vmatpush.bf16.msra.mxu0 %v4674_v16  ;;  %246 = vst [vmem:[#allocation2 + $0x30] sm:$0xf] %v4913_v2  ;;  %v266_v42 = vshll.u32 %v5003_v22, 16  ;;  %v438_v43 = vshll.u32 %v5033_v35, 16  ;;  %v5053_v46 = vrot.slane %v263_v34, 7  ;;  %v2060_v47 = vshrl.u32 %v5040_v39, 16 }
  0x19   : > { %4861 = vmatpush.bf16.msra.mxu3 %v4682_v17  ;;  %1551 = vmatpush.bf16.msra.mxu1 %v4682_v17  ;;  %v368_v32 = vsel %vm5007_vm2, %v292_v26, %v367_v21  ;;  %v374_v33 = vsel %vm5007_vm2, %v300_v27, %v373_v24  ;;  %247 = vst [vmem:[#allocation2 + $0x34] sm:$0x1] %v4913_v2  ;;  %v431_v48 = vrot.slane %v429_v36, 4  ;;  %v434_v49 = vrot.slane %v432_v37, 5  ;;  %v228_v56 = vld [vmem:[%s4975_s6 + $0x10] sm:$0xff]  ;;  %v4670_v5 = vld [vmem:[%s6043_s1] sm:$0xff] }
  0x1a   : > { %369 = vst [vmem:[#allocation2 + $0x20] sm:$0xf] %v368_v32  ;;  %v293_v51 = vrot.slane %v4998_v19, 4  ;;  %v301_v53 = vrot.slane %v5000_v20, 4  ;;  %vm425_vm5 = vsmask.f32 3328  ;;  %v268_v0 = vor.u32 %v266_v42, %v5053_v46 }
  0x1b   : > { %375 = vst [vmem:[#allocation2 + $0x28] sm:$0xf] %v374_v33  ;;  %vm426_vm6 = vsmask.f32 7440  ;;  %v269_v54 = vrot.slane %v5053_v46, 4  ;;  %v5067_v55 = vrot.slane %v303_v40, 7  ;;  %v435_v3 = vor.u32 %v434_v49, %v431_v48 }
  0x1c   : > { %4854 = vmatpush.bf16.msra.mxu2 %v4673_v29  ;;  %1523 = vmatpush.bf16.msra.mxu0 %v4673_v29  ;;  %248 = vst [vmem:[#allocation2 + $0x38] sm:$0xf] %v4913_v2  ;;  %v346_v58 = vld [vmem:[#allocation2 + $0x8] sm:$0xf]  ;;  %v2063_v59 = vshll.u32 %v5040_v39, 16  ;;  %v5074_v60 = vrot.slane %v438_v43, 5  ;;  %v5093_v9 = vpack.c.bf16 %v228_v56, %v228_v56  ;;  %vm5155_vm8 = vmor %vm425_vm5, %vm426_vm6 }
  0x1d   : > { %4862 = vmatpush.bf16.msra.mxu3 %v4681_v30  ;;  %1552 = vmatpush.bf16.msra.mxu1 %v4681_v30  ;;  %249 = vst [vmem:[#allocation2 + $0x3c] sm:$0x1] %v4913_v2  ;;  %v306_v61 = vshll.u32 %v5017_v28, 16  ;;  %v311_v62 = vshrl.u32 %v5049_v44, 16  ;;  %v5082_v1 = vrot.slane %v2060_v47, 4  ;;  %v314_v4 = vshll.u32 %v5049_v44, 16 }
  0x1e   : > { %250 = vst [vmem:[#allocation2 + $0x40] sm:$0xf] %v4913_v2  ;;  %v4693_v10 = vld [vmem:[%s6043_s1 + $0xb8] sm:$0xff]  ;;  %v4678_v11 = vld [vmem:[%s6043_s1 + $0x40] sm:$0xff]  ;;  %v5105_v15 = vrot.slane %v2063_v59, 5  ;;  %v271_v18 = vshrl.u32 %v5070_v57, 16  ;;  %v347_v21 = vsel %vm5007_vm2, %v268_v0, %v346_v58 }
  0x1f   : > { %251 = vst [vmem:[#allocation2 + $0x44] sm:$0x1] %v4913_v2  ;;  %v370_v12 = vld [vmem:[#allocation2 + $0x24] sm:$0x1]  ;;  %v376_v16 = vld [vmem:[#allocation2 + $0x2c] sm:$0x1] }
  0x20   : > { %4855 = vmatpush.bf16.msra.mxu2 %v4672_v38  ;;  %1524 = vmatpush.bf16.msra.mxu0 %v4672_v38  ;;  %252 = vst [vmem:[#allocation2 + $0x48] sm:$0xf] %v4913_v2  ;;  %v352_v17 = vld [vmem:[#allocation2 + $0xc] sm:$0x1]  ;;  %v4701_v24 = vld [vmem:[%s6043_s1 + $0xf8] sm:$0xff]  ;;  %v436_v26 = vrot.slane %v435_v3, 4  ;;  %v371_v37 = vsel %vm5113_vm7, %v293_v51, %v370_v12  ;;  %v308_v38 = vor.u32 %v306_v61, %v5067_v55 }
  0x21   : > { %4863 = vmatpush.bf16.msra.mxu3 %v4680_v41  ;;  %v5078_v63 = vld [vmem:[#allocation2 + $0x20] sm:$0xf]  ;;  %1553 = vmatpush.bf16.msra.mxu1 %v4680_v41  ;;  %253 = vst [vmem:[#allocation2 + $0x4c] sm:$0x1] %v4913_v2  ;;  %v5120_v27 = vrot.slane %v311_v62, 7  ;;  %v279_v31 = vshrl.u32 %v5093_v9, 16  ;;  %v377_v44 = vsel %vm5113_vm7, %v301_v53, %v376_v16  ;;  %v353_v19 = vsel %vm5113_vm7, %v269_v54, %v352_v17 }
  0x22   : > { %v5088_v6 = vld [vmem:[#allocation2 + $0x28] sm:$0xf]  ;;  %421 = vst [vmem:[#allocation3 + $0x90] sm:$0xf] %v5078_v63  ;;  %v485_v7 = vshrl.u32 %v5078_v63, 16  ;;  %v488_v8 = vshll.u32 %v5078_v63, 16  ;;  %v441_v53 = vsel %vm5155_vm8, %v436_v26, %v5074_v60  ;;  %v2066_v54 = vor.u32 %v5105_v15, %v5082_v1 }
  0x23   : > { %422 = vst [vmem:[#allocation3 + $0xb4] sm:$0xf] %v5088_v6  ;;  %v499_v13 = vshrl.u32 %v5088_v6, 16  ;;  %v502_v14 = vshll.u32 %v5088_v6, 16  ;;  %v4709_v32 = vld [vmem:[%s6043_s1 + $0x138] sm:$0xff]  ;;  %v274_v34 = vshll.u32 %v5070_v57, 16  ;;  %v316_v47 = vor.u32 %v314_v4, %v5120_v27 }
  0x24   : > { %4856 = vmatpush.bf16.msra.mxu2 %v4671_v50  ;;  %1525 = vmatpush.bf16.msra.mxu0 %v4671_v50  ;;  %626 = vst [vmem:[#allocation3 + $0x78] sm:$0xf] %v5078_v63  ;;  %v487_v2 = vrot.slane %v485_v7, 4  ;;  %v490_v28 = vrot.slane %v488_v8, 5  ;;  %v379_v33 = vld [vmem:[#allocation2 + $0x30] sm:$0xf] }
  0x25   : > { %4864 = vmatpush.bf16.msra.mxu3 %v4679_v52  ;;  %1554 = vmatpush.bf16.msra.mxu1 %v4679_v52  ;;  %627 = vst [vmem:[#allocation3 + $0x9c] sm:$0xf] %v5088_v6  ;;  %v501_v29 = vrot.slane %v499_v13, 4  ;;  %v504_v30 = vrot.slane %v502_v14, 5  ;;  %v4692_v36 = vld [vmem:[%s6043_s1 + $0xb0] sm:$0xff]  ;;  %v5138_v41 = vrot.slane %v271_v18, 7  ;;  %v380_v58 = vsel %vm5007_vm2, %v308_v38, %v379_v33 }
  0x26   : > { %671 = vst [vmem:[#allocation3 + $0x60] sm:$0xf] %v5078_v63  ;;  %v385_v40 = vld [vmem:[#allocation2 + $0x38] sm:$0xf]  ;;  %v282_v42 = vshll.u32 %v5093_v9, 16  ;;  %v6057_v20 = vmov 0  ;;  %v491_v49 = vor.u32 %v490_v28, %v487_v2 }
  0x27   : > { %672 = vst [vmem:[#allocation3 + $0x84] sm:$0xf] %v5088_v6  ;;  %v5149_v45 = vld [vmem:[#allocation2 + $0x4] sm:$0x1]  ;;  %v6058_v20 = vsel %vm5155_vm8, 4294967295, %v6057_v20  ;;  %v505_v50 = vor.u32 %v504_v30, %v501_v29  ;;  %v4700_v46 = vld [vmem:[%s6043_s1 + $0xf0] sm:$0xff]  ;;  %v386_v60 = vsel %vm5007_vm2, %v316_v47, %v385_v40  ;;  %v276_v61 = vor.u32 %v274_v34, %v5138_v41 }
  0x28   : > { %4857 = vmatpush.bf16.msra.mxu2 %v4670_v5  ;;  %1526 = vmatpush.bf16.msra.mxu0 %v4670_v5  ;;  %348 = vst [vmem:[#allocation2 + $0x8] sm:$0xf] %v347_v21  ;;  %v5162_v51 = vrot.slane %v279_v31, 7  ;;  %v2069_v56 = vshll.u32 %v5149_v45, 16  ;;  %v4708_v57 = vld [vmem:[%s6043_s1 + $0x130] sm:$0xff]  ;;  %v4717_v59 = vld [vmem:[%s6043_s1 + $0x178] sm:$0xff] }
  0x29   : > { %v3683_v43 = vld [vmem:[#allocation3 + $0x90] sm:$0xf]  ;;  %4865 = vmatpush.bf16.msra.mxu3 %v4678_v11  ;;  %1555 = vmatpush.bf16.msra.mxu1 %v4678_v11  ;;  %417 = vst [vmem:[#allocation3] sm:$0xf] %v5012_v25  ;;  %v355_v62 = vld [vmem:[#allocation2 + $0x10] sm:$0xf] }
  0x2a   : > { %v4656_v48 = vld [vmem:[#allocation3 + $0xb0] sm:$0xf0]  ;;  %6059 = vst [vmem:[#allocation4_spill] sm:$0xff] %v6058_v20  ;;  %v361_v0 = vld [vmem:[#allocation2 + $0x18] sm:$0xf]  ;;  %v492_v1 = vrot.slane %v491_v49, 4  ;;  %v284_v7 = vor.u32 %v282_v42, %v5162_v51  ;;  %v356_v21 = vsel %vm5007_vm2, %v276_v61, %v355_v62 }
  0x2b   : > { %v3684_v52 = vor.u32 %v4656_v48, %v3683_v43  ;;  %372 = vst [vmem:[#allocation2 + $0x24] sm:$0x1] %v371_v37  ;;  %v506_v3 = vrot.slane %v505_v50, 4  ;;  %v4691_v4 = vld [vmem:[%s6043_s1 + $0xa8] sm:$0xff]  ;;  %v2067_v8 = vrot.slane %v2066_v54, 4  ;;  %v2071_v9 = vrot.slane %v2069_v56, 5 }
  0x2c   : > { %1577 = vmatpush.bf16.msrb.mxu2 %v4693_v10  ;;  %1635 = vmatpush.bf16.msrb.mxu0 %v4709_v32  ;;  %378 = vst [vmem:[#allocation2 + $0x2c] sm:$0x1] %v377_v44  ;;  %v4699_v5 = vld [vmem:[%s6043_s1 + $0xe8] sm:$0xff]  ;;  %v4716_v11 = vld [vmem:[%s6043_s1 + $0x170] sm:$0xff]  ;;  %v4690_v13 = vld [vmem:[%s6043_s1 + $0xa0] sm:$0xff]  ;;  %v277_v62 = vrot.slane %v5138_v41, 4 }
  0x2d   : > { %1606 = vmatpush.bf16.msrb.mxu3 %v4701_v24  ;;  %1537 = vmatmul.bf16.vlgmr.msra.gmra.mxu2 %v3684_v52  ;;  %354 = vst [vmem:[#allocation2 + $0xc] sm:$0x1] %v353_v19  ;;  %v4707_v10 = vld [vmem:[%s6043_s1 + $0x128] sm:$0xff]  ;;  %v4698_v14 = vld [vmem:[%s6043_s1 + $0xe0] sm:$0xff]  ;;  %v362_v24 = vsel %vm5007_vm2, %v284_v7, %v361_v0  ;;  %v2072_v30 = vsel %vm5155_vm8, %v2067_v8, %v2071_v9  ;;  %v4689_v43 = vld [vmem:[%s6043_s1 + $0x98] sm:$0xff]  ;;  %v285_v0 = vrot.slane %v5162_v51, 4 }
  0x2e   : > { %548 = vst [vmem:[#allocation3 + $0x4] sm:$0xf] %v441_v53  ;;  %1664 = vmatpush.bf16.msrb.mxu1 %v4717_v59  ;;  %v4706_v18 = vld [vmem:[%s6043_s1 + $0x120] sm:$0xff]  ;;  %v4687_v61 = vld [vmem:[%s6043_s1 + $0x88] sm:$0xff]  ;;  %v388_v51 = vld [vmem:[#allocation2 + $0x3c] sm:$0x1] }
  0x2f   : > { %381 = vst [vmem:[#allocation2 + $0x30] sm:$0xf] %v380_v58  ;;  %v5194_v12 = vld [vmem:[#allocation2 + $0x8] sm:$0xf]  ;;  %v317_v58 = vrot.slane %v5120_v27, 4  ;;  %v4697_v27 = vld [vmem:[%s6043_s1 + $0xd8] sm:$0xff] }
  0x30   : > { %1578 = vmatpush.bf16.msrb.mxu2 %v4692_v36  ;;  %1636 = vmatpush.bf16.msrb.mxu0 %v4708_v57  ;;  %387 = vst [vmem:[#allocation2 + $0x38] sm:$0xf] %v386_v60  ;;  %v3611_v15 = vld [vmem:[#allocation3] sm:$0xf]  ;;  %v443_v16 = vshrl.u32 %v5194_v12, 16  ;;  %v446_v17 = vshll.u32 %v5194_v12, 16 }
  0x31   : > { %1607 = vmatpush.bf16.msrb.mxu3 %v4700_v46  ;;  %418 = vst [vmem:[#allocation3 + $0x24] sm:$0xf] %v5194_v12  ;;  %v4688_v46 = vld [vmem:[%s6043_s1 + $0x90] sm:$0xff]  ;;  %v309_v57 = vrot.slane %v5067_v55, 4 }
  0x32   : > { %2051 = vst [vmem:[#allocation3] sm:$0xf] %v5040_v39  ;;  %v5211_v2 = vld [vmem:[#allocation2 + $0x24] sm:$0x1]  ;;  %v445_v29 = vrot.slane %v443_v16, 4  ;;  %1665 = vmatpush.bf16.msrb.mxu1 %v4716_v11  ;;  %v448_v33 = vrot.slane %v446_v17, 5 }
  0x33   : > { %623 = vst [vmem:[#allocation3 + $0xc] sm:$0xf] %v5194_v12  ;;  %v5216_v26 = vld [vmem:[#allocation2 + $0x2c] sm:$0x1]  ;;  %v494_v28 = vshll.u32 %v5211_v2, 16 }
  0x34   : > { %1579 = vmatpush.bf16.msrb.mxu2 %v4691_v4  ;;  %1637 = vmatpush.bf16.msrb.mxu0 %v4707_v10  ;;  %v508_v31 = vshll.u32 %v5216_v26, 16  ;;  %v5222_v32 = vld [vmem:[#allocation2 + $0xc] sm:$0x1]  ;;  %357 = vst [vmem:[#allocation2 + $0x10] sm:$0xf] %v356_v21  ;;  %v449_v40 = vor.u32 %v448_v33, %v445_v29  ;;  %v577_v29 = vrot.slane %v5033_v35, 5 }
  0x35   : > { %1608 = vmatpush.bf16.msrb.mxu3 %v4699_v5  ;;  %v496_v34 = vrot.slane %v494_v28, 5  ;;  %v452_v36 = vshll.u32 %v5222_v32, 16  ;;  %v5225_v37 = vld [vmem:[#allocation3 + $0x4] sm:$0xf]  ;;  %363 = vst [vmem:[#allocation2 + $0x18] sm:$0xf] %v362_v24 }
  0x36   : > { %v510_v38 = vrot.slane %v508_v31, 5  ;;  %2179 = vst [vmem:[#allocation3 + $0x4] sm:$0xf] %v2072_v30  ;;  %v5227_v42 = vld [vmem:[#allocation2 + $0x30] sm:$0xf]  ;;  %v450_v49 = vrot.slane %v449_v40, 4  ;;  %v389_v31 = vsel %vm5113_vm7, %v317_v58, %v388_v51 }
  0x37   : > { %v497_v44 = vsel %vm5155_vm8, %v492_v1, %v496_v34  ;;  %v454_v19 = vrot.slane %v452_v36, 5  ;;  %423 = vst [vmem:[#allocation3 + $0xd8] sm:$0xf] %v5227_v42  ;;  %v5242_v53 = vld [vmem:[#allocation2 + $0x38] sm:$0xf]  ;;  %v513_v60 = vshrl.u32 %v5227_v42, 16 }
  0x38   : > { %1580 = vmatpush.bf16.msrb.mxu2 %v4690_v13  ;;  %1638 = vmatpush.bf16.msrb.mxu0 %v4706_v18  ;;  %v4638_v47 = vld [vmem:[#allocation3 + $0x20] sm:$0xf0]  ;;  %v511_v48 = vsel %vm5155_vm8, %v506_v3, %v510_v38  ;;  %552 = vst [vmem:[#allocation3 + $0x94] sm:$0xf] %v497_v44  ;;  %v4705_v3 = vld [vmem:[%s6043_s1 + $0x118] sm:$0xff]  ;;  %v516_v9 = vshll.u32 %v5227_v42, 16 }
  0x39   : > { %1609 = vmatpush.bf16.msrb.mxu3 %v4698_v14  ;;  %v3612_v50 = vor.u32 %v4638_v47, %v3611_v15  ;;  %553 = vst [vmem:[#allocation3 + $0xb8] sm:$0xf] %v511_v48  ;;  %v455_v52 = vsel %vm5155_vm8, %v450_v49, %v454_v19  ;;  %v382_v55 = vld [vmem:[#allocation2 + $0x34] sm:$0x1]  ;;  %v527_v10 = vshrl.u32 %v5242_v53, 16  ;;  %v530_v11 = vshll.u32 %v5242_v53, 16 }
  0x3a   : > { %649 = vst [vmem:[#allocation3 + $0x7c] sm:$0xf] %v497_v44  ;;  %v358_v7 = vld [vmem:[#allocation2 + $0x14] sm:$0x1]  ;;  %v364_v13 = vld [vmem:[#allocation2 + $0x1c] sm:$0x1]  ;;  %v383_v15 = vsel %vm5113_vm7, %v309_v57, %v382_v55 }
  0x3b   : > { %1527 = vmatmul.bf16.vlgmr.msra.gmra.mxu0 %v3612_v50  ;;  %650 = vst [vmem:[#allocation3 + $0xa0] sm:$0xf] %v511_v48  ;;  %v5255_v1 = vld [vmem:[#allocation2 + $0x10] sm:$0xf]  ;;  %v4715_v21 = vld [vmem:[%s6043_s1 + $0x168] sm:$0xff]  ;;  %v6060_v24 = vmov 0  ;;  %v359_v38 = vsel %vm5113_vm7, %v277_v62, %v358_v7 }
  0x3c   : > { %1581 = vmatpush.bf16.msrb.mxu2 %v4689_v43  ;;  %694 = vst [vmem:[#allocation3 + $0x64] sm:$0xf] %v497_v44  ;;  %v5264_v41 = vld [vmem:[#allocation2 + $0x18] sm:$0xf]  ;;  %1639 = vmatpush.bf16.msrb.mxu0 %v4705_v3  ;;  %v457_v16 = vshrl.u32 %v5255_v1, 16  ;;  %v460_v17 = vshll.u32 %v5255_v1, 16  ;;  %v365_v44 = vsel %vm5113_vm7, %v285_v0, %v364_v13 }
  0x3d   : > { %695 = vst [vmem:[#allocation3 + $0x88] sm:$0xf] %v511_v48  ;;  %1610 = vmatpush.bf16.msrb.mxu3 %v4697_v27  ;;  %v6061_v24 = vsel %vm5284_vm11, 4294967295, %v6060_v24  ;;  %v3599_v28 = vrot.slane %v5012_v25, 9  ;;  %v3600_v30 = vrot.slane %v5194_v12, 9  ;;  %v4686_v33 = vld [vmem:[%s6043_s1 + $0x80] sm:$0xff]  ;;  %1666 = vmatpush.bf16.msrb.mxu1 %v4715_v21 }
  0x3e   : > { %549 = vst [vmem:[#allocation3 + $0x28] sm:$0xf] %v455_v52  ;;  %v3719_v4 = vld [vmem:[#allocation3 + $0xd8] sm:$0xf]  ;;  %v4696_v34 = vld [vmem:[%s6043_s1 + $0xd0] sm:$0xff]  ;;  %v581_v35 = vrot.slane %v5222_v32, 5 }
  0x3f   : > { %v4652_v54 = vld [vmem:[#allocation3 + $0x94] sm:$0xf]  ;;  %646 = vst [vmem:[#allocation3 + $0x10] sm:$0xf] %v455_v52  ;;  %v4704_v25 = vld [vmem:[%s6043_s1 + $0x110] sm:$0xff]  ;;  %v515_v12 = vrot.slane %v513_v60, 4  ;;  %v578_v50 = vsel %vm5284_vm11, %v3599_v28, %v577_v29 }
  0x40   : > { %1582 = vmatpush.bf16.msrb.mxu2 %v4688_v46  ;;  %v3685_v56 = vld [vmem:[#allocation3 + $0xb4] sm:$0xf0]  ;;  %424 = vst [vmem:[#allocation3 + $0xfc] sm:$0xf] %v5242_v53  ;;  %v518_v36 = vrot.slane %v516_v9, 5  ;;  %v4714_v40 = vld [vmem:[%s6043_s1 + $0x160] sm:$0xff]  ;;  %1640 = vmatpush.bf16.msrb.mxu0 %v4704_v25 }
  0x41   : > { %v3688_v59 = vor.u32 %v4652_v54, %v3685_v56  ;;  %628 = vst [vmem:[#allocation3 + $0xc0] sm:$0xf] %v5227_v42  ;;  %v532_v43 = vrot.slane %v530_v11, 5  ;;  %v471_v32 = vshrl.u32 %v5264_v41, 16  ;;  %v474_v19 = vshll.u32 %v5264_v41, 16  ;;  %1611 = vmatpush.bf16.msrb.mxu3 %v4696_v34  ;;  %v4695_v47 = vld [vmem:[%s6043_s1 + $0xc8] sm:$0xff]  ;;  %1667 = vmatpush.bf16.msrb.mxu1 %v4714_v40 }
  0x42   : > { %629 = vst [vmem:[#allocation3 + $0xe4] sm:$0xf] %v5242_v53  ;;  %v459_v49 = vrot.slane %v457_v16, 4  ;;  %v4725_v46 = vld [vmem:[%s6043_s1 + $0x1b8] sm:$0xff]  ;;  %v462_v54 = vrot.slane %v460_v17, 5  ;;  %v582_v56 = vsel %vm5284_vm11, %v3600_v30, %v581_v35  ;;  %v4703_v57 = vld [vmem:[%s6043_s1 + $0x108] sm:$0xff] }
  0x43   : > { %1566 = vmatmul.bf16.vlgmr.msra.gmra.mxu3 %v3688_v59  ;;  %673 = vst [vmem:[#allocation3 + $0xa8] sm:$0xf] %v5227_v42  ;;  %v4713_v59 = vld [vmem:[%s6043_s1 + $0x158] sm:$0xff]  ;;  %v4041_v60 = vrot.slane %v5040_v39, 9  ;;  %v4694_v62 = vld [vmem:[%s6043_s1 + $0xc0] sm:$0xff]  ;;  %v473_v55 = vrot.slane %v471_v32, 4 }
  0x44   : > { %1583 = vmatpush.bf16.msrb.mxu2 %v4687_v61  ;;  %674 = vst [vmem:[#allocation3 + $0xcc] sm:$0xf] %v5242_v53  ;;  %v519_v61 = vor.u32 %v518_v36, %v515_v12  ;;  %v476_v27 = vrot.slane %v474_v19, 5  ;;  %v2205_v3 = vrot.slane %v5149_v45, 5  ;;  %1641 = vmatpush.bf16.msrb.mxu0 %v4703_v57  ;;  %v4702_v39 = vld [vmem:[%s6043_s1 + $0x100] sm:$0xff]  ;;  %v4733_v45 = vld [vmem:[%s6043_s1 + $0x1f8] sm:$0xff] }
  0x45   : > { %v3613_v5 = vld [vmem:[#allocation3 + $0x24] sm:$0xf0]  ;;  %419 = vst [vmem:[#allocation3 + $0x48] sm:$0xf] %v5255_v1  ;;  %1612 = vmatpush.bf16.msrb.mxu3 %v4695_v47  ;;  %1668 = vmatpush.bf16.msrb.mxu1 %v4713_v59  ;;  %v4724_v16 = vld [vmem:[%s6043_s1 + $0x1b0] sm:$0xff]  ;;  %v4710_v32 = vld [vmem:[%s6043_s1 + $0x140] sm:$0xff] }
  0x46   : > { %v3616_v8 = vor.u32 %v5225_v37, %v3613_v5  ;;  %420 = vst [vmem:[#allocation3 + $0x6c] sm:$0xf] %v5264_v41  ;;  %v529_v37 = vrot.slane %v527_v10, 4  ;;  %v4712_v5 = vld [vmem:[%s6043_s1 + $0x150] sm:$0xff]  ;;  %v4741_v36 = vld [vmem:[%s6043_s1 + $0x238] sm:$0xff] }
  0x47   : > { %v4665_v14 = vld [vmem:[#allocation3 + $0xf8] sm:$0xf0]  ;;  %624 = vst [vmem:[#allocation3 + $0x30] sm:$0xf] %v5255_v1  ;;  %v4732_v34 = vld [vmem:[%s6043_s1 + $0x1f0] sm:$0xff] }
  0x48   : > { %1556 = vmatmul.bf16.vlgmr.msra.gmra.mxu1 %v3616_v8  ;;  %v3720_v18 = vor.u32 %v4665_v14, %v3719_v4  ;;  %625 = vst [vmem:[#allocation3 + $0x54] sm:$0xf] %v5264_v41  ;;  %1584 = vmatpush.bf16.msrb.mxu2 %v4686_v33  ;;  %v533_v0 = vor.u32 %v532_v43, %v529_v37  ;;  %v520_v8 = vrot.slane %v519_v61, 4  ;;  %v4711_v33 = vld [vmem:[%s6043_s1 + $0x148] sm:$0xff]  ;;  %v4740_v59 = vld [vmem:[%s6043_s1 + $0x230] sm:$0xff]  ;;  %v593_v61 = vrot.slane %v5211_v2, 5 }
  0x49   : > { %6062 = vst [vmem:[#allocation5_spill] sm:$0xff] %v6061_v24  ;;  %v463_v4 = vor.u32 %v462_v54, %v459_v49  ;;  %1613 = vmatpush.bf16.msrb.mxu3 %v4694_v62  ;;  %v477_v14 = vor.u32 %v476_v27, %v473_v55  ;;  %1642 = vmatpush.bf16.msrb.mxu0 %v4702_v39  ;;  %v3604_v55 = vrot.slane %v5088_v6, 9  ;;  %v597_v27 = vrot.slane %v5216_v26, 5  ;;  %v4739_v39 = vld [vmem:[%s6043_s1 + $0x228] sm:$0xff]  ;;  %v3627_v6 = vld [vmem:[#allocation3 + $0x10] sm:$0xf] }
  0x4a   : > { %669 = vst [vmem:[#allocation3 + $0x18] sm:$0xf] %v5255_v1  ;;  %1542 = vmatmul.bf16.gmra.mxu2 %v3720_v18  ;;  %v534_v10 = vrot.slane %v533_v0, 4  ;;  %1669 = vmatpush.bf16.msrb.mxu1 %v4712_v5  ;;  %v4722_v0 = vld [vmem:[%s6043_s1 + $0x1a0] sm:$0xff] }
  0x4b   : > { %670 = vst [vmem:[#allocation3 + $0x3c] sm:$0xf] %v5264_v41  ;;  %v464_v21 = vrot.slane %v463_v4, 4 }
  0x4c   : > { %384 = vst [vmem:[#allocation2 + $0x34] sm:$0x1] %v383_v15  ;;  %v3647_v48 = vld [vmem:[#allocation3 + $0x48] sm:$0xf]  ;;  %1693 = vmatpush.bf16.msra.mxu2 %v4725_v46  ;;  %v2206_v15 = vsel %vm5284_vm11, %v4041_v60, %v2205_v3  ;;  %v3603_v60 = vrot.slane %v5078_v63, 9  ;;  %v4730_v63 = vld [vmem:[%s6043_s1 + $0x1e0] sm:$0xff] }
  0x4d   : > { %390 = vst [vmem:[#allocation2 + $0x3c] sm:$0x1] %v389_v31  ;;  %v4647_v52 = vld [vmem:[#allocation3 + $0x68] sm:$0xf0]  ;;  %1722 = vmatpush.bf16.msra.mxu3 %v4733_v45  ;;  %1751 = vmatpush.bf16.msra.mxu0 %v4741_v36  ;;  %v598_v45 = vsel %vm5284_vm11, %v3604_v55, %v597_v27 }
  0x4e   : > { %360 = vst [vmem:[#allocation2 + $0x14] sm:$0x1] %v359_v38  ;;  %v3648_v58 = vor.u32 %v4647_v52, %v3647_v48  ;;  %v478_v38 = vrot.slane %v477_v14, 4  ;;  %1670 = vmatpush.bf16.msrb.mxu1 %v4711_v33  ;;  %v3601_v48 = vrot.slane %v5255_v1, 9  ;;  %v233_v1 = vld [vmem:[%s4975_s6 + $0x38] sm:$0xff]  ;;  %v594_v26 = vsel %vm5284_vm11, %v3603_v60, %v593_v61 }
  0x4f   : > { %366 = vst [vmem:[#allocation2 + $0x1c] sm:$0x1] %v365_v44  ;;  %v4723_v44 = vld [vmem:[%s6043_s1 + $0x1a8] sm:$0xff]  ;;  %v261_v62 = vpack.c.bf16 %v233_v1, %v233_v1  ;;  %v4635_v14 = vld [vmem:[#allocation3 + $0xc] sm:$0xf] }
  0x50   : > { %615 = vst [vmem:[#allocation3 + $0x8] sm:$0xf] %v578_v50  ;;  %1532 = vmatmul.bf16.gmra.mxu0 %v3648_v58  ;;  %1694 = vmatpush.bf16.msra.mxu2 %v4724_v16  ;;  %v3602_v50 = vrot.slane %v5264_v41, 9  ;;  %v4731_v41 = vld [vmem:[%s6043_s1 + $0x1e8] sm:$0xff]  ;;  %v3621_v16 = vld [vmem:[#allocation3 + $0x2c] sm:$0xf0] }
  0x51   : > { %616 = vst [vmem:[#allocation3 + $0x2c] sm:$0xf] %v582_v56  ;;  %1723 = vmatpush.bf16.msra.mxu3 %v4732_v34  ;;  %1752 = vmatpush.bf16.msra.mxu0 %v4740_v59  ;;  %v319_v4 = vshrl.u32 %v261_v62, 16  ;;  %v3624_v33 = vor.u32 %v4635_v14, %v3621_v16  ;;  %v4644_v60 = vld [vmem:[#allocation3 + $0x54] sm:$0xf] }
  0x52   : > { %661 = vst [vmem:[#allocation3 + $0x14] sm:$0xf] %v582_v56  ;;  %1671 = vmatpush.bf16.msrb.mxu1 %v4710_v32  ;;  %v4649_v32 = vld [vmem:[#allocation3 + $0x78] sm:$0xf0]  ;;  %v3657_v61 = vld [vmem:[#allocation3 + $0x74] sm:$0xf0] }
  0x53   : > { %v5338_v51 = vld [vmem:[#allocation2 + $0x34] sm:$0x1]  ;;  %619 = vst [vmem:[#allocation3 + $0x98] sm:$0xf] %v594_v26  ;;  %v3660_v27 = vor.u32 %v4644_v60, %v3657_v61  ;;  %v3707_v61 = vld [vmem:[#allocation3 + $0xa8] sm:$0xf] }
  0x54   : > { %v5343_v7 = vld [vmem:[#allocation2 + $0x3c] sm:$0x1]  ;;  %v522_v9 = vshll.u32 %v5338_v51, 16  ;;  %1695 = vmatpush.bf16.msra.mxu2 %v4723_v44  ;;  %620 = vst [vmem:[#allocation3 + $0xbc] sm:$0xf] %v598_v45 }
  0x55   : > { %v536_v11 = vshll.u32 %v5343_v7, 16  ;;  %v402_v13 = vld [vmem:[#allocation2 + $0x14] sm:$0x1]  ;;  %1724 = vmatpush.bf16.msra.mxu3 %v4731_v41  ;;  %1753 = vmatpush.bf16.msra.mxu0 %v4739_v39  ;;  %664 = vst [vmem:[#allocation3 + $0x80] sm:$0xf] %v594_v26  ;;  %v605_v36 = vrot.slane %v5343_v7, 5 }
  0x56   : > { %v524_v17 = vrot.slane %v522_v9, 5  ;;  %v404_v18 = vld [vmem:[#allocation2 + $0x1c] sm:$0x1]  ;;  %v466_v28 = vshll.u32 %v402_v13, 16  ;;  %v585_v49 = vrot.slane %v402_v13, 5  ;;  %v322_v9 = vshll.u32 %v261_v62, 16 }
  0x57   : > { %v538_v29 = vrot.slane %v536_v11, 5  ;;  %v480_v30 = vshll.u32 %v404_v18, 16  ;;  %v3619_v31 = vld [vmem:[#allocation3 + $0x8] sm:$0xf]  ;;  %v589_v46 = vrot.slane %v404_v18, 5  ;;  %v4736_v39 = vld [vmem:[%s6043_s1 + $0x210] sm:$0xff] }
  0x58   : > { %v525_v25 = vsel %vm5155_vm8, %v520_v8, %v524_v17  ;;  %v468_v35 = vrot.slane %v466_v28, 5  ;;  %v4639_v12 = vld [vmem:[#allocation3 + $0x28] sm:$0xf0]  ;;  %2243 = vst [vmem:[#allocation3 + $0x8] sm:$0xf] %v2206_v15  ;;  %v586_v57 = vsel %vm5284_vm11, %v3601_v48, %v585_v49  ;;  %1696 = vmatpush.bf16.msra.mxu2 %v4722_v0  ;;  %v321_v8 = vrot.slane %v319_v4, 7 }
  0x59   : > { %v539_v37 = vsel %vm5155_vm8, %v534_v10, %v538_v29  ;;  %554 = vst [vmem:[#allocation3 + $0xdc] sm:$0xf] %v525_v25  ;;  %v482_v40 = vrot.slane %v480_v30, 5  ;;  %v3620_v43 = vor.u32 %v4639_v12, %v3619_v31  ;;  %v590_v58 = vsel %vm5284_vm11, %v3602_v50, %v589_v46  ;;  %1725 = vmatpush.bf16.msra.mxu3 %v4730_v63  ;;  %v4721_v11 = vld [vmem:[%s6043_s1 + $0x198] sm:$0xff]  ;;  %v394_v31 = vld [vmem:[#allocation2 + $0x44] sm:$0x1] }
  0x5a   : > { %555 = vst [vmem:[#allocation3 + $0x100] sm:$0xf] %v539_v37  ;;  %v469_v19 = vsel %vm5155_vm8, %v464_v21, %v468_v35  ;;  %v324_v13 = vor.u32 %v322_v9, %v321_v8  ;;  %v391_v21 = vld [vmem:[#allocation2 + $0x40] sm:$0xf]  ;;  %v325_v30 = vrot.slane %v321_v8, 4  ;;  %v601_v35 = vrot.slane %v5338_v51, 5 }
  0x5b   : > { %651 = vst [vmem:[#allocation3 + $0xc4] sm:$0xf] %v525_v25  ;;  %1585 = vmatmul.bf16.vlgmr.msrb.gmra.mxu2 %v3620_v43  ;;  %v483_v47 = vsel %vm5155_vm8, %v478_v38, %v482_v40  ;;  %v3606_v12 = vrot.slane %v5242_v53, 9  ;;  %v4738_v53 = vld [vmem:[%s6043_s1 + $0x220] sm:$0xff]  ;;  %v4720_v51 = vld [vmem:[%s6043_s1 + $0x190] sm:$0xff] }
  0x5c   : > { %652 = vst [vmem:[#allocation3 + $0xe8] sm:$0xf] %v539_v37  ;;  %1697 = vmatpush.bf16.msra.mxu2 %v4721_v11  ;;  %v392_v29 = vsel %vm5007_vm2, %v324_v13, %v391_v21  ;;  %v395_v34 = vsel %vm5113_vm7, %v325_v30, %v394_v31  ;;  %1754 = vmatpush.bf16.msra.mxu0 %v4738_v53  ;;  %v3691_v48 = vld [vmem:[#allocation3 + $0x98] sm:$0xf]  ;;  %v4657_v46 = vld [vmem:[#allocation3 + $0xb8] sm:$0xf0] }
  0x5d   : > { %696 = vst [vmem:[#allocation3 + $0xac] sm:$0xf] %v525_v25  ;;  %v3605_v25 = vrot.slane %v5227_v42, 9  ;;  %v606_v43 = vsel %vm5284_vm11, %v3606_v12, %v605_v36  ;;  %v4729_v42 = vld [vmem:[%s6043_s1 + $0x1d8] sm:$0xff]  ;;  %v3692_v41 = vor.u32 %v4657_v46, %v3691_v48  ;;  %v3665_v4 = vld [vmem:[#allocation3 + $0x7c] sm:$0xf0] }
  0x5e   : > { %697 = vst [vmem:[#allocation3 + $0xd0] sm:$0xf] %v539_v37  ;;  %v4636_v37 = vld [vmem:[#allocation3 + $0x14] sm:$0xf]  ;;  %1726 = vmatpush.bf16.msra.mxu3 %v4729_v42  ;;  %v3699_v9 = vld [vmem:[#allocation3 + $0xa0] sm:$0xf] }
  0x5f   : > { %550 = vst [vmem:[#allocation3 + $0x4c] sm:$0xf] %v469_v19  ;;  %v602_v40 = vsel %vm5284_vm11, %v3605_v25, %v601_v35  ;;  %v4735_v13 = vld [vmem:[%s6043_s1 + $0x208] sm:$0xff] }
  0x60   : > { %v4661_v52 = vld [vmem:[#allocation3 + $0xdc] sm:$0xf]  ;;  %551 = vst [vmem:[#allocation3 + $0x70] sm:$0xf] %v483_v47  ;;  %1698 = vmatpush.bf16.msra.mxu2 %v4720_v51  ;;  %v3635_v12 = vld [vmem:[#allocation3 + $0x18] sm:$0xf] }
  0x61   : > { %v3721_v54 = vld [vmem:[#allocation3 + $0xfc] sm:$0xf0]  ;;  %692 = vst [vmem:[#allocation3 + $0x1c] sm:$0xf] %v469_v19  ;;  %v4653_v21 = vld [vmem:[#allocation3 + $0x9c] sm:$0xf] }
  0x62   : > { %v3724_v56 = vor.u32 %v4661_v52, %v3721_v54  ;;  %693 = vst [vmem:[#allocation3 + $0x40] sm:$0xf] %v483_v47  ;;  %v4641_v36 = vld [vmem:[#allocation3 + $0x38] sm:$0xf0] }
  0x63   : > { %647 = vst [vmem:[#allocation3 + $0x34] sm:$0xf] %v469_v19  ;;  %v4728_v19 = vld [vmem:[%s6043_s1 + $0x1d0] sm:$0xff] }
  0x64   : > { %1571 = vmatmul.bf16.gmra.mxu3 %v3724_v56  ;;  %648 = vst [vmem:[#allocation3 + $0x58] sm:$0xf] %v483_v47  ;;  %v4737_v47 = vld [vmem:[%s6043_s1 + $0x218] sm:$0xff]  ;;  %v4719_v56 = vld [vmem:[%s6043_s1 + $0x188] sm:$0xff] }
  0x65   : > { %617 = vst [vmem:[#allocation3 + $0x50] sm:$0xf] %v586_v57  ;;  %1727 = vmatpush.bf16.msra.mxu3 %v4728_v19  ;;  %1755 = vmatpush.bf16.msra.mxu0 %v4737_v47  ;;  %v3671_v19 = vld [vmem:[#allocation3 + $0x60] sm:$0xf]  ;;  %v4650_v47 = vld [vmem:[#allocation3 + $0x80] sm:$0xf0] }
  0x66   : > { %v4643_v3 = vld [vmem:[#allocation3 + $0x4c] sm:$0xf]  ;;  %618 = vst [vmem:[#allocation3 + $0x74] sm:$0xf] %v590_v58  ;;  %1699 = vmatpush.bf16.msra.mxu2 %v4719_v56  ;;  %v3672_v48 = vor.u32 %v4650_v47, %v3671_v19  ;;  %v3709_v47 = vld [vmem:[#allocation3 + $0xcc] sm:$0xf0] }
  0x67   : > { %v3649_v2 = vld [vmem:[#allocation3 + $0x6c] sm:$0xf0]  ;;  %707 = vst [vmem:[#allocation3 + $0x20] sm:$0xf] %v586_v57  ;;  %v4655_v19 = vld [vmem:[#allocation3 + $0xac] sm:$0xf] }
  0x68   : > { %v3652_v5 = vor.u32 %v4643_v3, %v3649_v2  ;;  %708 = vst [vmem:[#allocation3 + $0x44] sm:$0xf] %v590_v58  ;;  %v4727_v2 = vld [vmem:[%s6043_s1 + $0x1c8] sm:$0xff] }
  0x69   : > { %662 = vst [vmem:[#allocation3 + $0x38] sm:$0xf] %v586_v57  ;;  %1728 = vmatpush.bf16.msra.mxu3 %v4727_v2  ;;  %1756 = vmatpush.bf16.msra.mxu0 %v4736_v39 }
  0x6a   : > { %1561 = vmatmul.bf16.gmra.mxu1 %v3652_v5  ;;  %v4640_v10 = vld [vmem:[#allocation3 + $0x30] sm:$0xf0]  ;;  %663 = vst [vmem:[#allocation3 + $0x5c] sm:$0xf] %v590_v58 }
  0x6b   : > { %v3628_v15 = vor.u32 %v4640_v10, %v3627_v6  ;;  %665 = vst [vmem:[#allocation3 + $0xa4] sm:$0xf] %v598_v45  ;;  %v3663_v44 = vld [vmem:[#allocation3 + $0x58] sm:$0xf]  ;;  %v4726_v10 = vld [vmem:[%s6043_s1 + $0x1c0] sm:$0xff] }
  0x6c   : > { %v3655_v17 = vld [vmem:[#allocation3 + $0x50] sm:$0xf]  ;;  %709 = vst [vmem:[#allocation3 + $0x68] sm:$0xf] %v594_v26  ;;  %v3664_v50 = vor.u32 %v4649_v32, %v3663_v44 }
  0x6d   : > { %1643 = vmatmul.bf16.vlgmr.msrb.gmra.mxu0 %v3628_v15  ;;  %v4648_v18 = vld [vmem:[#allocation3 + $0x70] sm:$0xf0]  ;;  %710 = vst [vmem:[#allocation3 + $0x8c] sm:$0xf] %v598_v45  ;;  %v4658_v45 = vld [vmem:[#allocation3 + $0xc0] sm:$0xf0]  ;;  %1729 = vmatpush.bf16.msra.mxu3 %v4726_v10 }
  0x6e   : > { %v3656_v28 = vor.u32 %v4648_v18, %v3655_v17  ;;  %393 = vst [vmem:[#allocation2 + $0x40] sm:$0xf] %v392_v29  ;;  %v4718_v26 = vld [vmem:[%s6043_s1 + $0x180] sm:$0xff]  ;;  %v3700_v14 = vor.u32 %v4658_v45, %v3699_v9  ;;  %1757 = vmatpush.bf16.msra.mxu0 %v4735_v13 }
  0x6f   : > { %396 = vst [vmem:[#allocation2 + $0x44] sm:$0x1] %v395_v34  ;;  %1700 = vmatpush.bf16.msra.mxu2 %v4718_v26  ;;  %v4734_v17 = vld [vmem:[%s6043_s1 + $0x200] sm:$0xff]  ;;  %v3735_v34 = vld [vmem:[#allocation3 + $0xe8] sm:$0xf] }
  0x70   : > { %1590 = vmatmul.bf16.gmra.mxu2 %v3656_v28  ;;  %v3629_v38 = vld [vmem:[#allocation3 + $0x34] sm:$0xf0]  ;;  %621 = vst [vmem:[#allocation3 + $0xe0] sm:$0xf] %v602_v40  ;;  %v3693_v28 = vld [vmem:[#allocation3 + $0xbc] sm:$0xf0] }
  0x71   : > { %v3632_v7 = vor.u32 %v4636_v37, %v3629_v38  ;;  %622 = vst [vmem:[#allocation3 + $0x104] sm:$0xf] %v606_v43  ;;  %v4645_v63 = vld [vmem:[#allocation3 + $0x5c] sm:$0xf]  ;;  %v3696_v29 = vor.u32 %v4653_v21, %v3693_v28  ;;  %v3636_v37 = vor.u32 %v4641_v36, %v3635_v12  ;;  %v4662_v38 = vld [vmem:[#allocation3 + $0xe4] sm:$0xf] }
  0x72   : > { %666 = vst [vmem:[#allocation3 + $0xc8] sm:$0xf] %v602_v40  ;;  %v3668_v8 = vor.u32 %v4645_v63, %v3665_v4  ;;  %1758 = vmatpush.bf16.msra.mxu0 %v4734_v17  ;;  %v4654_v30 = vld [vmem:[#allocation3 + $0xa4] sm:$0xf] }
  0x73   : > { %667 = vst [vmem:[#allocation3 + $0xec] sm:$0xf] %v606_v43  ;;  %v4642_v44 = vld [vmem:[#allocation3 + $0x40] sm:$0xf0] }
  0x74   : > { %1614 = vmatmul.bf16.vlgmr.msrb.gmra.mxu3 %v3624_v33  ;;  %711 = vst [vmem:[#allocation3 + $0xb0] sm:$0xf] %v602_v40  ;;  %v4651_v56 = vld [vmem:[#allocation3 + $0x88] sm:$0xf0]  ;;  %v4646_v26 = vld [vmem:[#allocation3 + $0x64] sm:$0xf] }
  0x75   : > { %v413_v49 = vld [vmem:[#allocation2 + $0x40] sm:$0xf]  ;;  %712 = vst [vmem:[#allocation3 + $0xd4] sm:$0xf] %v606_v43 }
  0x76   : > { %v632_v52 = vshrl.u32 %v413_v49, 16  ;;  %v635_v54 = vshll.u32 %v413_v49, 16  ;;  %630 = vst [vmem:[#allocation3 + $0x108] sm:$0xf] %v413_v49  ;;  %v414_v57 = vld [vmem:[#allocation2 + $0x44] sm:$0x1] }
  0x77   : > { %675 = vst [vmem:[#allocation3 + $0xf0] sm:$0xf] %v413_v49  ;;  %v641_v59 = vshll.u32 %v414_v57, 16  ;;  %v3607_v5 = vrot.slane %v413_v49, 9  ;;  %v658_v6 = vrot.slane %v414_v57, 5 }
  0x78   : > { %v634_v58 = vrot.slane %v632_v52, 4  ;;  %v637_v1 = vrot.slane %v635_v54, 5  ;;  %v3727_v15 = vld [vmem:[#allocation3 + $0xe0] sm:$0xf]  ;;  %v4666_v16 = vld [vmem:[#allocation3 + $0x100] sm:$0xf0] }
  0x79   : > { %v643_v0 = vrot.slane %v641_v59, 5  ;;  %v659_v11 = vsel %vm5284_vm11, %v3607_v5, %v658_v6  ;;  %v3728_v18 = vor.u32 %v4666_v16, %v3727_v15  ;;  %v3701_v31 = vld [vmem:[#allocation3 + $0xc4] sm:$0xf0]  ;;  %v4637_v49 = vld [vmem:[#allocation3 + $0x1c] sm:$0xf] }
  0x7a   : > { %1672 = vmatmul.bf16.vlgmr.msrb.gmra.mxu1 %v3632_v7  ;;  %v638_v62 = vor.u32 %v637_v1, %v634_v58  ;;  %668 = vst [vmem:[#allocation3 + $0x110] sm:$0xf] %v659_v11  ;;  %v3704_v33 = vor.u32 %v4654_v30, %v3701_v31  ;;  %v4663_v42 = vld [vmem:[#allocation3 + $0xec] sm:$0xf]  ;;  %v3643_v7 = vld [vmem:[#allocation3 + $0x20] sm:$0xf] }
  0x7b   : > { %713 = vst [vmem:[#allocation3 + $0xf8] sm:$0xf] %v659_v11  ;;  %v3644_v32 = vor.u32 %v4642_v44, %v3643_v7  ;;  %v415_v52 = vld [vmem:[#allocation2 + $0x48] sm:$0xf]  ;;  %v3679_v54 = vld [vmem:[#allocation3 + $0x68] sm:$0xf] }
  0x7c   : > { %v639_v55 = vrot.slane %v638_v62, 4  ;;  %676 = vst [vmem:[#allocation3 + $0x114] sm:$0xf] %v415_v52  ;;  %v678_v57 = vshrl.u32 %v415_v52, 16  ;;  %v681_v58 = vshll.u32 %v415_v52, 16  ;;  %v3680_v60 = vor.u32 %v4651_v56, %v3679_v54 }
  0x7d   : > { %1648 = vmatmul.bf16.gmra.mxu0 %v3664_v50  ;;  %v3729_v40 = vld [vmem:[#allocation3 + $0x104] sm:$0xf0]  ;;  %v3637_v50 = vld [vmem:[#allocation3 + $0x3c] sm:$0xf0]  ;;  %v416_v1 = vld [vmem:[#allocation2 + $0x4c] sm:$0x1] }
  0x7e   : > { %v644_v3 = vsel %vm5155_vm8, %v639_v55, %v643_v0  ;;  %v3732_v43 = vor.u32 %v4662_v38, %v3729_v40  ;;  %v3640_v46 = vor.u32 %v4637_v49, %v3637_v50  ;;  %v683_v59 = vrot.slane %v681_v58, 5  ;;  %v4659_v62 = vld [vmem:[#allocation3 + $0xc8] sm:$0xf0]  ;;  %v5470_v11 = vld [vmem:[%s6044_s2] ss:$0 sm:$0xff] }
  0x7f   : > { %653 = vst [vmem:[#allocation3 + $0x10c] sm:$0xf] %v644_v3  ;;  %v687_v0 = vshll.u32 %v416_v1, 16  ;;  %v3608_v4 = vrot.slane %v415_v52, 9  ;;  %v704_v2 = vrot.slane %v416_v1, 5  ;;  %v3708_v39 = vor.u32 %v4659_v62, %v3707_v61 }
  0x80   : > { %1595 = vmatmul.bf16.gmra.mxu2 %v3692_v41  ;;  %698 = vst [vmem:[#allocation3 + $0xf4] sm:$0xf] %v644_v3  ;;  %v680_v41 = vrot.slane %v678_v57, 4  ;;  %v3715_v30 = vld [vmem:[#allocation3 + $0xb0] sm:$0xf] }
  0x81   : > { %v3737_v53 = vld [vmem:[#allocation3 + $0x10c] sm:$0xf0]  ;;  %v689_v63 = vrot.slane %v687_v0, 5  ;;  %v705_v9 = vsel %vm5284_vm11, %v3608_v4, %v704_v2  ;;  %v4660_v31 = vld [vmem:[#allocation3 + $0xd0] sm:$0xf0] }
  0x82   : > { %v3740_v51 = vor.u32 %v4663_v42, %v3737_v53  ;;  %v684_v3 = vor.u32 %v683_v59, %v680_v41  ;;  %714 = vst [vmem:[#allocation3 + $0x11c] sm:$0xf] %v705_v9  ;;  %v3743_v38 = vld [vmem:[#allocation3 + $0xf0] sm:$0xf]  ;;  %v3751_v54 = vld [vmem:[#allocation3 + $0xf8] sm:$0xf] }
  0x83   : > { %v4668_v5 = vld [vmem:[#allocation3 + $0x110] sm:$0xf0] }
  0x84   : > { %1619 = vmatmul.bf16.gmra.mxu3 %v3660_v27  ;;  %v2049_v27 = vld [vmem:[#allocation2 + $0x48] sm:$0xf]  ;;  %v685_v6 = vrot.slane %v684_v3, 4 }
  0x85   : > { %2304 = vst [vmem:[#allocation3 + $0x114] sm:$0xf] %v2049_v27  ;;  %v2306_v13 = vshrl.u32 %v2049_v27, 16  ;;  %v4050_v36 = vrot.slane %v2049_v27, 9 }
  0x86   : > { %v4667_v25 = vld [vmem:[#allocation3 + $0x108] sm:$0xf0]  ;;  %v690_v45 = vsel %vm5155_vm8, %v685_v6, %v689_v63 }
  0x87   : > { %v3736_v35 = vor.u32 %v4667_v25, %v3735_v34  ;;  %699 = vst [vmem:[#allocation3 + $0x118] sm:$0xf] %v690_v45  ;;  %v2308_v21 = vrot.slane %v2306_v13, 4  ;;  %v4664_v1 = vld [vmem:[#allocation3 + $0xf4] sm:$0xf] }
  0x8a   : > { %1677 = vmatmul.bf16.gmra.mxu1 %v3668_v8  ;;  %v3673_v8 = vld [vmem:[#allocation3 + $0x84] sm:$0xf0] }
  0x8b   : > { %v3676_v10 = vor.u32 %v4646_v26, %v3673_v8 }
  0x8d   : > { %1653 = vmatmul.bf16.gmra.mxu0 %v3700_v14  ;;  %v2309_v14 = vshll.u32 %v2049_v27, 16 }
  0x8f   : > { %v2311_v28 = vrot.slane %v2309_v14, 5 }
  0x90   : > { %1600 = vmatmul.bf16.gmra.mxu2 %v3728_v18 }
  0x91   : > { %v2312_v12 = vor.u32 %v2311_v28, %v2308_v21 }
  0x93   : > { %v2313_v42 = vrot.slane %v2312_v12, 4 }
  0x94   : > { %1624 = vmatmul.bf16.gmra.mxu3 %v3696_v29 }
  0x9a   : > { %1682 = vmatmul.bf16.gmra.mxu1 %v3704_v33 }
  0x9d   : > { %1658 = vmatmul.bf16.gmra.mxu0 %v3736_v35  ;;  %v2050_v35 = vld [vmem:[#allocation2 + $0x4c] sm:$0x1] }
  0x9e   : > { %v2315_v40 = vshll.u32 %v2050_v35, 16 }
  0xa0   : > { %1701 = vmatmul.bf16.vlgmr.msra.gmra.mxu2 %v3636_v37  ;;  %v3716_v37 = vor.u32 %v4660_v31, %v3715_v30  ;;  %v2317_v53 = vrot.slane %v2315_v40, 5 }
  0xa2   : > { %v2318_v49 = vsel %vm5155_vm8, %v2313_v42, %v2317_v53 }
  0xa4   : > { %1629 = vmatmul.bf16.gmra.mxu3 %v3732_v43  ;;  %v2332_v43 = vrot.slane %v2050_v35, 5 }
  0xa6   : > { %v2333_v7 = vsel %vm5284_vm11, %v4050_v36, %v2332_v43 }
  0xaa   : > { %1687 = vmatmul.bf16.gmra.mxu1 %v3740_v51  ;;  %v4669_v51 = vld [vmem:[#allocation3 + $0x118] sm:$0xf0] }
  0xab   : > { %2342 = vst [vmem:[#allocation3 + $0x11c] sm:$0xf] %v2333_v7  ;;  %v3752_v57 = vor.u32 %v4669_v51, %v3751_v54 }
  0xad   : > { %1759 = vmatmul.bf16.vlgmr.msra.gmra.mxu0 %v3644_v32  ;;  %v3744_v32 = vor.u32 %v4668_v5, %v3743_v38 }
  0xb0   : > { %1706 = vmatmul.bf16.gmra.mxu2 %v3672_v48  ;;  %v1538_v55 = vpop.f32.mrf.mxu2  ;;  %v3745_v48 = vld [vmem:[#allocation3 + $0x114] sm:$0xf0] }
  0xb1   : > { %v1539_v17 = vadd.f32 %v5470_v11, %v1538_v55  ;;  %2327 = vst [vmem:[#allocation3 + $0x118] sm:$0xf] %v2318_v49 }
  0xb4   : > { %1730 = vmatmul.bf16.vlgmr.msra.gmra.mxu3 %v3640_v46  ;;  %v3712_v46 = vor.u32 %v4655_v19, %v3709_v47 }
  0xb8   : > { %v1528_v15 = vpop.f32.mrf.mxu0  ;;  %v5474_v18 = vpop.f32.mrf.mxu2 }
  0xb9   : > { %v1529_v16 = vadd.f32 %v5470_v11, %v1528_v15 }
  0xbd   : > { %1764 = vmatmul.bf16.gmra.mxu0 %v3680_v60  ;;  %v3748_v60 = vor.u32 %v4664_v1, %v3745_v48 }
  0xc0   : > { %1711 = vmatmul.bf16.gmra.mxu2 %v3708_v39  ;;  %v5478_v44 = vpop.f32.mrf.mxu0 }
  0xc4   : > { %1735 = vmatmul.bf16.gmra.mxu3 %v3676_v10 }
  0xc5   : > { %v1557_v29 = vpop.f32.mrf.mxu1 }
  0xc6   : > { %v1558_v33 = vadd.f32 %v1557_v29, %v1529_v16  ;;  %v1567_v34 = vpop.f32.mrf.mxu3 }
  0xc7   : > { %v1568_v25 = vadd.f32 %v1567_v34, %v1539_v17 }
  0xcd   : > { %1769 = vmatmul.bf16.gmra.mxu0 %v3716_v37  ;;  %v1543_v50 = vpop.f32.mrf.mxu2  ;;  %v1533_v52 = vpop.f32.mrf.mxu0 }
  0xce   : > { %v5484_v58 = vpop.f32.mrf.mxu3  ;;  %v1544_v62 = vadd.f32 %v5470_v11, %v1543_v50  ;;  %v1559_v0 = vpop.f32.mrf.mxu1  ;;  %v1534_v4 = vadd.f32 %v5470_v11, %v1533_v52 }
  0xd0   : > { %1716 = vmatmul.bf16.gmra.mxu2 %v3744_v32 }
  0xd4   : > { %1740 = vmatmul.bf16.gmra.mxu3 %v3712_v46 }
  0xd5   : > { %v5482_v56 = vpop.f32.mrf.mxu2  ;;  %v1535_v61 = vpop.f32.mrf.mxu0 }
  0xdd   : > { %1774 = vmatmul.bf16.gmra.mxu0 %v3752_v57 }
  0xde   : > { %v1586_v41 = vpop.f32.mrf.mxu2 }
  0xdf   : > { %v1587_v59 = vadd.f32 %v1586_v41, %v1558_v33 }
  0xe4   : > { %1745 = vmatmul.bf16.gmra.mxu3 %v3748_v60 }
  0xe6   : > { %v1588_v3 = vpop.f32.mrf.mxu2 }
  0xe7   : > { %v1572_v55 = vpop.f32.mrf.mxu3  ;;  %v1562_v39 = vpop.f32.mrf.mxu1 }
  0xe8   : > { %v5487_v27 = vadd.f32 %v1572_v55, %v1544_v62  ;;  %v1563_v5 = vadd.f32 %v1562_v39, %v1534_v4  ;;  %v1536_v39 = vadd.f32 %v5470_v11, %v1535_v61 }
  0xea   : > { %v1644_v63 = vpop.f32.mrf.mxu0 }
  0xef   : > { %v5490_v2 = vpop.f32.mrf.mxu3  ;;  %v1564_v43 = vpop.f32.mrf.mxu1 }
  0xf2   : > { %v1646_v6 = vpop.f32.mrf.mxu0 }
  0xf3   : > { %v1591_v26 = vpop.f32.mrf.mxu2 }
  0xf4   : > { %v1592_v8 = vadd.f32 %v1591_v26, %v1563_v5 }
  0xf7   : > { %v1615_v9 = vpop.f32.mrf.mxu3  ;;  %v1673_v7 = vpop.f32.mrf.mxu1 }
  0xf8   : > { %v1616_v45 = vadd.f32 %v1615_v9, %v1587_v59  ;;  %v1565_v9 = vadd.f32 %v1564_v43, %v1536_v39 }
  0xfa   : > { %v5492_v10 = vadd.f32 %v1644_v63, %v1616_v45  ;;  %v1649_v13 = vpop.f32.mrf.mxu0  ;;  %v1531_v63 = vadd.f32 %v5470_v11, %v5478_v44 }
  0xfb   : > { %v1593_v14 = vpop.f32.mrf.mxu2 }
  0xfc   : > { %v1560_v26 = vadd.f32 %v1559_v0, %v1531_v63  ;;  %v1674_v63 = vadd.f32 %v1673_v7, %v5492_v10 }
  0xff   : > { %v1617_v15 = vpop.f32.mrf.mxu3  ;;  %v1675_v47 = vpop.f32.mrf.mxu1 }
 0x102   : > { %v1651_v16 = vpop.f32.mrf.mxu0 }
 0x103   : > { %v1596_v17 = vpop.f32.mrf.mxu2 }
 0x104   : > { %v1597_v21 = vadd.f32 %v1596_v17, %v1568_v25  ;;  %v1594_v17 = vadd.f32 %v1593_v14, %v1565_v9 }
 0x107   : > { %v1620_v28 = vpop.f32.mrf.mxu3  ;;  %v1678_v46 = vpop.f32.mrf.mxu1 }
 0x108   : > { %v1621_v29 = vadd.f32 %v1620_v28, %v1592_v8  ;;  %v1589_v8 = vadd.f32 %v1588_v3, %v1560_v26  ;;  %v1541_v28 = vadd.f32 %v5470_v11, %v5474_v18 }
 0x10a   : > { %v1650_v30 = vadd.f32 %v1649_v13, %v1621_v29  ;;  %v1654_v31 = vpop.f32.mrf.mxu0  ;;  %v1618_v13 = vadd.f32 %v1617_v15, %v1589_v8  ;;  %v1546_v15 = vadd.f32 %v5470_v11, %v5482_v56 }
 0x10b   : > { %v1598_v33 = vpop.f32.mrf.mxu2 }
 0x10c   : > { %v1647_v44 = vadd.f32 %v1646_v6, %v1618_v13  ;;  %v1679_v18 = vadd.f32 %v1678_v46, %v1650_v30  ;;  %v1575_v39 = vadd.f32 %v5490_v2, %v1546_v15 }
 0x10e   : > { %v1676_v0 = vadd.f32 %v1675_v47, %v1647_v44 }
 0x10f   : > { %v1622_v34 = vpop.f32.mrf.mxu3  ;;  %v1680_v41 = vpop.f32.mrf.mxu1 }
 0x110   : > { %v1623_v29 = vadd.f32 %v1622_v34, %v1594_v17 }
 0x112   : > { %v1656_v35 = vpop.f32.mrf.mxu0  ;;  %v1652_v24 = vadd.f32 %v1651_v16, %v1623_v29 }
 0x113   : > { %v1601_v12 = vpop.f32.mrf.mxu2 }
 0x114   : > { %v1602_v61 = vadd.f32 %v1601_v12, %v5487_v27  ;;  %v1681_v26 = vadd.f32 %v1680_v41, %v1652_v24 }
 0x117   : > { %v1625_v36 = vpop.f32.mrf.mxu3  ;;  %v1683_v55 = vpop.f32.mrf.mxu1 }
 0x118   : > { %v1626_v37 = vadd.f32 %v1625_v36, %v1597_v21 }
 0x11a   : > { %v5494_v38 = vadd.f32 %v1654_v31, %v1626_v37  ;;  %v1659_v40 = vpop.f32.mrf.mxu0  ;;  %v1570_v37 = vadd.f32 %v5484_v58, %v1541_v28 }
 0x11b   : > { %v1603_v42 = vpop.f32.mrf.mxu2 }
 0x11c   : > { %v1599_v20 = vadd.f32 %v1598_v33, %v1570_v37  ;;  %v1604_v12 = vadd.f32 %v1603_v42, %v1575_v39  ;;  %v1684_v11 = vadd.f32 %v1683_v55, %v5494_v38 }
 0x11f   : > { %v1627_v53 = vpop.f32.mrf.mxu3  ;;  %v1685_v21 = vpop.f32.mrf.mxu1 }
 0x120   : > { %v1628_v3 = vadd.f32 %v1627_v53, %v1599_v20 }
 0x122   : > { %v5496_v51 = vpop.f32.mrf.mxu0  ;;  %v1657_v33 = vadd.f32 %v1656_v35, %v1628_v3 }
 0x123   : > { %v1702_v25 = vpop.f32.mrf.mxu2 }
 0x124   : > { %v1703_v16 = vadd.f32 %v1702_v25, %v1674_v63  ;;  %v1686_v30 = vadd.f32 %v1685_v21, %v1657_v33 }
 0x127   : > { %v1630_v32 = vpop.f32.mrf.mxu3  ;;  %v1688_v58 = vpop.f32.mrf.mxu1 }
 0x128   : > { %v1631_v14 = vadd.f32 %v1630_v32, %v1602_v61 }
 0x12a   : > { %v5498_v19 = vpop.f32.mrf.mxu0  ;;  %v1660_v20 = vadd.f32 %v1659_v40, %v1631_v14 }
 0x12b   : > { %v1704_v49 = vpop.f32.mrf.mxu2 }
 0x12c   : > { %v1705_v34 = vadd.f32 %v1704_v49, %v1676_v0  ;;  %v1689_v49 = vadd.f32 %v1688_v58, %v1660_v20 }
 0x12f   : > { %v1632_v48 = vpop.f32.mrf.mxu3  ;;  %v1690_v41 = vpop.f32.mrf.mxu1 }
 0x130   : > { %v1633_v10 = vadd.f32 %v1632_v48, %v1604_v12 }
 0x132   : > { %v1762_v50 = vpop.f32.mrf.mxu0  ;;  %v1662_v46 = vadd.f32 %v5496_v51, %v1633_v10 }
 0x133   : > { %v1707_v54 = vpop.f32.mrf.mxu2 }
 0x134   : > { %v1708_v8 = vadd.f32 %v1707_v54, %v1679_v18  ;;  %v1691_v55 = vadd.f32 %v1690_v41, %v1662_v46 }
 0x137   : > { %v1731_v52 = vpop.f32.mrf.mxu3 }
 0x138   : > { %v1732_v56 = vadd.f32 %v1731_v52, %v1703_v16 }
 0x13a   : > { %v1765_v1 = vpop.f32.mrf.mxu0  ;;  %v5515_v35 = vadd.f32 %v5498_v19, %v1732_v56 }
 0x13b   : > { %v1709_v59 = vpop.f32.mrf.mxu2 }
 0x13c   : > { %v1710_v32 = vadd.f32 %v1709_v59, %v1681_v26 }
 0x13f   : > { %v1733_v57 = vpop.f32.mrf.mxu3 }
 0x140   : > { %v1734_v27 = vadd.f32 %v1733_v57, %v1705_v34 }
 0x142   : > { %v1767_v62 = vpop.f32.mrf.mxu0  ;;  %v5512_v7 = vadd.f32 %v1762_v50, %v1734_v27 }
 0x143   : > { %v1712_v4 = vpop.f32.mrf.mxu2 }
 0x144   : > { %v1713_v2 = vadd.f32 %v1712_v4, %v1684_v11  ;;  %v1780_v48 = vadd.f32 %v5512_v7, %v5515_v35  ;;  %v1798_v51 = vmul.f32 %v5512_v7, %v5512_v7 }
 0x147   : > { %v1736_v60 = vpop.f32.mrf.mxu3 }
 0x148   : > { %v1737_v47 = vadd.f32 %v1736_v60, %v1708_v8 }
 0x14a   : > { %v1770_v45 = vpop.f32.mrf.mxu0  ;;  %v5517_v25 = vadd.f32 %v1765_v1, %v1737_v47 }
 0x14b   : > { %v1714_v31 = vpop.f32.mrf.mxu2 }
 0x14c   : > { %v1715_v42 = vadd.f32 %v1714_v31, %v1686_v30  ;;  %v1781_v59 = vadd.f32 %v1780_v48, %v5517_v25  ;;  %v1799_v9 = vmul.f32 %v5517_v25, %v5517_v25 }
 0x14f   : > { %v1738_v5 = vpop.f32.mrf.mxu3 }
 0x150   : > { %v1739_v24 = vadd.f32 %v1738_v5, %v1710_v32 }
 0x152   : > { %v1772_v43 = vpop.f32.mrf.mxu0  ;;  %v5522_v54 = vadd.f32 %v1767_v62, %v1739_v24  ;;  %v1797_v62 = vmul.f32 %v5515_v35, %v5515_v35  ;;  %v4784_v24 = vld [vmem:[%s6043_s1 + $0x270] sm:$0xff] }
 0x153   : > { %v1717_v53 = vpop.f32.mrf.mxu2 }
 0x154   : > { %v1718_v50 = vadd.f32 %v1717_v53, %v1689_v49  ;;  %v1782_v4 = vadd.f32 %v1781_v59, %v5522_v54  ;;  %v1805_v28 = vadd.f32 %v1798_v51, %v1797_v62  ;;  %v1800_v29 = vmul.f32 %v5522_v54, %v5522_v54  ;;  %v4783_v49 = vld [vmem:[%s6043_s1 + $0x268] sm:$0xff]  ;;  %v4809_v59 = vld [vmem:[%s6043_s1 + $0x338] sm:$0xff]  ;;  %v4800_v51 = vld [vmem:[%s6043_s1 + $0x2f0] sm:$0xff] }
 0x155   : > { %3236 = vmatpush.bf16.msrb.mxu0 %v4809_v59  ;;  %v4807_v62 = vld [vmem:[%s6043_s1 + $0x328] sm:$0xff] }
 0x156   : > { %v1806_v44 = vadd.f32 %v1805_v28, %v1799_v9  ;;  %v4793_v9 = vld [vmem:[%s6043_s1 + $0x2b8] sm:$0xff] }
 0x157   : > { %v1741_v36 = vpop.f32.mrf.mxu3  ;;  %3178 = vmatpush.bf16.msrb.mxu2 %v4793_v9 }
 0x158   : > { %v1742_v40 = vadd.f32 %v1741_v36, %v1713_v2  ;;  %v1807_v15 = vadd.f32 %v1806_v44, %v1800_v29  ;;  %v4785_v2 = vld [vmem:[%s6043_s1 + $0x278] sm:$0xff] }
 0x159   : > { %3149 = vmatpush.bf16.msra.mxu1 %v4785_v2 }
 0x15a   : > { %v1775_v38 = vpop.f32.mrf.mxu0  ;;  %v5525_v19 = vadd.f32 %v1770_v45, %v1742_v40 }
 0x15b   : > { %v1719_v60 = vpop.f32.mrf.mxu2 }
 0x15c   : > { %v1720_v13 = vadd.f32 %v1719_v60, %v1691_v55  ;;  %v1783_v45 = vadd.f32 %v1782_v4, %v5525_v19  ;;  %v1801_v61 = vmul.f32 %v5525_v19, %v5525_v19  ;;  %v4801_v60 = vld [vmem:[%s6043_s1 + $0x2f8] sm:$0xff]  ;;  %v4808_v55 = vld [vmem:[%s6043_s1 + $0x330] sm:$0xff] }
 0x15d   : > { %3150 = vmatpush.bf16.msra.mxu1 %v4784_v24  ;;  %3207 = vmatpush.bf16.msrb.mxu3 %v4801_v60 }
 0x15e   : > { %v1808_v18 = vadd.f32 %v1807_v15, %v1801_v61  ;;  %3237 = vmatpush.bf16.msrb.mxu0 %v4808_v55  ;;  %v4900_v55 = vld [vmem:[%s4975_s6 + $0x18] sm:$0xff] }
 0x15f   : > { %v1743_v6 = vpop.f32.mrf.mxu3 }
 0x160   : > { %v1744_v57 = vadd.f32 %v1743_v6, %v1715_v42  ;;  %v4782_v42 = vld [vmem:[%s6043_s1 + $0x260] sm:$0xff] }
 0x161   : > { %3151 = vmatpush.bf16.msra.mxu1 %v4783_v49  ;;  %3208 = vmatpush.bf16.msrb.mxu3 %v4800_v51 }
 0x162   : > { %v5530_v5 = vadd.f32 %v1772_v43, %v1744_v57  ;;  %v1777_v37 = vpop.f32.mrf.mxu0  ;;  %3238 = vmatpush.bf16.msrb.mxu0 %v4807_v62  ;;  %v4901_v62 = vld [vmem:[%s4975_s6 + $0x20] sm:$0xff] }
 0x164   : > { %v1784_v36 = vadd.f32 %v1783_v45, %v5530_v5  ;;  %v1802_v14 = vmul.f32 %v5530_v5, %v5530_v5 }
 0x165   : > { %3152 = vmatpush.bf16.msra.mxu1 %v4782_v42  ;;  %v4805_v42 = vld [vmem:[%s6043_s1 + $0x318] sm:$0xff] }
 0x166   : > { %v1809_v39 = vadd.f32 %v1808_v18, %v1802_v14 }
 0x167   : > { %v1746_v52 = vpop.f32.mrf.mxu3 }
 0x168   : > { %v1747_v1 = vadd.f32 %v1746_v52, %v1718_v50 }
 0x16a   : > { %v5536_v17 = vadd.f32 %v1775_v38, %v1747_v1 }
 0x16c   : > { %v1785_v3 = vadd.f32 %v1784_v36, %v5536_v17  ;;  %v1803_v63 = vmul.f32 %v5536_v17, %v5536_v17 }
 0x16e   : > { %v1810_v26 = vadd.f32 %v1809_v39, %v1803_v63 }
 0x16f   : > { %v1748_v21 = vpop.f32.mrf.mxu3 }
 0x170   : > { %v1749_v31 = vadd.f32 %v1748_v21, %v1720_v13 }
 0x172   : > { %v5544_v0 = vadd.f32 %v1777_v37, %v1749_v31 }
 0x174   : > { %v1786_v43 = vadd.f32 %v1785_v3, %v5544_v0  ;;  %v1804_v34 = vmul.f32 %v5544_v0, %v5544_v0 }
 0x176   : > { %1787 = vadd.xlane.f32.xlu0 %v1786_v43  ;;  %v1811_v58 = vadd.f32 %v1810_v26, %v1804_v34  ;;  %v4806_v34 = vld [vmem:[%s6043_s1 + $0x320] sm:$0xff] }
 0x177   : > { %3239 = vmatpush.bf16.msrb.mxu0 %v4806_v34 }
 0x17b   : > { %3240 = vmatpush.bf16.msrb.mxu0 %v4805_v42 }
 0x17e   : > { %1812 = vadd.xlane.f32.xlu0 %v1811_v58 }
 0x1e9   : > { %v1788_v6 = vpop.xlane.xlu0 %1787 }
 0x1ea   : > { %v1789_v33 = vrot.slane %v1788_v6, 4 }
 0x1ec   : > { %v1790_v16 = vadd.f32 %v1789_v33, %v1788_v6  ;;  %v4781_v33 = vld [vmem:[%s6043_s1 + $0x258] sm:$0xff] }
 0x1ed   : > { %3153 = vmatpush.bf16.msra.mxu1 %v4781_v33  ;;  %v1986_v33 = vld [vmem:[#allocation2 + $0xc] sm:$0x1] }
 0x1ee   : > { %v1791_v8 = vrot.slane %v1790_v16, 2 }
 0x1f0   : > { %v1792_v27 = vadd.f32 %v1791_v8, %v1790_v16 }
 0x1f1   : > { %v1813_v12 = vpop.xlane.xlu0 %1812 }
 0x1f2   : > { %v1814_v20 = vrot.slane %v1813_v12, 4  ;;  %v1793_v53 = vrot.slane %v1792_v27, 1 }
 0x1f4   : > { %v1815_v11 = vadd.f32 %v1814_v20, %v1813_v12  ;;  %v1794_v56 = vadd.f32 %v1793_v53, %v1792_v27  ;;  %v4798_v20 = vld [vmem:[%s6043_s1 + $0x2e0] sm:$0xff]  ;;  %v4791_v53 = vld [vmem:[%s6043_s1 + $0x2a8] sm:$0xff] }
 0x1f6   : > { %v1816_v32 = vrot.slane %v1815_v11, 2  ;;  %4866 = vpush %v1794_v56 }
 0x1f8   : > { %v1817_v47 = vadd.f32 %v1816_v32, %v1815_v11 }
 0x1fa   : > { %v1818_v10 = vrot.slane %v1817_v47, 1 }
 0x1fc   : > { %v1819_v30 = vadd.f32 %v1818_v10, %v1817_v47  ;;  %v4780_v10 = vld [vmem:[%s6043_s1 + $0x250] sm:$0xff] }
 0x1fd   : > { %3154 = vmatpush.bf16.msra.mxu1 %v4780_v10  ;;  %v1992_v10 = vld [vmem:[#allocation2 + $0x14] sm:$0x1] }
 0x1fe   : > { %4868 = vpush %v1819_v30 }
 0x227   : > { %s4867_s21 = spop %4866 }
 0x228   : > { %s1796_s24 = smul.f32 0.001953125, %s4867_s21 }
 0x22a   : > { %s1822_s27 = smul.f32 %s1796_s24, %s1796_s24  ;;  %v1824_v1 = vstv %s1796_s24 }
 0x22b   : > { %v1825_v4 = vsub.f32 %v5515_v35, %v1824_v1  ;;  %v1826_v13 = vsub.f32 %v5512_v7, %v1824_v1  ;;  %v1827_v45 = vsub.f32 %v5517_v25, %v1824_v1  ;;  %v1828_v21 = vsub.f32 %v5522_v54, %v1824_v1  ;;  %v4888_v35 = vld [vmem:[%s6045_s3] ss:$0 sm:$0xff] }
 0x22c   : > { %v1829_v28 = vsub.f32 %v5525_v19, %v1824_v1  ;;  %v1830_v29 = vsub.f32 %v5530_v5, %v1824_v1  ;;  %v1831_v31 = vsub.f32 %v5536_v17, %v1824_v1  ;;  %v1832_v36 = vsub.f32 %v5544_v0, %v1824_v1  ;;  %v4889_v54 = vld [vmem:[%s6046_s4] ss:$0 sm:$0xff]  ;;  %v4799_v19 = vld [vmem:[%s6043_s1 + $0x2e8] sm:$0xff]  ;;  %v4792_v0 = vld [vmem:[%s6043_s1 + $0x2b0] sm:$0xff] }
 0x22d   : > { %3179 = vmatpush.bf16.msrb.mxu2 %v4792_v0  ;;  %3209 = vmatpush.bf16.msrb.mxu3 %v4799_v19  ;;  %v4899_v1 = vld [vmem:[%s4975_s6 + $0x10] sm:$0xff]  ;;  %v4789_v19 = vld [vmem:[%s6043_s1 + $0x298] sm:$0xff] }
 0x22f   : > { %s4869_s29 = spop %4868 }
 0x230   : > { %s1821_s8 = smul.f32 0.001953125, %s4869_s29 }
 0x231   : > { %3180 = vmatpush.bf16.msrb.mxu2 %v4791_v53  ;;  %3210 = vmatpush.bf16.msrb.mxu3 %v4798_v20  ;;  %v4788_v53 = vld [vmem:[%s6043_s1 + $0x290] sm:$0xff] }
 0x232   : > { %s1823_s9 = ssub.f32 %s1821_s8, %s1822_s27 }
 0x234   : > { %s1833_s12 = sadd.f32 1e-05, %s1823_s9 }
 0x236   : > { %v1834_v40 = vstv %s1833_s12 }
 0x237   : > { %4893 = vrsqrt.f32 %v1834_v40  ;;  %vm1841_vm13 = vweird.f32 %v1834_v40 }
 0x23d   : > { %v4894_v46 = vpop.eup %4893 }
 0x23e   : > { %v1836_v38 = vmul.f32 %v4894_v46, %v1834_v40  ;;  %vm1842_vm12 = vweird.f32 %v4894_v46 }
 0x23f   : > { %vm1843_vm14 = vmor %vm1841_vm13, %vm1842_vm12 }
 0x240   : > { %v1837_v52 = vmul.f32 %v4894_v46, %v1836_v38 }
 0x242   : > { %v1838_v48 = vmul.f32 0.5, %v1837_v52 }
 0x244   : > { %v1839_v50 = vsub.f32 1.5, %v1838_v48  ;;  %v4790_v48 = vld [vmem:[%s6043_s1 + $0x2a0] sm:$0xff] }
 0x245   : > { %3181 = vmatpush.bf16.msrb.mxu2 %v4790_v48 }
 0x246   : > { %v1840_v57 = vmul.f32 %v4894_v46, %v1839_v50  ;;  %v4897_v50 = vld [vmem:[%s4975_s6] sm:$0xff] }
 0x248   : > { %v1844_v41 = vsel %vm1843_vm14, %v4894_v46, %v1840_v57 }
 0x249   : > { %4870 = vpush %v1844_v41  ;;  %v4898_v41 = vld [vmem:[%s4975_s6 + $0x8] sm:$0xff]  ;;  %3182 = vmatpush.bf16.msrb.mxu2 %v4789_v19 }
 0x24d   : > { %3183 = vmatpush.bf16.msrb.mxu2 %v4788_v53  ;;  %v2019_v53 = vld [vmem:[#allocation2 + $0x38] sm:$0xf] }
 0x27a   : > { %s4871_s27 = spop %4870 }
 0x27b   : > { %v1846_v37 = vstv %s4871_s27 }
 0x27c   : > { %v1847_v7 = vmul.f32 %v1846_v37, %v1825_v4  ;;  %v1848_v44 = vmul.f32 %v1846_v37, %v1826_v13  ;;  %v1849_v25 = vmul.f32 %v1846_v37, %v1827_v45  ;;  %v1850_v61 = vmul.f32 %v1846_v37, %v1828_v21  ;;  %v4797_v4 = vld [vmem:[%s6043_s1 + $0x2d8] sm:$0xff]  ;;  %v4902_v13 = vld [vmem:[%s4975_s6 + $0x28] sm:$0xff]  ;;  %v4903_v21 = vld [vmem:[%s4975_s6 + $0x30] sm:$0xff] }
 0x27d   : > { %v1851_v5 = vmul.f32 %v1846_v37, %v1829_v28  ;;  %v1852_v3 = vmul.f32 %v1846_v37, %v1830_v29  ;;  %v1853_v17 = vmul.f32 %v1846_v37, %v1831_v31  ;;  %v1854_v15 = vmul.f32 %v1846_v37, %v1832_v36  ;;  %v4779_v31 = vld [vmem:[%s6043_s1 + $0x248] sm:$0xff]  ;;  %3211 = vmatpush.bf16.msrb.mxu3 %v4797_v4 }
 0x27e   : > { %v1859_v14 = vmul.f32 %v4888_v35, %v1847_v7  ;;  %v1860_v43 = vmul.f32 %v4888_v35, %v1848_v44  ;;  %v1861_v63 = vmul.f32 %v4888_v35, %v1849_v25  ;;  %v1862_v18 = vmul.f32 %v4888_v35, %v1850_v61  ;;  %v4804_v25 = vld [vmem:[%s6043_s1 + $0x310] sm:$0xff]  ;;  %3155 = vmatpush.bf16.msra.mxu1 %v4779_v31  ;;  %v4787_v31 = vld [vmem:[%s6043_s1 + $0x288] sm:$0xff] }
 0x27f   : > { %v1863_v39 = vmul.f32 %v4888_v35, %v1851_v5  ;;  %v1864_v26 = vmul.f32 %v4888_v35, %v1852_v3  ;;  %v1865_v58 = vmul.f32 %v4888_v35, %v1853_v17  ;;  %v1866_v6 = vmul.f32 %v4888_v35, %v1854_v15  ;;  %v4904_v35 = vld [vmem:[%s4975_s6 + $0x38] sm:$0xff]  ;;  %v4796_v15 = vld [vmem:[%s6043_s1 + $0x2d0] sm:$0xff]  ;;  %3241 = vmatpush.bf16.msrb.mxu0 %v4804_v25 }
 0x280   : > { %v1871_v16 = vadd.f32 %v4889_v54, %v1859_v14  ;;  %v1872_v8 = vadd.f32 %v4889_v54, %v1860_v43  ;;  %v1873_v27 = vadd.f32 %v4889_v54, %v1861_v63  ;;  %v1874_v12 = vadd.f32 %v4889_v54, %v1862_v18  ;;  %v4778_v18 = vld [vmem:[%s6043_s1 + $0x240] sm:$0xff]  ;;  %3184 = vmatpush.bf16.msrb.mxu2 %v4787_v31 }
 0x281   : > { %v1875_v11 = vadd.f32 %v4889_v54, %v1863_v39  ;;  %v1876_v56 = vadd.f32 %v4889_v54, %v1864_v26  ;;  %v1877_v32 = vadd.f32 %v4889_v54, %v1865_v58  ;;  %v1878_v47 = vadd.f32 %v4889_v54, %v1866_v6  ;;  %v1983_v6 = vld [vmem:[#allocation2 + $0x8] sm:$0xf]  ;;  %3212 = vmatpush.bf16.msrb.mxu3 %v4796_v15 }
 0x282   : > { %v1879_v30 = vmax.f32 %v1871_v16, 0.0  ;;  %v1880_v2 = vmax.f32 %v1872_v8, 0.0  ;;  %v1881_v24 = vmax.f32 %v1873_v27, 0.0  ;;  %v1882_v49 = vmax.f32 %v1874_v12, 0.0  ;;  %v4803_v16 = vld [vmem:[%s6043_s1 + $0x308] sm:$0xff]  ;;  %3156 = vmatpush.bf16.msra.mxu1 %v4778_v18 }
 0x283   : > { %v1883_v40 = vmax.f32 %v1875_v11, 0.0  ;;  %v1884_v46 = vmax.f32 %v1876_v56, 0.0  ;;  %v1885_v38 = vmax.f32 %v1877_v32, 0.0  ;;  %v1886_v52 = vmax.f32 %v1878_v47, 0.0  ;;  %v1989_v47 = vld [vmem:[#allocation2 + $0x10] sm:$0xf]  ;;  %3242 = vmatpush.bf16.msrb.mxu0 %v4803_v16 }
 0x284   : > { %v5626_v57 = vadd.f32 %v4897_v50, %v1879_v30  ;;  %v5629_v59 = vadd.f32 %v4898_v41, %v1880_v2  ;;  %v5632_v60 = vadd.f32 %v4899_v1, %v1881_v24  ;;  %v5635_v51 = vadd.f32 %v4900_v55, %v1882_v49  ;;  %v4795_v30 = vld [vmem:[%s6043_s1 + $0x2c8] sm:$0xff]  ;;  %v4817_v2 = vld [vmem:[%s6043_s1 + $0x378] sm:$0xff]  ;;  %v2001_v1 = vld [vmem:[#allocation2 + $0x20] sm:$0xf] }
 0x285   : > { %v5641_v9 = vadd.f32 %v4901_v62, %v1883_v40  ;;  %v5644_v45 = vadd.f32 %v4902_v13, %v1884_v46  ;;  %v5647_v28 = vadd.f32 %v4903_v21, %v1885_v38  ;;  %v5650_v29 = vadd.f32 %v4904_v35, %v1886_v52  ;;  %v1995_v46 = vld [vmem:[#allocation2 + $0x18] sm:$0xf]  ;;  %v1998_v38 = vld [vmem:[#allocation2 + $0x1c] sm:$0x1]  ;;  %v2004_v21 = vld [vmem:[#allocation2 + $0x24] sm:$0x1]  ;;  %3213 = vmatpush.bf16.msrb.mxu3 %v4795_v30 }
 0x286   : > { %v1895_v36 = vpack.c.bf16 %v5626_v57, %v5626_v57  ;;  %v1896_v37 = vpack.c.bf16 %v5629_v59, %v5629_v59  ;;  %v1897_v7 = vpack.c.bf16 %v5632_v60, %v5632_v60  ;;  %v1898_v44 = vpack.c.bf16 %v5635_v51, %v5635_v51  ;;  %3265 = vmatpush.bf16.msrb.mxu1 %v4817_v2  ;;  %v4802_v35 = vld [vmem:[%s6043_s1 + $0x300] sm:$0xff] }
 0x287   : > { %6063 = vst [vmem:[#allocation6_spill] sm:$0xff] %v5650_v29  ;;  %v5668_v61 = vpack.c.bf16 %v5641_v9, %v5641_v9  ;;  %v5672_v54 = vpack.c.bf16 %v5644_v45, %v5644_v45  ;;  %v5679_v5 = vpack.c.bf16 %v5647_v28, %v5647_v28  ;;  %v5686_v0 = vpack.c.bf16 %v5650_v29, %v5650_v29  ;;  %v2025_v30 = vld [vmem:[#allocation2 + $0x40] sm:$0xf] }
 0x288   : > { %v1904_v3 = vshrl.u32 %v1895_v36, 16  ;;  %v1912_v17 = vshrl.u32 %v1896_v37, 16  ;;  %v1907_v14 = vshll.u32 %v1895_v36, 16  ;;  %v1920_v43 = vshrl.u32 %v1897_v7, 16  ;;  %3243 = vmatpush.bf16.msrb.mxu0 %v4802_v35 }
 0x289   : > { %v1928_v63 = vshrl.u32 %v1898_v44, 16  ;;  %v1915_v26 = vshll.u32 %v1896_v37, 16  ;;  %v1936_v58 = vshrl.u32 %v5668_v61, 16  ;;  %v1923_v27 = vshll.u32 %v1897_v7, 16  ;;  %v2007_v7 = vld [vmem:[#allocation2 + $0x28] sm:$0xf] }
 0x28a   : > { %v1906_v34 = vrot.slane %v1904_v3, 7  ;;  %v1914_v39 = vrot.slane %v1912_v17, 7  ;;  %v1922_v8 = vrot.slane %v1920_v43, 7  ;;  %v1944_v20 = vshrl.u32 %v5672_v54, 16  ;;  %v2010_v3 = vld [vmem:[#allocation2 + $0x2c] sm:$0x1] }
 0x28b   : > { %v5695_v12 = vrot.slane %v1928_v63, 7  ;;  %v1931_v32 = vshll.u32 %v1898_v44, 16  ;;  %v1939_v40 = vshll.u32 %v5668_v61, 16  ;;  %v1938_v50 = vrot.slane %v1936_v58, 7  ;;  %v4816_v43 = vld [vmem:[%s6043_s1 + $0x370] sm:$0xff] }
 0x28c   : > { %v1909_v11 = vor.u32 %v1907_v14, %v1906_v34  ;;  %v1910_v56 = vrot.slane %v1906_v34, 4  ;;  %v1917_v24 = vor.u32 %v1915_v26, %v1914_v39  ;;  %v1918_v49 = vrot.slane %v1914_v39, 4  ;;  %v4794_v14 = vld [vmem:[%s6043_s1 + $0x2c0] sm:$0xff]  ;;  %3266 = vmatpush.bf16.msrb.mxu1 %v4816_v43 }
 0x28d   : > { %v1925_v42 = vor.u32 %v1923_v27, %v1922_v8  ;;  %v1926_v52 = vrot.slane %v1922_v8, 4  ;;  %v1933_v48 = vor.u32 %v1931_v32, %v5695_v12  ;;  %v1952_v41 = vshrl.u32 %v5679_v5, 16  ;;  %v4786_v26 = vld [vmem:[%s6043_s1 + $0x280] sm:$0xff]  ;;  %v2016_v27 = vld [vmem:[#allocation2 + $0x34] sm:$0x1]  ;;  %3214 = vmatpush.bf16.msrb.mxu3 %v4794_v14 }
 0x28e   : > { %v1946_v55 = vrot.slane %v1944_v20, 7  ;;  %v1960_v4 = vshrl.u32 %v5686_v0, 16  ;;  %v1984_v62 = vsel %vm5007_vm2, %v1909_v11, %v1983_v6  ;;  %v1987_v13 = vsel %vm5113_vm7, %v1910_v56, %v1986_v33  ;;  %v2013_v33 = vld [vmem:[#allocation2 + $0x30] sm:$0xf]  ;;  %v2022_v32 = vld [vmem:[#allocation2 + $0x3c] sm:$0x1]  ;;  %3185 = vmatpush.bf16.msrb.mxu2 %v4786_v26 }
 0x28f   : > { %v1934_v36 = vrot.slane %v5695_v12, 4  ;;  %v1947_v37 = vshll.u32 %v5672_v54, 16  ;;  %1985 = vst [vmem:[#allocation2 + $0x8] sm:$0xf] %v1984_v62  ;;  %v1941_v44 = vor.u32 %v1939_v40, %v1938_v50  ;;  %v1954_v25 = vrot.slane %v1952_v41, 7  ;;  %v4815_v41 = vld [vmem:[%s6043_s1 + $0x368] sm:$0xff] }
 0x290   : > { %1988 = vst [vmem:[#allocation2 + $0xc] sm:$0x1] %v1987_v13  ;;  %v1990_v61 = vsel %vm5007_vm2, %v1917_v24, %v1989_v47  ;;  %v1993_v19 = vsel %vm5113_vm7, %v1918_v49, %v1992_v10  ;;  %v1942_v17 = vrot.slane %v1938_v50, 4  ;;  %v1996_v15 = vsel %vm5007_vm2, %v1925_v42, %v1995_v46  ;;  %v2028_v49 = vld [vmem:[#allocation2 + $0x44] sm:$0x1]  ;;  %3267 = vmatpush.bf16.msrb.mxu1 %v4815_v41 }
 0x291   : > { %1991 = vst [vmem:[#allocation2 + $0x10] sm:$0xf] %v1990_v61  ;;  %v1999_v54 = vsel %vm5113_vm7, %v1926_v52, %v1998_v38  ;;  %v1949_v63 = vor.u32 %v1947_v37, %v1946_v55  ;;  %v1955_v18 = vshll.u32 %v5679_v5, 16  ;;  %v1962_v34 = vrot.slane %v1960_v4, 7  ;;  %v4814_v13 = vld [vmem:[%s6043_s1 + $0x360] sm:$0xff] }
 0x292   : > { %1994 = vst [vmem:[#allocation2 + $0x14] sm:$0x1] %v1993_v19  ;;  %v2002_v39 = vsel %vm5007_vm2, %v1933_v48, %v2001_v1  ;;  %v1950_v58 = vrot.slane %v1946_v55, 4  ;;  %v2005_v6 = vsel %vm5113_vm7, %v1934_v36, %v2004_v21  ;;  %v1963_v5 = vshll.u32 %v5686_v0, 16  ;;  %v4846_v61 = vld [vmem:[%s6043_s1 + $0x460] sm:$0xff] }
 0x293   : > { %1997 = vst [vmem:[#allocation2 + $0x18] sm:$0xf] %v1996_v15  ;;  %v1957_v16 = vor.u32 %v1955_v18, %v1954_v25  ;;  %v2008_v8 = vsel %vm5007_vm2, %v1941_v44, %v2007_v7  ;;  %v1958_v12 = vrot.slane %v1954_v25, 4  ;;  %v2011_v20 = vsel %vm5113_vm7, %v1942_v17, %v2010_v3  ;;  %v4198_v3 = vld [vmem:[#allocation3] sm:$0xf] }
 0x294   : > { %2000 = vst [vmem:[#allocation2 + $0x1c] sm:$0x1] %v1999_v54  ;;  %v1965_v11 = vor.u32 %v1963_v5, %v1962_v34  ;;  %v2014_v56 = vsel %vm5007_vm2, %v1949_v63, %v2013_v33  ;;  %v1966_v47 = vrot.slane %v1962_v34, 4  ;;  %v2017_v10 = vsel %vm5113_vm7, %v1950_v58, %v2016_v27  ;;  %3268 = vmatpush.bf16.msrb.mxu1 %v4814_v13  ;;  %v4206_v27 = vld [vmem:[#allocation3 + $0x8] sm:$0xf] }
 0x295   : > { %2003 = vst [vmem:[#allocation2 + $0x20] sm:$0xf] %v2002_v39  ;;  %v2020_v24 = vsel %vm5007_vm2, %v1957_v16, %v2019_v53  ;;  %v2023_v40 = vsel %vm5113_vm7, %v1958_v12, %v2022_v32 }
 0x296   : > { %2006 = vst [vmem:[#allocation2 + $0x24] sm:$0x1] %v2005_v6  ;;  %v2033_v0 = vld [vmem:[#allocation2 + $0x8] sm:$0xf]  ;;  %v2026_v38 = vsel %vm5007_vm2, %v1965_v11, %v2025_v30  ;;  %v2029_v50 = vsel %vm5113_vm7, %v1966_v47, %v2028_v49  ;;  %v4841_v47 = vld [vmem:[%s6043_s1 + $0x438] sm:$0xff] }
 0x297   : > { %2009 = vst [vmem:[#allocation2 + $0x28] sm:$0xf] %v2008_v8  ;;  %v2074_v2 = vshrl.u32 %v2033_v0, 16  ;;  %v2077_v42 = vshll.u32 %v2033_v0, 16  ;;  %v2034_v52 = vld [vmem:[#allocation2 + $0xc] sm:$0x1]  ;;  %3352 = vmatpush.bf16.msra.mxu0 %v4841_v47 }
 0x298   : > { %2012 = vst [vmem:[#allocation2 + $0x2c] sm:$0x1] %v2011_v20  ;;  %v4042_v55 = vrot.slane %v2033_v0, 9  ;;  %v2209_v4 = vrot.slane %v2034_v52, 5  ;;  %v2083_v62 = vshll.u32 %v2034_v52, 16  ;;  %v4812_v52 = vld [vmem:[%s6043_s1 + $0x350] sm:$0xff] }
 0x299   : > { %2015 = vst [vmem:[#allocation2 + $0x30] sm:$0xf] %v2014_v56  ;;  %v2076_v46 = vrot.slane %v2074_v2, 4  ;;  %v2079_v48 = vrot.slane %v2077_v42, 5  ;;  %v2035_v23 = vld [vmem:[#allocation2 + $0x10] sm:$0xf] }
 0x29a   : > { %2018 = vst [vmem:[#allocation2 + $0x34] sm:$0x1] %v2017_v10  ;;  %v2037_v21 = vld [vmem:[#allocation2 + $0x18] sm:$0xf]  ;;  %v2210_v31 = vsel %vm5284_vm11, %v4042_v55, %v2209_v4  ;;  %v2085_v36 = vrot.slane %v2083_v62, 5  ;;  %v2088_v37 = vshrl.u32 %v2035_v23, 16 }
 0x29b   : > { %2021 = vst [vmem:[#allocation2 + $0x38] sm:$0xf] %v2020_v24  ;;  %v2080_v1 = vor.u32 %v2079_v48, %v2076_v46  ;;  %v2091_v7 = vshll.u32 %v2035_v23, 16  ;;  %v2102_v44 = vshrl.u32 %v2037_v21, 16  ;;  %v2105_v25 = vshll.u32 %v2037_v21, 16  ;;  %v4833_v46 = vld [vmem:[%s6043_s1 + $0x3f8] sm:$0xff] }
 0x29c   : > { %2024 = vst [vmem:[#allocation2 + $0x3c] sm:$0x1] %v2023_v40  ;;  %v2036_v17 = vld [vmem:[#allocation2 + $0x14] sm:$0x1]  ;;  %v2038_v15 = vld [vmem:[#allocation2 + $0x1c] sm:$0x1]  ;;  %3323 = vmatpush.bf16.msra.mxu3 %v4833_v46 }
 0x29d   : > { %2027 = vst [vmem:[#allocation2 + $0x40] sm:$0xf] %v2026_v38  ;;  %v2081_v22 = vrot.slane %v2080_v1, 4  ;;  %v2090_v54 = vrot.slane %v2088_v37, 4  ;;  %v2093_v14 = vrot.slane %v2091_v7, 5  ;;  %v2104_v18 = vrot.slane %v2102_v44, 4 }
 0x29e   : > { %2030 = vst [vmem:[#allocation2 + $0x44] sm:$0x1] %v2029_v50  ;;  %v5772_v63 = vld [vmem:[#allocation2 + $0x20] sm:$0xf]  ;;  %v2107_v34 = vrot.slane %v2105_v25, 5  ;;  %v4043_v58 = vrot.slane %v2035_v23, 9 }
 0x29f   : > { %2052 = vst [vmem:[#allocation3 + $0x24] sm:$0xf] %v2033_v0  ;;  %v2086_v19 = vsel %vm5155_vm8, %v2081_v22, %v2085_v36  ;;  %v2213_v6 = vrot.slane %v2036_v17, 5  ;;  %v4044_v16 = vrot.slane %v2037_v21, 9  ;;  %v2217_v5 = vrot.slane %v2038_v15, 5  ;;  %v4840_v38 = vld [vmem:[%s6043_s1 + $0x430] sm:$0xff] }
 0x2a0   : > { %2251 = vst [vmem:[#allocation3 + $0xc] sm:$0xf] %v2033_v0  ;;  %v2094_v12 = vor.u32 %v2093_v14, %v2090_v54  ;;  %v4742_v20 = vld [vmem:[#allocation3 + $0x4] sm:$0xf]  ;;  %v2097_v53 = vshll.u32 %v2036_v17, 16  ;;  %v2108_v11 = vor.u32 %v2107_v34, %v2104_v18  ;;  %v4813_v0 = vld [vmem:[%s6043_s1 + $0x358] sm:$0xff]  ;;  %3353 = vmatpush.bf16.msra.mxu0 %v4840_v38 }
 0x2a1   : > { %2252 = vst [vmem:[#allocation3 + $0x30] sm:$0xf] %v2035_v23  ;;  %v2214_v32 = vsel %vm5284_vm11, %v4043_v58, %v2213_v6  ;;  %v2218_v30 = vsel %vm5284_vm11, %v4044_v16, %v2217_v5  ;;  %v2111_v2 = vshll.u32 %v2038_v15, 16  ;;  %3269 = vmatpush.bf16.msrb.mxu1 %v4813_v0  ;;  %v5796_v41 = vld [vmem:[#allocation2 + $0x28] sm:$0xf]  ;;  %v4832_v1 = vld [vmem:[%s6043_s1 + $0x3f0] sm:$0xff] }
 0x2a2   : > { %2053 = vst [vmem:[#allocation3 + $0x48] sm:$0xf] %v2035_v23  ;;  %v2095_v49 = vrot.slane %v2094_v12, 4  ;;  %v2109_v40 = vrot.slane %v2108_v11, 4  ;;  %v2099_v48 = vrot.slane %v2097_v53, 5  ;;  %v4839_v4 = vld [vmem:[%s6043_s1 + $0x428] sm:$0xff]  ;;  %3324 = vmatpush.bf16.msra.mxu3 %v4832_v1 }
 0x2a3   : > { %2297 = vst [vmem:[#allocation3 + $0x18] sm:$0xf] %v2035_v23  ;;  %v2113_v50 = vrot.slane %v2111_v2, 5  ;;  %v4825_v62 = vld [vmem:[%s6043_s1 + $0x3b8] sm:$0xff]  ;;  %v2116_v13 = vshrl.u32 %v5772_v63, 16  ;;  %v2119_v22 = vshll.u32 %v5772_v63, 16 }
 0x2a4   : > { %2244 = vst [vmem:[#allocation3 + $0x2c] sm:$0xf] %v2210_v31  ;;  %v2100_v55 = vsel %vm5155_vm8, %v2095_v49, %v2099_v48  ;;  %3294 = vmatpush.bf16.msra.mxu2 %v4825_v62  ;;  %v4824_v36 = vld [vmem:[%s6043_s1 + $0x3b0] sm:$0xff]  ;;  %v2133_v7 = vshll.u32 %v5796_v41, 16  ;;  %v4831_v44 = vld [vmem:[%s6043_s1 + $0x3e8] sm:$0xff]  ;;  %3354 = vmatpush.bf16.msra.mxu0 %v4839_v4  ;;  %v4045_v18 = vrot.slane %v5772_v63, 9 }
 0x2a5   : > { %2289 = vst [vmem:[#allocation3 + $0x14] sm:$0xf] %v2210_v31  ;;  %3270 = vmatpush.bf16.msrb.mxu1 %v4812_v52  ;;  %v2114_v23 = vsel %vm5155_vm8, %v2109_v40, %v2113_v50  ;;  %v2130_v31 = vshrl.u32 %v5796_v41, 16  ;;  %v5821_v25 = vld [vmem:[#allocation2 + $0x24] sm:$0x1]  ;;  %v2118_v14 = vrot.slane %v2116_v13, 4 }
 0x2a6   : > { %v4746_v43 = vld [vmem:[#allocation3 + $0x20] sm:$0xf0]  ;;  %2180 = vst [vmem:[#allocation3 + $0x28] sm:$0xf] %v2086_v19  ;;  %v2042_v54 = vld [vmem:[#allocation2 + $0x2c] sm:$0x1]  ;;  %3325 = vmatpush.bf16.msra.mxu3 %v4831_v44 }
 0x2a7   : > { %v4199_v39 = vor.u32 %v4746_v43, %v4198_v3  ;;  %v4743_v26 = vld [vmem:[#allocation3 + $0xc] sm:$0xf]  ;;  %2274 = vst [vmem:[#allocation3 + $0x10] sm:$0xf] %v2086_v19  ;;  %v4838_v19 = vld [vmem:[%s6043_s1 + $0x420] sm:$0xff]  ;;  %v2121_v43 = vrot.slane %v2119_v22, 5 }
 0x2a8   : > { %v4208_v33 = vld [vmem:[#allocation3 + $0x2c] sm:$0xf0]  ;;  %2054 = vst [vmem:[#allocation3 + $0x6c] sm:$0xf] %v2037_v21  ;;  %3295 = vmatpush.bf16.msra.mxu2 %v4824_v36  ;;  %v2221_v34 = vrot.slane %v5821_v25, 5  ;;  %3355 = vmatpush.bf16.msra.mxu0 %v4838_v19  ;;  %v4046_v5 = vrot.slane %v5796_v41, 9 }
 0x2a9   : > { %3157 = vmatmul.bf16.vlgmr.msra.gmra.mxu1 %v4199_v39  ;;  %v4211_v8 = vor.u32 %v4743_v26, %v4208_v33  ;;  %2253 = vst [vmem:[#allocation3 + $0x54] sm:$0xf] %v2037_v21  ;;  %v2132_v39 = vrot.slane %v2130_v31, 4  ;;  %v2135_v26 = vrot.slane %v2133_v7, 5  ;;  %v5829_v16 = vld [vmem:[#allocation2 + $0x30] sm:$0xf] }
 0x2aa   : > { %2298 = vst [vmem:[#allocation3 + $0x3c] sm:$0xf] %v2037_v21  ;;  %v4234_v21 = vld [vmem:[#allocation3 + $0x48] sm:$0xf]  ;;  %v4811_v12 = vld [vmem:[%s6043_s1 + $0x348] sm:$0xff]  ;;  %v2222_v47 = vsel %vm5284_vm11, %v4045_v18, %v2221_v34  ;;  %v4822_v46 = vld [vmem:[%s6043_s1 + $0x3a0] sm:$0xff] }
 0x2ab   : > { %3244 = vmatmul.bf16.vlgmr.msrb.gmra.mxu0 %v4211_v8  ;;  %v4747_v56 = vld [vmem:[#allocation3 + $0x28] sm:$0xf0]  ;;  %2254 = vst [vmem:[#allocation3 + $0x78] sm:$0xf] %v5772_v63  ;;  %v2225_v8 = vrot.slane %v2042_v54, 5  ;;  %v4823_v0 = vld [vmem:[%s6043_s1 + $0x3a8] sm:$0xff]  ;;  %3271 = vmatpush.bf16.msrb.mxu1 %v4811_v12 }
 0x2ac   : > { %v4207_v10 = vor.u32 %v4747_v56, %v4206_v27  ;;  %2055 = vst [vmem:[#allocation3 + $0x90] sm:$0xf] %v5772_v63  ;;  %v2122_v27 = vor.u32 %v2121_v43, %v2118_v14  ;;  %v2136_v56 = vor.u32 %v2135_v26, %v2132_v39  ;;  %v4829_v49 = vld [vmem:[%s6043_s1 + $0x3d8] sm:$0xff]  ;;  %3296 = vmatpush.bf16.msra.mxu2 %v4823_v0  ;;  %v4810_v38 = vld [vmem:[%s6043_s1 + $0x340] sm:$0xff]  ;;  %v4835_v4 = vld [vmem:[%s6043_s1 + $0x408] sm:$0xff]  ;;  %v2144_v13 = vshrl.u32 %v5829_v16, 16 }
 0x2ad   : > { %v4200_v24 = vld [vmem:[#allocation3 + $0x24] sm:$0xf0]  ;;  %2299 = vst [vmem:[#allocation3 + $0x60] sm:$0xf] %v5772_v63  ;;  %v2226_v2 = vsel %vm5284_vm11, %v4046_v5, %v2225_v8  ;;  %v2147_v22 = vshll.u32 %v5829_v16, 16  ;;  %v4827_v19 = vld [vmem:[%s6043_s1 + $0x3c8] sm:$0xff] }
 0x2ae   : > { %3215 = vmatmul.bf16.vlgmr.msrb.gmra.mxu3 %v4207_v10  ;;  %v4203_v42 = vor.u32 %v4742_v20, %v4200_v24  ;;  %2245 = vst [vmem:[#allocation3 + $0x50] sm:$0xf] %v2214_v32  ;;  %v4830_v20 = vld [vmem:[%s6043_s1 + $0x3e0] sm:$0xff]  ;;  %v2125_v10 = vshll.u32 %v5821_v25, 16  ;;  %v2139_v24 = vshll.u32 %v2042_v54, 16  ;;  %v2123_v40 = vrot.slane %v2122_v27, 4 }
 0x2af   : > { %2246 = vst [vmem:[#allocation3 + $0x74] sm:$0xf] %v2218_v30  ;;  %v4755_v37 = vld [vmem:[#allocation3 + $0x68] sm:$0xf0]  ;;  %3326 = vmatpush.bf16.msra.mxu3 %v4830_v20  ;;  %v2137_v52 = vrot.slane %v2136_v56, 4  ;;  %3272 = vmatpush.bf16.msrb.mxu1 %v4810_v38  ;;  %v2146_v14 = vrot.slane %v2144_v13, 4 }
 0x2b0   : > { %3186 = vmatmul.bf16.vlgmr.msrb.gmra.mxu2 %v4203_v42  ;;  %2290 = vst [vmem:[#allocation3 + $0x38] sm:$0xf] %v2214_v32  ;;  %v4752_v3 = vld [vmem:[#allocation3 + $0x54] sm:$0xf]  ;;  %v4235_v15 = vor.u32 %v4755_v37, %v4234_v21  ;;  %v4836_v42 = vld [vmem:[%s6043_s1 + $0x410] sm:$0xff]  ;;  %v2127_v50 = vrot.slane %v2125_v10, 5 }
 0x2b1   : > { %2335 = vst [vmem:[#allocation3 + $0x20] sm:$0xf] %v2214_v32  ;;  %v4837_v32 = vld [vmem:[%s6043_s1 + $0x418] sm:$0xff]  ;;  %3297 = vmatpush.bf16.msra.mxu2 %v4822_v46  ;;  %v5887_v25 = vld [vmem:[#allocation2 + $0x34] sm:$0x1]  ;;  %v2149_v43 = vrot.slane %v2147_v22, 5 }
 0x2b2   : > { %2336 = vst [vmem:[#allocation3 + $0x44] sm:$0xf] %v2218_v30  ;;  %v4244_v17 = vld [vmem:[#allocation3 + $0x74] sm:$0xf0]  ;;  %3356 = vmatpush.bf16.msra.mxu0 %v4837_v32  ;;  %v5866_v48 = vld [vmem:[#allocation2 + $0x38] sm:$0xf]  ;;  %v2128_v62 = vsel %vm5155_vm8, %v2123_v40, %v2127_v50 }
 0x2b3   : > { %2291 = vst [vmem:[#allocation3 + $0x5c] sm:$0xf] %v2218_v30  ;;  %v4247_v58 = vor.u32 %v4752_v3, %v4244_v17  ;;  %3327 = vmatpush.bf16.msra.mxu3 %v4829_v49  ;;  %v4270_v1 = vld [vmem:[#allocation3 + $0x90] sm:$0xf]  ;;  %v2158_v21 = vshrl.u32 %v5866_v48, 16  ;;  %v4821_v31 = vld [vmem:[%s6043_s1 + $0x398] sm:$0xff] }
 0x2b4   : > { %2181 = vst [vmem:[#allocation3 + $0x4c] sm:$0xf] %v2100_v55  ;;  %v2161_v7 = vshll.u32 %v5866_v48, 16  ;;  %v5892_v17 = vld [vmem:[#allocation2 + $0x3c] sm:$0x1]  ;;  %v4820_v34 = vld [vmem:[%s6043_s1 + $0x390] sm:$0xff] }
 0x2b5   : > { %2182 = vst [vmem:[#allocation3 + $0x70] sm:$0xf] %v2114_v23  ;;  %v4242_v6 = vld [vmem:[#allocation3 + $0x50] sm:$0xf]  ;;  %v2160_v18 = vrot.slane %v2158_v21, 4  ;;  %3298 = vmatpush.bf16.msra.mxu2 %v4821_v31  ;;  %v2229_v27 = vrot.slane %v5887_v25, 5 }
 0x2b6   : > { %2275 = vst [vmem:[#allocation3 + $0x34] sm:$0xf] %v2100_v55  ;;  %v4756_v33 = vld [vmem:[#allocation3 + $0x70] sm:$0xf0]  ;;  %3357 = vmatpush.bf16.msra.mxu0 %v4836_v42  ;;  %v2163_v26 = vrot.slane %v2161_v7, 5  ;;  %v4048_v12 = vrot.slane %v5866_v48, 9 }
 0x2b7   : > { %2320 = vst [vmem:[#allocation3 + $0x1c] sm:$0xf] %v2100_v55  ;;  %v4243_v53 = vor.u32 %v4756_v33, %v4242_v6  ;;  %v2141_v55 = vrot.slane %v2139_v24, 5  ;;  %v4826_v5 = vld [vmem:[%s6043_s1 + $0x3c0] sm:$0xff]  ;;  %v2233_v20 = vrot.slane %v5892_v17, 5  ;;  %v2153_v24 = vshll.u32 %v5887_v25, 16 }
 0x2b8   : > { %2321 = vst [vmem:[#allocation3 + $0x40] sm:$0xf] %v2114_v23  ;;  %v2164_v0 = vor.u32 %v2163_v26, %v2160_v18  ;;  %v4848_v49 = vld [vmem:[%s6043_s1 + $0x470] sm:$0xff]  ;;  %v2167_v46 = vshll.u32 %v5892_v17, 16  ;;  %v4818_v38 = vld [vmem:[%s6043_s1 + $0x380] sm:$0xff] }
 0x2b9   : > { %3162 = vmatmul.bf16.gmra.mxu1 %v4235_v15  ;;  %2276 = vst [vmem:[#allocation3 + $0x58] sm:$0xf] %v2114_v23  ;;  %v5876_v23 = vld [vmem:[#allocation2 + $0x40] sm:$0xf]  ;;  %v2142_v37 = vsel %vm5155_vm8, %v2137_v52, %v2141_v55  ;;  %3299 = vmatpush.bf16.msra.mxu2 %v4820_v34  ;;  %v2234_v40 = vsel %vm5284_vm11, %v4048_v12, %v2233_v20  ;;  %v4744_v20 = vld [vmem:[#allocation3 + $0x14] sm:$0xf] }
 0x2ba   : > { %2056 = vst [vmem:[#allocation3 + $0xb4] sm:$0xf] %v5796_v41  ;;  %3358 = vmatpush.bf16.msra.mxu0 %v4835_v4  ;;  %v4834_v15 = vld [vmem:[%s6043_s1 + $0x400] sm:$0xff]  ;;  %v2263_v8 = vshll.u32 %v5876_v23, 16  ;;  %v2165_v50 = vrot.slane %v2164_v0, 4  ;;  %v2169_v55 = vrot.slane %v2167_v46, 5 }
 0x2bb   : > { %3249 = vmatmul.bf16.gmra.mxu0 %v4247_v58  ;;  %v4751_v63 = vld [vmem:[#allocation3 + $0x4c] sm:$0xf]  ;;  %2255 = vst [vmem:[#allocation3 + $0x9c] sm:$0xf] %v5796_v41  ;;  %v2260_v58 = vshrl.u32 %v5876_v23, 16  ;;  %v4049_v25 = vrot.slane %v5876_v23, 9 }
 0x2bc   : > { %v4236_v11 = vld [vmem:[#allocation3 + $0x6c] sm:$0xf0]  ;;  %2300 = vst [vmem:[#allocation3 + $0x84] sm:$0xf] %v5796_v41  ;;  %v4828_v41 = vld [vmem:[%s6043_s1 + $0x3d0] sm:$0xff]  ;;  %v2265_v10 = vrot.slane %v2263_v8, 5  ;;  %v2170_v21 = vsel %vm5155_vm8, %v2165_v50, %v2169_v55 }
 0x2bd   : > { %2256 = vst [vmem:[#allocation3 + $0xc0] sm:$0xf] %v5829_v16  ;;  %v4239_v30 = vor.u32 %v4751_v63, %v4236_v11  ;;  %3328 = vmatpush.bf16.msra.mxu3 %v4828_v41  ;;  %v4047_v63 = vrot.slane %v5829_v16, 9  ;;  %v4819_v11 = vld [vmem:[%s6043_s1 + $0x388] sm:$0xff]  ;;  %v4214_v26 = vld [vmem:[#allocation3 + $0x10] sm:$0xf] }
 0x2be   : > { %3220 = vmatmul.bf16.gmra.mxu3 %v4243_v53  ;;  %2057 = vst [vmem:[#allocation3 + $0xd8] sm:$0xf] %v5829_v16  ;;  %3359 = vmatpush.bf16.msra.mxu0 %v4834_v15  ;;  %v4849_v53 = vld [vmem:[%s6043_s1 + $0x478] sm:$0xff]  ;;  %v4222_v8 = vld [vmem:[#allocation3 + $0x18] sm:$0xf] }
 0x2bf   : > { %2301 = vst [vmem:[#allocation3 + $0xa8] sm:$0xf] %v5829_v16  ;;  %v2150_v16 = vor.u32 %v2149_v43, %v2146_v14  ;;  %3381 = vmatpush.bf16.msra.mxu1 %v4849_v53  ;;  %3300 = vmatpush.bf16.msra.mxu2 %v4819_v11  ;;  %v4847_v14 = vld [vmem:[%s6043_s1 + $0x468] sm:$0xff]  ;;  %v4224_v35 = vld [vmem:[#allocation3 + $0x3c] sm:$0xf0] }
 0x2c0   : > { %3191 = vmatmul.bf16.gmra.mxu2 %v4239_v30  ;;  %2247 = vst [vmem:[#allocation3 + $0x98] sm:$0xf] %v2222_v47  ;;  %v4216_v53 = vld [vmem:[#allocation3 + $0x34] sm:$0xf0]  ;;  %v4844_v11 = vld [vmem:[%s6043_s1 + $0x450] sm:$0xff] }
 0x2c1   : > { %2248 = vst [vmem:[#allocation3 + $0xbc] sm:$0xf] %v2226_v2  ;;  %v4764_v36 = vld [vmem:[#allocation3 + $0xb0] sm:$0xf0]  ;;  %3329 = vmatpush.bf16.msra.mxu3 %v4827_v19  ;;  %v2151_v52 = vrot.slane %v2150_v16, 4 }
 0x2c2   : > { %2292 = vst [vmem:[#allocation3 + $0x80] sm:$0xf] %v2222_v47  ;;  %v4761_v44 = vld [vmem:[#allocation3 + $0x9c] sm:$0xf]  ;;  %v4271_v54 = vor.u32 %v4764_v36, %v4270_v1  ;;  %v2155_v1 = vrot.slane %v2153_v24, 5 }
 0x2c3   : > { %2293 = vst [vmem:[#allocation3 + $0xa4] sm:$0xf] %v2226_v2  ;;  %3382 = vmatpush.bf16.msra.mxu1 %v4848_v49  ;;  %3301 = vmatpush.bf16.msra.mxu2 %v4818_v38  ;;  %v4250_v16 = vld [vmem:[#allocation3 + $0x58] sm:$0xf]  ;;  %v4758_v24 = vld [vmem:[#allocation3 + $0x80] sm:$0xf0] }
 0x2c4   : > { %2337 = vst [vmem:[#allocation3 + $0x68] sm:$0xf] %v2222_v47  ;;  %v4280_v3 = vld [vmem:[#allocation3 + $0xbc] sm:$0xf0]  ;;  %v2262_v47 = vrot.slane %v2260_v58, 4  ;;  %v2156_v22 = vsel %vm5155_vm8, %v2151_v52, %v2155_v1  ;;  %v4843_v49 = vld [vmem:[%s6043_s1 + $0x448] sm:$0xff] }
 0x2c5   : > { %2338 = vst [vmem:[#allocation3 + $0x8c] sm:$0xf] %v2226_v2  ;;  %v4283_v6 = vor.u32 %v4761_v44, %v4280_v3  ;;  %3330 = vmatpush.bf16.msra.mxu3 %v4826_v5  ;;  %v2230_v2 = vsel %vm5284_vm11, %v4047_v63, %v2229_v27  ;;  %v4748_v58 = vld [vmem:[#allocation3 + $0x30] sm:$0xf0]  ;;  %v4749_v63 = vld [vmem:[#allocation3 + $0x38] sm:$0xf0] }
 0x2c6   : > { %2183 = vst [vmem:[#allocation3 + $0x94] sm:$0xf] %v2128_v62  ;;  %v2266_v41 = vor.u32 %v2265_v10, %v2262_v47  ;;  %v4845_v27 = vld [vmem:[%s6043_s1 + $0x458] sm:$0xff]  ;;  %v4223_v12 = vor.u32 %v4749_v63, %v4222_v8  ;;  %v4842_v38 = vld [vmem:[%s6043_s1 + $0x440] sm:$0xff] }
 0x2c7   : > { %2184 = vst [vmem:[#allocation3 + $0xb8] sm:$0xf] %v2142_v37  ;;  %v4278_v39 = vld [vmem:[#allocation3 + $0x98] sm:$0xf]  ;;  %3383 = vmatpush.bf16.msra.mxu1 %v4847_v14 }
 0x2c8   : > { %2277 = vst [vmem:[#allocation3 + $0x7c] sm:$0xf] %v2128_v62  ;;  %v4765_v33 = vld [vmem:[#allocation3 + $0xb8] sm:$0xf0]  ;;  %v2267_v31 = vrot.slane %v2266_v41, 4 }
 0x2c9   : > { %3167 = vmatmul.bf16.gmra.mxu1 %v4271_v54  ;;  %2278 = vst [vmem:[#allocation3 + $0xa0] sm:$0xf] %v2142_v37  ;;  %v4279_v56 = vor.u32 %v4765_v33, %v4278_v39  ;;  %v4215_v33 = vor.u32 %v4748_v58, %v4214_v26  ;;  %v4252_v46 = vld [vmem:[#allocation3 + $0x7c] sm:$0xf0]  ;;  %v5962_v26 = vld [vmem:[%s6044_s2 + $0x1] ss:$0 sm:$0xff] }
 0x2ca   : > { %2322 = vst [vmem:[#allocation3 + $0x64] sm:$0xf] %v2128_v62  ;;  %v4306_v62 = vld [vmem:[#allocation3 + $0xd8] sm:$0xf] }
 0x2cb   : > { %3254 = vmatmul.bf16.gmra.mxu0 %v4283_v6  ;;  %2323 = vst [vmem:[#allocation3 + $0x88] sm:$0xf] %v2142_v37  ;;  %3384 = vmatpush.bf16.msra.mxu1 %v4846_v61  ;;  %v4745_v6 = vld [vmem:[#allocation3 + $0x1c] sm:$0xf]  ;;  %v4750_v61 = vld [vmem:[#allocation3 + $0x40] sm:$0xf0] }
 0x2cc   : > { %2058 = vst [vmem:[#allocation3 + $0xfc] sm:$0xf] %v5866_v48  ;;  %v4227_v5 = vor.u32 %v4745_v6, %v4224_v35  ;;  %v4266_v8 = vld [vmem:[#allocation3 + $0x68] sm:$0xf]  ;;  %v4759_v63 = vld [vmem:[#allocation3 + $0x88] sm:$0xf0] }
 0x2cd   : > { %v4760_v32 = vld [vmem:[#allocation3 + $0x94] sm:$0xf]  ;;  %2257 = vst [vmem:[#allocation3 + $0xe4] sm:$0xf] %v5866_v48 }
 0x2ce   : > { %3225 = vmatmul.bf16.gmra.mxu3 %v4279_v56  ;;  %v4272_v30 = vld [vmem:[#allocation3 + $0xb4] sm:$0xf0]  ;;  %2302 = vst [vmem:[#allocation3 + $0xcc] sm:$0xf] %v5866_v48  ;;  %v2048_v48 = vld [vmem:[#allocation2 + $0x44] sm:$0x1]  ;;  %v4219_v56 = vor.u32 %v4744_v20, %v4216_v53  ;;  %v4267_v20 = vor.u32 %v4759_v63, %v4266_v8 }
 0x2cf   : > { %v4275_v42 = vor.u32 %v4760_v32, %v4272_v30  ;;  %2258 = vst [vmem:[#allocation3 + $0x108] sm:$0xf] %v5876_v23  ;;  %v2269_v4 = vshll.u32 %v2048_v48, 16  ;;  %v2286_v19 = vrot.slane %v2048_v48, 5  ;;  %3385 = vmatpush.bf16.msra.mxu1 %v4845_v27  ;;  %v4757_v32 = vld [vmem:[#allocation3 + $0x78] sm:$0xf0] }
 0x2d0   : > { %2303 = vst [vmem:[#allocation3 + $0xf0] sm:$0xf] %v5876_v23  ;;  %v4251_v10 = vor.u32 %v4757_v32, %v4250_v16  ;;  %v4286_v48 = vld [vmem:[#allocation3 + $0xa0] sm:$0xf] }
 0x2d1   : > { %3196 = vmatmul.bf16.gmra.mxu2 %v4275_v42  ;;  %2249 = vst [vmem:[#allocation3 + $0xe0] sm:$0xf] %v2230_v2  ;;  %v2271_v44 = vrot.slane %v2269_v4, 5  ;;  %v2287_v23 = vsel %vm5284_vm11, %v4049_v25, %v2286_v19  ;;  %v4754_v0 = vld [vmem:[#allocation3 + $0x64] sm:$0xf] }
 0x2d2   : > { %2250 = vst [vmem:[#allocation3 + $0x104] sm:$0xf] %v2234_v40  ;;  %v4260_v47 = vld [vmem:[#allocation3 + $0x84] sm:$0xf0]  ;;  %v4332_v25 = vld [vmem:[#allocation3 + $0x114] sm:$0xf0] }
 0x2d3   : > { %2294 = vst [vmem:[#allocation3 + $0xc8] sm:$0xf] %v2230_v2  ;;  %v4773_v13 = vld [vmem:[#allocation3 + $0xf8] sm:$0xf0]  ;;  %v2272_v54 = vsel %vm5155_vm8, %v2267_v31, %v2271_v44  ;;  %3386 = vmatpush.bf16.msra.mxu1 %v4844_v11  ;;  %v4263_v30 = vor.u32 %v4754_v0, %v4260_v47 }
 0x2d4   : > { %2295 = vst [vmem:[#allocation3 + $0xec] sm:$0xf] %v2234_v40  ;;  %v4770_v36 = vld [vmem:[#allocation3 + $0xe4] sm:$0xf]  ;;  %v4307_v7 = vor.u32 %v4773_v13, %v4306_v62  ;;  %v4294_v62 = vld [vmem:[#allocation3 + $0xa8] sm:$0xf] }
 0x2d5   : > { %2339 = vst [vmem:[#allocation3 + $0xb0] sm:$0xf] %v2230_v2  ;;  %v4258_v2 = vld [vmem:[#allocation3 + $0x60] sm:$0xf]  ;;  %v4767_v13 = vld [vmem:[#allocation3 + $0xc8] sm:$0xf0] }
 0x2d6   : > { %v4316_v37 = vld [vmem:[#allocation3 + $0x104] sm:$0xf0]  ;;  %2340 = vst [vmem:[#allocation3 + $0xd4] sm:$0xf] %v2234_v40  ;;  %v4259_v42 = vor.u32 %v4758_v24, %v4258_v2  ;;  %v4753_v40 = vld [vmem:[#allocation3 + $0x5c] sm:$0xf] }
 0x2d7   : > { %2185 = vst [vmem:[#allocation3 + $0xdc] sm:$0xf] %v2156_v22  ;;  %v4319_v3 = vor.u32 %v4770_v36, %v4316_v37  ;;  %3387 = vmatpush.bf16.msra.mxu1 %v4843_v49  ;;  %v4255_v52 = vor.u32 %v4753_v40, %v4252_v46 }
 0x2d8   : > { %2186 = vst [vmem:[#allocation3 + $0x100] sm:$0xf] %v2170_v21  ;;  %v4314_v17 = vld [vmem:[#allocation3 + $0xe0] sm:$0xf] }
 0x2d9   : > { %3172 = vmatmul.bf16.gmra.mxu1 %v4307_v7  ;;  %v4774_v15 = vld [vmem:[#allocation3 + $0x100] sm:$0xf0]  ;;  %2279 = vst [vmem:[#allocation3 + $0xc4] sm:$0xf] %v2156_v22 }
 0x2da   : > { %2280 = vst [vmem:[#allocation3 + $0xe8] sm:$0xf] %v2170_v21  ;;  %v4315_v43 = vor.u32 %v4774_v15, %v4314_v17  ;;  %v4288_v31 = vld [vmem:[#allocation3 + $0xc4] sm:$0xf0]  ;;  %v4330_v17 = vld [vmem:[#allocation3 + $0xf0] sm:$0xf] }
 0x2db   : > { %3259 = vmatmul.bf16.gmra.mxu0 %v4319_v3  ;;  %2324 = vst [vmem:[#allocation3 + $0xac] sm:$0xf] %v2156_v22  ;;  %3388 = vmatpush.bf16.msra.mxu1 %v4842_v38  ;;  %v4295_v22 = vor.u32 %v4767_v13, %v4294_v62  ;;  %v4776_v15 = vld [vmem:[#allocation3 + $0x110] sm:$0xf0]  ;;  %v4771_v14 = vld [vmem:[#allocation3 + $0xec] sm:$0xf] }
 0x2dc   : > { %2325 = vst [vmem:[#allocation3 + $0xd0] sm:$0xf] %v2170_v21  ;;  %v4762_v21 = vld [vmem:[#allocation3 + $0xa4] sm:$0xf]  ;;  %v4302_v49 = vld [vmem:[#allocation3 + $0xb0] sm:$0xf] }
 0x2dd   : > { %2281 = vst [vmem:[#allocation3 + $0x10c] sm:$0xf] %v2272_v54  ;;  %v4291_v36 = vor.u32 %v4762_v21, %v4288_v31 }
 0x2de   : > { %3230 = vmatmul.bf16.gmra.mxu3 %v4315_v43  ;;  %v4769_v18 = vld [vmem:[#allocation3 + $0xdc] sm:$0xf]  ;;  %2326 = vst [vmem:[#allocation3 + $0xf4] sm:$0xf] %v2272_v54  ;;  %v4331_v54 = vor.u32 %v4776_v15, %v4330_v17 }
 0x2df   : > { %v4308_v34 = vld [vmem:[#allocation3 + $0xfc] sm:$0xf0]  ;;  %2296 = vst [vmem:[#allocation3 + $0x110] sm:$0xf] %v2287_v23 }
 0x2e0   : > { %v4311_v39 = vor.u32 %v4769_v18, %v4308_v34  ;;  %2341 = vst [vmem:[#allocation3 + $0xf8] sm:$0xf] %v2287_v23  ;;  %v4766_v50 = vld [vmem:[#allocation3 + $0xc0] sm:$0xf0]  ;;  %v4230_v18 = vld [vmem:[#allocation3 + $0x20] sm:$0xf] }
 0x2e1   : > { %v4287_v55 = vor.u32 %v4766_v50, %v4286_v48  ;;  %v4322_v37 = vld [vmem:[#allocation3 + $0xe8] sm:$0xf] }
 0x2e2   : > { %3201 = vmatmul.bf16.gmra.mxu2 %v4311_v39  ;;  %v4763_v41 = vld [vmem:[#allocation3 + $0xac] sm:$0xf]  ;;  %v4231_v39 = vor.u32 %v4750_v61, %v4230_v18 }
 0x2e3   : > { %v4296_v1 = vld [vmem:[#allocation3 + $0xcc] sm:$0xf0] }
 0x2e4   : > { %v4299_v4 = vor.u32 %v4763_v41, %v4296_v1  ;;  %v4775_v7 = vld [vmem:[#allocation3 + $0x108] sm:$0xf0] }
 0x2e5   : > { %v4772_v44 = vld [vmem:[#allocation3 + $0xf4] sm:$0xf]  ;;  %v4323_v19 = vor.u32 %v4775_v7, %v4322_v37  ;;  %v4777_v7 = vld [vmem:[#allocation3 + $0x118] sm:$0xf0] }
 0x2e6   : > { %v4335_v3 = vor.u32 %v4772_v44, %v4332_v25  ;;  %v4324_v43 = vld [vmem:[#allocation3 + $0x10c] sm:$0xf0] }
 0x2e7   : > { %v4327_v23 = vor.u32 %v4771_v14, %v4324_v43  ;;  %v4338_v37 = vld [vmem:[#allocation3 + $0xf8] sm:$0xf] }
 0x2e9   : > { %3273 = vmatmul.bf16.vlgmr.msrb.gmra.mxu1 %v4215_v33 }
 0x2eb   : > { %3360 = vmatmul.bf16.vlgmr.msra.gmra.mxu0 %v4227_v5 }
 0x2ee   : > { %3331 = vmatmul.bf16.vlgmr.msra.gmra.mxu3 %v4223_v12 }
 0x2f2   : > { %3302 = vmatmul.bf16.vlgmr.msra.gmra.mxu2 %v4219_v56 }
 0x2f9   : > { %3278 = vmatmul.bf16.gmra.mxu1 %v4251_v10 }
 0x2fb   : > { %3365 = vmatmul.bf16.gmra.mxu0 %v4263_v30 }
 0x2fe   : > { %3336 = vmatmul.bf16.gmra.mxu3 %v4259_v42  ;;  %v4768_v42 = vld [vmem:[#allocation3 + $0xd0] sm:$0xf0] }
 0x302   : > { %3307 = vmatmul.bf16.gmra.mxu2 %v4255_v52  ;;  %v4303_v52 = vor.u32 %v4768_v42, %v4302_v49 }
 0x309   : > { %3283 = vmatmul.bf16.gmra.mxu1 %v4287_v55 }
 0x30b   : > { %3370 = vmatmul.bf16.gmra.mxu0 %v4299_v4 }
 0x30e   : > { %3341 = vmatmul.bf16.gmra.mxu3 %v4295_v22 }
 0x312   : > { %3312 = vmatmul.bf16.gmra.mxu2 %v4291_v36 }
 0x319   : > { %3288 = vmatmul.bf16.gmra.mxu1 %v4323_v19 }
 0x31b   : > { %3375 = vmatmul.bf16.gmra.mxu0 %v4335_v3  ;;  %v4339_v3 = vor.u32 %v4777_v7, %v4338_v37 }
 0x31e   : > { %3346 = vmatmul.bf16.gmra.mxu3 %v4331_v54 }
 0x322   : > { %3317 = vmatmul.bf16.gmra.mxu2 %v4327_v23 }
 0x326   : > { %v3158_v34 = vpop.f32.mrf.mxu1 }
 0x327   : > { %v3159_v35 = vadd.f32 %v5962_v26, %v3158_v34 }
 0x328   : > { %v3245_v32 = vpop.f32.mrf.mxu0 }
 0x329   : > { %3389 = vmatmul.bf16.vlgmr.msra.gmra.mxu1 %v4231_v39 }
 0x32e   : > { %v3160_v58 = vpop.f32.mrf.mxu1 }
 0x32f   : > { %v3161_v11 = vadd.f32 %v5962_v26, %v3160_v58 }
 0x330   : > { %v3247_v38 = vpop.f32.mrf.mxu0 }
 0x331   : > { %v3216_v6 = vpop.f32.mrf.mxu3 }
 0x333   : > { %v3187_v33 = vpop.f32.mrf.mxu2 }
 0x334   : > { %v3188_v5 = vadd.f32 %v3187_v33, %v3159_v35 }
 0x336   : > { %v3217_v27 = vadd.f32 %v3216_v6, %v3188_v5  ;;  %v3163_v12 = vpop.f32.mrf.mxu1 }
 0x337   : > { %v3164_v30 = vadd.f32 %v5962_v26, %v3163_v12 }
 0x338   : > { %v3246_v48 = vadd.f32 %v3245_v32, %v3217_v27  ;;  %v3250_v22 = vpop.f32.mrf.mxu0 }
 0x339   : > { %v3218_v53 = vpop.f32.mrf.mxu3  ;;  %3394 = vmatmul.bf16.gmra.mxu1 %v4267_v20 }
 0x33b   : > { %v3189_v56 = vpop.f32.mrf.mxu2 }
 0x33c   : > { %v3190_v16 = vadd.f32 %v3189_v56, %v3161_v11 }
 0x33e   : > { %v3219_v0 = vadd.f32 %v3218_v53, %v3190_v16  ;;  %v3165_v47 = vpop.f32.mrf.mxu1 }
 0x33f   : > { %v3166_v50 = vadd.f32 %v5962_v26, %v3165_v47 }
 0x340   : > { %v3248_v13 = vadd.f32 %v3247_v38, %v3219_v0  ;;  %v3252_v15 = vpop.f32.mrf.mxu0 }
 0x341   : > { %v3221_v10 = vpop.f32.mrf.mxu3 }
 0x343   : > { %v3192_v2 = vpop.f32.mrf.mxu2 }
 0x344   : > { %v3193_v24 = vadd.f32 %v3192_v2, %v3164_v30 }
 0x346   : > { %v3222_v40 = vadd.f32 %v3221_v10, %v3193_v24  ;;  %v3168_v46 = vpop.f32.mrf.mxu1 }
 0x347   : > { %v3169_v21 = vadd.f32 %v5962_v26, %v3168_v46 }
 0x348   : > { %v3251_v17 = vadd.f32 %v3250_v22, %v3222_v40  ;;  %v3255_v39 = vpop.f32.mrf.mxu0 }
 0x349   : > { %3399 = vmatmul.bf16.gmra.mxu1 %v4303_v52  ;;  %v3223_v41 = vpop.f32.mrf.mxu3 }
 0x34b   : > { %v3194_v1 = vpop.f32.mrf.mxu2 }
 0x34c   : > { %v3195_v55 = vadd.f32 %v3194_v1, %v3166_v50 }
 0x34e   : > { %v3224_v4 = vadd.f32 %v3223_v41, %v3195_v55  ;;  %v3170_v62 = vpop.f32.mrf.mxu1 }
 0x34f   : > { %v3171_v54 = vadd.f32 %v5962_v26, %v3170_v62 }
 0x350   : > { %v3253_v34 = vadd.f32 %v3252_v15, %v3224_v4  ;;  %v3257_v5 = vpop.f32.mrf.mxu0 }
 0x351   : > { %v3226_v31 = vpop.f32.mrf.mxu3 }
 0x354   : > { %v3197_v36 = vpop.f32.mrf.mxu2 }
 0x355   : > { %v3198_v44 = vadd.f32 %v3197_v36, %v3169_v21 }
 0x356   : > { %v3173_v25 = vpop.f32.mrf.mxu1 }
 0x357   : > { %v3227_v19 = vadd.f32 %v3226_v31, %v3198_v44 }
 0x358   : > { %v3260_v32 = vpop.f32.mrf.mxu0 }
 0x359   : > { %3404 = vmatmul.bf16.gmra.mxu1 %v4339_v3  ;;  %v3228_v23 = vpop.f32.mrf.mxu3  ;;  %v3256_v35 = vadd.f32 %v3255_v39, %v3227_v19  ;;  %v3174_v3 = vadd.f32 %v5962_v26, %v3173_v25 }
 0x35c   : > { %v3199_v14 = vpop.f32.mrf.mxu2 }
 0x35d   : > { %v3200_v43 = vadd.f32 %v3199_v14, %v3171_v54 }
 0x35e   : > { %v3175_v18 = vpop.f32.mrf.mxu1 }
 0x35f   : > { %v3229_v61 = vadd.f32 %v3228_v23, %v3200_v43  ;;  %v3176_v54 = vadd.f32 %v5962_v26, %v3175_v18 }
 0x360   : > { %v3262_v2 = vpop.f32.mrf.mxu0 }
 0x361   : > { %v3258_v63 = vadd.f32 %v3257_v5, %v3229_v61  ;;  %v3231_v53 = vpop.f32.mrf.mxu3 }
 0x365   : > { %v3202_v12 = vpop.f32.mrf.mxu2 }
 0x366   : > { %v3274_v58 = vpop.f32.mrf.mxu1  ;;  %v3203_v15 = vadd.f32 %v3202_v12, %v3174_v3 }
 0x367   : > { %v3275_v6 = vadd.f32 %v3274_v58, %v3246_v48 }
 0x368   : > { %v3361_v46 = vpop.f32.mrf.mxu0  ;;  %v3232_v58 = vadd.f32 %v3231_v53, %v3203_v15 }
 0x369   : > { %v3233_v47 = vpop.f32.mrf.mxu3 }
 0x36d   : > { %v3204_v16 = vpop.f32.mrf.mxu2 }
 0x36e   : > { %v3276_v33 = vpop.f32.mrf.mxu1  ;;  %v3205_v61 = vadd.f32 %v3204_v16, %v3176_v54 }
 0x36f   : > { %v3277_v8 = vadd.f32 %v3276_v33, %v3248_v13 }
 0x370   : > { %v3363_v41 = vpop.f32.mrf.mxu0 }
 0x371   : > { %v3332_v42 = vpop.f32.mrf.mxu3 }
 0x375   : > { %v3303_v30 = vpop.f32.mrf.mxu2 }
 0x376   : > { %v3279_v27 = vpop.f32.mrf.mxu1 }
 0x377   : > { %v3280_v20 = vadd.f32 %v3279_v27, %v3251_v17 }
 0x378   : > { %v3366_v62 = vpop.f32.mrf.mxu0 }
 0x379   : > { %v3334_v52 = vpop.f32.mrf.mxu3 }
 0x37d   : > { %v3305_v40 = vpop.f32.mrf.mxu2 }
 0x37e   : > { %v3281_v11 = vpop.f32.mrf.mxu1  ;;  %v3306_v43 = vadd.f32 %v3305_v40, %v3277_v8 }
 0x37f   : > { %v3282_v56 = vadd.f32 %v3281_v11, %v3253_v34  ;;  %v3304_v34 = vadd.f32 %v3303_v30, %v3275_v6 }
 0x380   : > { %v3368_v31 = vpop.f32.mrf.mxu0  ;;  %v3335_v33 = vadd.f32 %v3334_v52, %v3306_v43 }
 0x381   : > { %v3337_v1 = vpop.f32.mrf.mxu3  ;;  %v3333_v27 = vadd.f32 %v3332_v42, %v3304_v34 }
 0x382   : > { %v3364_v18 = vadd.f32 %v3363_v41, %v3335_v33 }
 0x383   : > { %v3362_v40 = vadd.f32 %v3361_v46, %v3333_v27 }
 0x385   : > { %v3308_v50 = vpop.f32.mrf.mxu2 }
 0x386   : > { %v3284_v0 = vpop.f32.mrf.mxu1 }
 0x387   : > { %v3285_v10 = vadd.f32 %v3284_v0, %v3256_v35  ;;  %v3309_v35 = vadd.f32 %v3308_v50, %v3280_v20 }
 0x388   : > { %v3371_v44 = vpop.f32.mrf.mxu0 }
 0x389   : > { %v3339_v22 = vpop.f32.mrf.mxu3  ;;  %v3338_v11 = vadd.f32 %v3337_v1, %v3309_v35 }
 0x38b   : > { %v3367_v20 = vadd.f32 %v3366_v62, %v3338_v11 }
 0x38d   : > { %v3310_v4 = vpop.f32.mrf.mxu2 }
 0x38e   : > { %v3286_v24 = vpop.f32.mrf.mxu1  ;;  %v3311_v5 = vadd.f32 %v3310_v4, %v3282_v56 }
 0x38f   : > { %v3287_v49 = vadd.f32 %v3286_v24, %v3258_v63  ;;  %v3234_v63 = vadd.f32 %v3233_v47, %v3205_v61  ;;  %v3261_v24 = vadd.f32 %v3260_v32, %v3232_v58 }
 0x390   : > { %v3373_v39 = vpop.f32.mrf.mxu0  ;;  %v3340_v12 = vadd.f32 %v3339_v22, %v3311_v5 }
 0x391   : > { %v3342_v37 = vpop.f32.mrf.mxu3  ;;  %v3263_v8 = vadd.f32 %v3262_v2, %v3234_v63 }
 0x395   : > { %v3313_v21 = vpop.f32.mrf.mxu2 }
 0x396   : > { %v3289_v38 = vpop.f32.mrf.mxu1  ;;  %v3314_v0 = vadd.f32 %v3313_v21, %v3285_v10  ;;  %v3369_v10 = vadd.f32 %v3368_v31, %v3340_v12 }
 0x397   : > { %v3290_v3 = vadd.f32 %v3289_v38, %v3261_v24 }
 0x398   : > { %v3343_v16 = vadd.f32 %v3342_v37, %v3314_v0  ;;  %v3376_v56 = vpop.f32.mrf.mxu0 }
 0x399   : > { %v3344_v17 = vpop.f32.mrf.mxu3 }
 0x39a   : > { %v3372_v46 = vadd.f32 %v3371_v44, %v3343_v16 }
 0x39d   : > { %v3315_v7 = vpop.f32.mrf.mxu2 }
 0x39e   : > { %v3291_v48 = vpop.f32.mrf.mxu1  ;;  %v3316_v26 = vadd.f32 %v3315_v7, %v3287_v49 }
 0x39f   : > { %v3292_v47 = vadd.f32 %v3291_v48, %v3263_v8 }
 0x3a0   : > { %v3345_v42 = vadd.f32 %v3344_v17, %v3316_v26 }
 0x3a1   : > { %v3347_v25 = vpop.f32.mrf.mxu3 }
 0x3a2   : > { %v3374_v48 = vadd.f32 %v3373_v39, %v3345_v42 }
 0x3a5   : > { %v3318_v23 = vpop.f32.mrf.mxu2 }
 0x3a6   : > { %v3390_v55 = vpop.f32.mrf.mxu1  ;;  %v3319_v6 = vadd.f32 %v3318_v23, %v3290_v3 }
 0x3a7   : > { %v5974_v52 = vadd.f32 %v3390_v55, %v3362_v40 }
 0x3a8   : > { %v3348_v38 = vadd.f32 %v3347_v25, %v3319_v6 }
 0x3a9   : > { %v3349_v1 = vpop.f32.mrf.mxu3 }
 0x3aa   : > { %v3377_v31 = vadd.f32 %v3376_v56, %v3348_v38 }
 0x3ad   : > { %v3320_v30 = vpop.f32.mrf.mxu2 }
 0x3ae   : > { %v3392_v13 = vpop.f32.mrf.mxu1  ;;  %v3321_v50 = vadd.f32 %v3320_v30, %v3292_v47 }
 0x3af   : > { %v5972_v53 = vadd.f32 %v3392_v13, %v3364_v18 }
 0x3b0   : > { %v3350_v55 = vadd.f32 %v3349_v1, %v3321_v50 }
 0x3b1   : > { %v3410_v2 = vadd.f32 %v5972_v53, %v5974_v52  ;;  %v3428_v13 = vmul.f32 %v5972_v53, %v5972_v53 }
 0x3b6   : > { %v3395_v36 = vpop.f32.mrf.mxu1 }
 0x3b7   : > { %v5976_v32 = vadd.f32 %v3395_v36, %v3367_v20  ;;  %v3427_v36 = vmul.f32 %v5974_v52, %v5974_v52 }
 0x3b9   : > { %v3411_v4 = vadd.f32 %v3410_v2, %v5976_v32  ;;  %v3429_v37 = vmul.f32 %v5976_v32, %v5976_v32  ;;  %v3435_v17 = vadd.f32 %v3428_v13, %v3427_v36  ;;  %v4891_v36 = vld [vmem:[%s6045_s3 + $0x1] ss:$0 sm:$0xff] }
 0x3bb   : > { %v3436_v43 = vadd.f32 %v3435_v17, %v3429_v37 }
 0x3be   : > { %v3397_v19 = vpop.f32.mrf.mxu1 }
 0x3bf   : > { %v5980_v49 = vadd.f32 %v3397_v19, %v3369_v10  ;;  %v3378_v19 = vpop.f32.mrf.mxu0 }
 0x3c0   : > { %v3379_v54 = vadd.f32 %v3378_v19, %v3350_v55 }
 0x3c1   : > { %v3412_v22 = vadd.f32 %v3411_v4, %v5980_v49  ;;  %v3430_v15 = vmul.f32 %v5980_v49, %v5980_v49 }
 0x3c3   : > { %v3437_v39 = vadd.f32 %v3436_v43, %v3430_v15 }
 0x3c6   : > { %v3400_v14 = vpop.f32.mrf.mxu1 }
 0x3c7   : > { %v5983_v62 = vadd.f32 %v3400_v14, %v3372_v46 }
 0x3c9   : > { %v3413_v7 = vadd.f32 %v3412_v22, %v5983_v62  ;;  %v3431_v23 = vmul.f32 %v5983_v62, %v5983_v62 }
 0x3cb   : > { %v3438_v33 = vadd.f32 %v3437_v39, %v3431_v23 }
 0x3ce   : > { %v3402_v29 = vpop.f32.mrf.mxu1 }
 0x3cf   : > { %v5988_v21 = vadd.f32 %v3402_v29, %v3374_v48 }
 0x3d1   : > { %v3414_v29 = vadd.f32 %v3413_v7, %v5988_v21  ;;  %v3432_v58 = vmul.f32 %v5988_v21, %v5988_v21 }
 0x3d3   : > { %v3439_v27 = vadd.f32 %v3438_v33, %v3432_v58 }
 0x3d6   : > { %v3405_v41 = vpop.f32.mrf.mxu1 }
 0x3d7   : > { %v5995_v44 = vadd.f32 %v3405_v41, %v3377_v31 }
 0x3d9   : > { %v3415_v34 = vadd.f32 %v3414_v29, %v5995_v44  ;;  %v3433_v5 = vmul.f32 %v5995_v44, %v5995_v44 }
 0x3db   : > { %v3440_v11 = vadd.f32 %v3439_v27, %v3433_v5 }
 0x3de   : > { %v3407_v14 = vpop.f32.mrf.mxu1 }
 0x3df   : > { %v6002_v61 = vadd.f32 %v3407_v14, %v3379_v54 }
 0x3e1   : > { %v3416_v35 = vadd.f32 %v3415_v34, %v6002_v61  ;;  %v3434_v63 = vmul.f32 %v6002_v61, %v6002_v61 }
 0x3e3   : > { %3417 = vadd.xlane.f32.xlu1 %v3416_v35  ;;  %v3441_v0 = vadd.f32 %v3440_v11, %v3434_v63 }
 0x3eb   : > { %3442 = vadd.xlane.f32.xlu1 %v3441_v0 }
 0x456   : > { %v3418_v24 = vpop.xlane.xlu1 %3417 }
 0x457   : > { %v3419_v25 = vrot.slane %v3418_v24, 4 }
 0x459   : > { %v3420_v12 = vadd.f32 %v3419_v25, %v3418_v24 }
 0x45b   : > { %v3421_v3 = vrot.slane %v3420_v12, 2 }
 0x45d   : > { %v3422_v26 = vadd.f32 %v3421_v3, %v3420_v12 }
 0x45e   : > { %v3443_v18 = vpop.xlane.xlu1 %3442 }
 0x45f   : > { %v3444_v8 = vrot.slane %v3443_v18, 4  ;;  %v3423_v40 = vrot.slane %v3422_v26, 1 }
 0x461   : > { %v3445_v16 = vadd.f32 %v3444_v8, %v3443_v18  ;;  %v3424_v6 = vadd.f32 %v3423_v40, %v3422_v26 }
 0x463   : > { %v3446_v30 = vrot.slane %v3445_v16, 2  ;;  %4872 = vpush %v3424_v6 }
 0x465   : > { %v3447_v20 = vadd.f32 %v3446_v30, %v3445_v16 }
 0x467   : > { %v3448_v56 = vrot.slane %v3447_v20, 1 }
 0x469   : > { %v3449_v47 = vadd.f32 %v3448_v56, %v3447_v20 }
 0x46b   : > { %4874 = vpush %v3449_v47 }
 0x494   : > { %s4873_s27 = spop %4872 }
 0x495   : > { %s3426_s29 = smul.f32 0.001953125, %s4873_s27 }
 0x497   : > { %s3452_s30 = smul.f32 %s3426_s29, %s3426_s29  ;;  %v3454_v4 = vstv %s3426_s29 }
 0x498   : > { %v3455_v48 = vsub.f32 %v5974_v52, %v3454_v4  ;;  %v3456_v55 = vsub.f32 %v5972_v53, %v3454_v4  ;;  %v3457_v13 = vsub.f32 %v5976_v32, %v3454_v4  ;;  %v3458_v22 = vsub.f32 %v5980_v49, %v3454_v4  ;;  %v4892_v49 = vld [vmem:[%s6046_s4 + $0x1] ss:$0 sm:$0xff] }
 0x499   : > { %v3459_v31 = vsub.f32 %v5983_v62, %v3454_v4  ;;  %v3460_v37 = vsub.f32 %v5988_v21, %v3454_v4  ;;  %v3461_v7 = vsub.f32 %v5995_v44, %v3454_v4  ;;  %v3462_v19 = vsub.f32 %v6002_v61, %v3454_v4 }
 0x49c   : > { %s4875_s7 = spop %4874 }
 0x49d   : > { %s3451_s8 = smul.f32 0.001953125, %s4875_s7 }
 0x49f   : > { %s3453_s9 = ssub.f32 %s3451_s8, %s3452_s30 }
 0x4a1   : > { %s3463_s6 = sadd.f32 1e-05, %s3453_s9 }
 0x4a3   : > { %v3464_v42 = vstv %s3463_s6 }
 0x4a4   : > { %4895 = vrsqrt.f32 %v3464_v42  ;;  %vm3471_vm0 = vweird.f32 %v3464_v42 }
 0x4aa   : > { %v4896_v10 = vpop.eup %4895 }
 0x4ab   : > { %v3466_v50 = vmul.f32 %v4896_v10, %v3464_v42  ;;  %vm3472_vm15 = vweird.f32 %v4896_v10 }
 0x4ac   : > { %vm3473_vm1 = vmor %vm3471_vm0, %vm3472_vm15 }
 0x4ad   : > { %v3467_v38 = vmul.f32 %v4896_v10, %v3466_v50  ;;  %v6066_v50 = vld [vmem:[#allocation6_spill] sm:$0xff] }
 0x4af   : > { %v3468_v2 = vmul.f32 0.5, %v3467_v38 }
 0x4b1   : > { %v3469_v46 = vsub.f32 1.5, %v3468_v2 }
 0x4b3   : > { %v3470_v41 = vmul.f32 %v4896_v10, %v3469_v46 }
 0x4b5   : > { %v3474_v1 = vsel %vm3473_vm1, %v4896_v10, %v3470_v41 }
 0x4b6   : > { %4876 = vpush %v3474_v1 }
 0x4e7   : > { %s4877_s10 = spop %4876 }
 0x4e8   : > { %v3476_v52 = vstv %s4877_s10 }
 0x4e9   : > { %v3477_v17 = vmul.f32 %v3476_v52, %v3455_v48  ;;  %v3478_v53 = vmul.f32 %v3476_v52, %v3456_v55  ;;  %v3479_v15 = vmul.f32 %v3476_v52, %v3457_v13  ;;  %v3480_v32 = vmul.f32 %v3476_v52, %v3458_v22 }
 0x4ea   : > { %v3481_v62 = vmul.f32 %v3476_v52, %v3459_v31  ;;  %v3482_v54 = vmul.f32 %v3476_v52, %v3460_v37  ;;  %v3483_v29 = vmul.f32 %v3476_v52, %v3461_v7  ;;  %v3484_v14 = vmul.f32 %v3476_v52, %v3462_v19 }
 0x4eb   : > { %v3490_v43 = vmul.f32 %v4891_v36, %v3477_v17  ;;  %v3491_v23 = vmul.f32 %v4891_v36, %v3478_v53  ;;  %v3492_v21 = vmul.f32 %v4891_v36, %v3479_v15  ;;  %v3493_v34 = vmul.f32 %v4891_v36, %v3480_v32 }
 0x4ec   : > { %v3494_v44 = vmul.f32 %v4891_v36, %v3481_v62  ;;  %v3495_v61 = vmul.f32 %v4891_v36, %v3482_v54  ;;  %v3496_v39 = vmul.f32 %v4891_v36, %v3483_v29  ;;  %v3497_v58 = vmul.f32 %v4891_v36, %v3484_v14 }
 0x4ed   : > { %v3503_v35 = vadd.f32 %v4892_v49, %v3490_v43  ;;  %v3504_v33 = vadd.f32 %v4892_v49, %v3491_v23  ;;  %v3505_v5 = vadd.f32 %v4892_v49, %v3492_v21  ;;  %v3506_v63 = vadd.f32 %v4892_v49, %v3493_v34 }
 0x4ee   : > { %v3507_v27 = vadd.f32 %v4892_v49, %v3494_v44  ;;  %v3508_v11 = vadd.f32 %v4892_v49, %v3495_v61  ;;  %v3509_v0 = vadd.f32 %v4892_v49, %v3496_v39  ;;  %v3510_v24 = vadd.f32 %v4892_v49, %v3497_v58 }
 0x4ef   : > { %v3511_v25 = vmax.f32 %v3503_v35, 0.0  ;;  %v3512_v12 = vmax.f32 %v3504_v33, 0.0  ;;  %v3513_v3 = vmax.f32 %v3505_v5, 0.0  ;;  %v3514_v26 = vmax.f32 %v3506_v63, 0.0 }
 0x4f0   : > { %v3515_v18 = vmax.f32 %v3507_v27, 0.0  ;;  %v3516_v8 = vmax.f32 %v3508_v11, 0.0  ;;  %v3517_v40 = vmax.f32 %v3509_v0, 0.0  ;;  %v3518_v20 = vmax.f32 %v3510_v24, 0.0 }
 0x4f1   : > { %v3519_v16 = vadd.f32 %v3511_v25, %v5626_v57  ;;  %v3520_v6 = vadd.f32 %v3512_v12, %v5629_v59  ;;  %v3521_v30 = vadd.f32 %v3513_v3, %v5632_v60  ;;  %v3522_v56 = vadd.f32 %v3514_v26, %v5635_v51 }
 0x4f2   : > { %v3523_v47 = vadd.f32 %v3515_v18, %v5641_v9  ;;  %v3524_v42 = vadd.f32 %v3516_v8, %v5644_v45  ;;  %v3525_v10 = vadd.f32 %v3517_v40, %v5647_v28  ;;  %v3526_v38 = vadd.f32 %v3518_v20, %v6066_v50 }
 0x4f3   : > { %3527 = vst [vmem:[%s224_s17] sm:$0xff] %v3519_v16 }
 0x4f4   : > { %3528 = vst [vmem:[%s224_s17 + $0x8] sm:$0xff] %v3520_v6 }
 0x4f5   : > { %3529 = vst [vmem:[%s224_s17 + $0x10] sm:$0xff] %v3521_v30 }
 0x4f6   : > { %3530 = vst [vmem:[%s224_s17 + $0x18] sm:$0xff] %v3522_v56 }
 0x4f7   : > { %3531 = vst [vmem:[%s224_s17 + $0x20] sm:$0xff] %v3523_v47 }
 0x4f8   : > { %3532 = vst [vmem:[%s224_s17 + $0x28] sm:$0xff] %v3524_v42 }
 0x4f9   : > { %3533 = vst [vmem:[%s224_s17 + $0x30] sm:$0xff] %v3525_v10 }
 0x4fa   : > { %3534 = vst [vmem:[%s224_s17 + $0x38] sm:$0xff] %v3526_v38 }
 0x4fb PF: > { %s15_s18 = sadd.s32 1, %s4911_s18  }
 0x4fc   : > { %p12_p4 = scmp.ge.s32.totalorder %s15_s18, 4  }
 0x4fe   :  { %14 = sbr.rel (!%p12_p4) target bundleno = 1 (0x1), region = 75 }

</bundles_post_ra>
